<compile_context>
chip_gen: v5e
topology: v5e:2x2
jax: 0.10.0
libtpu: 0.0.40
codegen_flags: <defaults>
</compile_context>

<pallas_src>
import functools

import jax
import jax.numpy as jnp
from jax.experimental import pallas as pl
from jax.experimental.pallas import tpu as pltpu

LANE = 128
SUBLANE = 8


def _round_up(v, m):
    return ((v + m - 1) // m) * m


def _cdiv(a, b):
    return (a + b - 1) // b


def _vmem_capacity_bytes():
    try:
        return int(pltpu.get_tpu_info().vmem_capacity_bytes)
    except Exception:
        return 64 * 1024 * 1024  # conservative fallback (v7x per-core VMEM)


def attn_gated_kernel(x_ref, wab_ref, bab_ref, wct_ref, bct_ref, out_ref, *, Dp):
    """One tile of N rows, fully on-chip:
       * fused (L -> 2*Dp) matmul gives both gating branches in one MXU pass
       * tanh / sigmoid gate (EUP + VPU), slices lane-aligned at Dp
       * (Dp -> C_sub) projection, emitted transposed as a lane-dense
         (C_sub, tile_n) f32 block (no 128-lane class padding)."""
    x = x_ref[...]  # native dtype (f32 or bf16) straight into the MXU

    ab = jnp.dot(x, wab_ref[...], preferred_element_type=jnp.float32)
    ab = ab + bab_ref[...]
    a = jnp.tanh(ab[:, :Dp])            # attention_a branch (lane-aligned slice)
    b = jax.nn.sigmoid(ab[:, Dp:])      # attention_b branch (lane-aligned slice)
    gated = (a * b).astype(wct_ref.dtype)           # (tile_n, Dp)

    # (C_sub, Dp) x (tile_n, Dp) contracting Dp -> (C_sub, tile_n): lane-dense
    # output with N on the lane axis (q @ k^T style contraction, no transpose
    # materialized).
    out_t = jax.lax.dot_general(
        wct_ref[...], gated,
        dimension_numbers=(((1,), (1,)), ((), ())),
        preferred_element_type=jnp.float32)
    out_t = out_t + bct_ref[...]
    out_ref[...] = out_t.astype(out_ref.dtype)      # f32 always


def attn_net_gated(x, wa, ba, wb, bb, wc, bc, *, tile_n=None):
    """Pallas wrapper.

    x: (N, L); wa/wb: (L, D); ba/bb: (1, D); wc: (D, C); bc: (1, C).
    Returns (A, x) like the PyTorch module; A has shape (N, C), dtype float32.
    """
    N, L = x.shape
    D = wa.shape[1]
    C = wc.shape[1]

    # ---- one-time parameter prep (plain XLA ops outside the kernel) -------
    Dp = _round_up(D, LANE)           # lane-aligned gating width
    C_sub = _round_up(C, SUBLANE)     # sublane-aligned class rows (transposed out)
    pd = Dp - D
    wab = jnp.concatenate(
        [jnp.pad(wa, ((0, 0), (0, pd))), jnp.pad(wb, ((0, 0), (0, pd)))], axis=1)
    bab = jnp.concatenate(
        [jnp.pad(ba, ((0, 0), (0, pd))), jnp.pad(bb, ((0, 0), (0, pd)))], axis=1)
    wct = jnp.pad(wc.T, ((0, C_sub - C), (0, pd)))     # (C_sub, Dp)
    bct = jnp.pad(bc.T, ((0, C_sub - C), (0, 0)))      # (C_sub, 1)

    x_item = jnp.dtype(x.dtype).itemsize
    w_item = jnp.dtype(wab.dtype).itemsize
    wc_item = jnp.dtype(wct.dtype).itemsize
    out_item = 4  # A is emitted in f32

    # ---- generation-aware VMEM budget & byte-based tile sizing ------------
    vmem_cap = _vmem_capacity_bytes()
    budget = int(vmem_cap * 0.5)        # tiles target ~half of physical VMEM
    vmem_limit = int(vmem_cap * 0.85)   # explicit scoped-VMEM limit, with headroom
    w_bytes = (wab.size + bab.size) * w_item + (wct.size + bct.size) * wc_item

    N_128 = _round_up(N, LANE)
    if tile_n is None:
        stream_per_row = 2 * L * x_item + 2 * C_sub * out_item  # dbl-buffered in/out
        avail = max(budget - 2 * w_bytes, 1 << 20)  # safe even if weights dbl-buffer
        fit_cap = avail // stream_per_row
        bytes_cap = max(LANE, (8 << 20) // max(L * x_item, 1))    # x tile <= ~8 MiB
        mc_cap = max(_round_up(_cdiv(N, 4), LANE), 1024)          # >=4 steps when N big
        tile_n = min(fit_cap, bytes_cap, mc_cap)
    tile_n = max(LANE, (int(tile_n) // LANE) * LANE)  # lane-dense output blocks
    tile_n = min(tile_n, N_128)
    N_pad = _round_up(N, tile_n)
    grid = (N_pad // tile_n,)

    x_in = x if N_pad == N else jnp.pad(x, ((0, N_pad - N), (0, 0)))

    kernel = functools.partial(attn_gated_kernel, Dp=Dp)

    cost = pl.CostEstimate(
        flops=2 * N_pad * L * (2 * Dp) + 2 * N_pad * Dp * C_sub,
        transcendentals=2 * N_pad * Dp,
        bytes_accessed=N_pad * L * x_item + w_bytes + C_sub * N_pad * out_item)

    def _run(single_buffer_weights):
        # Constant-index_map weights: single buffer frees VMEM for bigger x tiles.
        wkw = dict(pipeline_mode=pl.Buffered(1)) if single_buffer_weights else {}
        return pl.pallas_call(
            kernel,
            out_shape=jax.ShapeDtypeStruct((C_sub, N_pad), jnp.float32),
            grid_spec=pltpu.PrefetchScalarGridSpec(
                num_scalar_prefetch=0,
                grid=grid,
                in_specs=[
                    pl.BlockSpec((tile_n, L), lambda i: (i, 0)),           # x (streamed)
                    pl.BlockSpec((L, 2 * Dp), lambda i: (0, 0), **wkw),    # Wa|Wb fused
                    pl.BlockSpec((1, 2 * Dp), lambda i: (0, 0), **wkw),    # ba|bb fused
                    pl.BlockSpec((C_sub, Dp), lambda i: (0, 0), **wkw),    # Wc^T (padded)
                    pl.BlockSpec((C_sub, 1), lambda i: (0, 0), **wkw),     # bc^T (padded)
                ],
                out_specs=pl.BlockSpec((C_sub, tile_n), lambda i: (0, i)),  # lane-dense
            ),
            compiler_params=pltpu.CompilerParams(
                dimension_semantics=("parallel",),       # megacore shards N tiles
                vmem_limit_bytes=vmem_limit),
            cost_estimate=cost,
        )(x_in, wab, bab, wct, bct)

    try:
        A_t = _run(True)         # resident weights single-buffered
    except Exception:
        A_t = _run(False)        # fallback: default double-buffering

    A = A_t[:C, :N].T            # (N, C), f32; drops class/row padding
    return A, x


def attn_net_gated_ref(x, wa, ba, wb, bb, wc, bc):
    xf = x.astype(jnp.float32)
    a = jnp.tanh(xf @ wa.astype(jnp.float32) + ba.astype(jnp.float32))
    b = jax.nn.sigmoid(xf @ wb.astype(jnp.float32) + bb.astype(jnp.float32))
    return (a * b) @ wc.astype(jnp.float32) + bc.astype(jnp.float32), x


if __name__ == "__main__":
    # Small synthetic shapes consistent with the module (L features, D hidden,
    # n_classes=1). N=300 is deliberately not a tile multiple to exercise the
    # row-padding path.
    N, L, D, C = 300, 64, 32, 1

    key = jax.random.PRNGKey(0)
    kx, ka, kba, kb, kbb, kc, kbc = jax.random.split(key, 7)

    x = jax.random.normal(kx, (N, L), dtype=jnp.float32)
    wa = jax.random.normal(ka, (L, D), dtype=jnp.float32) * (1.0 / jnp.sqrt(L))
    ba = jax.random.normal(kba, (1, D), dtype=jnp.float32) * 0.01
    wb = jax.random.normal(kb, (L, D), dtype=jnp.float32) * (1.0 / jnp.sqrt(L))
    bb = jax.random.normal(kbb, (1, D), dtype=jnp.float32) * 0.01
    wc = jax.random.normal(kc, (D, C), dtype=jnp.float32) * (1.0 / jnp.sqrt(D))
    bc = jax.random.normal(kbc, (1, C), dtype=jnp.float32) * 0.01

    # TODO(synk): nn.Dropout(0.25) only exists when dropout=True and is identity
    # in eval mode; the inference forward pass implemented here omits it.

    A_ref, _ = attn_net_gated_ref(x, wa, ba, wb, bb, wc, bc)

    # ---- f32, auto tile selection -----------------------------------------
    A, x_out = attn_net_gated(x, wa, ba, wb, bb, wc, bc)
    jax.block_until_ready((A, x_out))
    assert A.shape == (N, C) and A.dtype == jnp.float32
    assert x_out.shape == (N, L)
    assert jnp.array_equal(x_out, x)
    # Tolerance covers TPU f32 matmul default-precision (bf16-pass) effects in
    # either the kernel or the jnp reference.
    assert jnp.allclose(A, A_ref, atol=3e-2, rtol=3e-2)

    # ---- f32, forced multi-step grid (row padding + pipelining path) -------
    A2, _ = attn_net_gated(x, wa, ba, wb, bb, wc, bc, tile_n=128)
    jax.block_until_ready(A2)
    assert jnp.allclose(A2, A_ref, atol=3e-2, rtol=3e-2)

    # ---- bf16 streaming path (halves HBM read bytes); A still emitted f32 --
    bf = lambda t: t.astype(jnp.bfloat16)
    A_bf, x_bf_out = attn_net_gated(bf(x), bf(wa), bf(ba), bf(wb), bf(bb),
                                    bf(wc), bf(bc))
    jax.block_until_ready((A_bf, x_bf_out))
    A_ref_bf, _ = attn_net_gated_ref(bf(x), bf(wa), bf(ba), bf(wb), bf(bb),
                                     bf(wc), bf(bc))
    assert A_bf.dtype == jnp.float32
    assert jnp.allclose(A_bf, A_ref_bf, atol=7e-2, rtol=7e-2)

    print("KERNEL_OK")
</pallas_src>

<mosaic_0001>
module attributes {stable_mosaic.version = 11 : i64} {
  func.func @attn_gated_kernel(%arg0: i32, %arg1: memref<384x64xf32, #tpu.memory_space<vmem>>, %arg2: memref<64x256xf32, #tpu.memory_space<vmem>>, %arg3: memref<1x256xf32, #tpu.memory_space<vmem>>, %arg4: memref<8x128xf32, #tpu.memory_space<vmem>>, %arg5: memref<8x1xf32, #tpu.memory_space<vmem>>, %arg6: memref<8x384xf32, #tpu.memory_space<vmem>>) attributes {dimension_semantics = [#tpu.dimension_semantics<parallel>], iteration_bounds = array<i64: 1>, scalar_prefetch = 0 : i64, scratch_operands = 0 : i64, tpu.core_type = #tpu.core_type<tc>, window_params = [{transform_indices = @transform_0, window_bounds = array<i64: 384, 64>}, {pipeline_mode = #tpu.pipeline_mode<synchronous>, transform_indices = @transform_1, window_bounds = array<i64: 64, 256>}, {pipeline_mode = #tpu.pipeline_mode<synchronous>, transform_indices = @transform_2, window_bounds = array<i64: 1, 256>}, {pipeline_mode = #tpu.pipeline_mode<synchronous>, transform_indices = @transform_3, window_bounds = array<i64: 8, 128>}, {pipeline_mode = #tpu.pipeline_mode<synchronous>, transform_indices = @transform_4, window_bounds = array<i64: 8, 1>}, {transform_indices = @transform_5, window_bounds = array<i64: 8, 384>}]} {
    %c0 = arith.constant 0 : index
    %c0_0 = arith.constant 0 : index
    %0 = vector.load %arg1[%c0, %c0_0] : memref<384x64xf32, #tpu.memory_space<vmem>>, vector<384x64xf32>
    %c0_1 = arith.constant 0 : index
    %c0_2 = arith.constant 0 : index
    %1 = vector.load %arg2[%c0_1, %c0_2] : memref<64x256xf32, #tpu.memory_space<vmem>>, vector<64x256xf32>
    %cst = arith.constant dense<0.000000e+00> : vector<384x256xf32>
    %2 = tpu.matmul %0, %1, %cst {dimension_numbers = #tpu.dot_dimension_numbers<[1], [0], [0], [1], [0, 0, 1, 1], [], []>} : vector<384x64xf32>, vector<64x256xf32>, vector<384x256xf32> -> vector<384x256xf32>
    %c0_3 = arith.constant 0 : index
    %c0_4 = arith.constant 0 : index
    %3 = vector.load %arg3[%c0_3, %c0_4] : memref<1x256xf32, #tpu.memory_space<vmem>>, vector<1x256xf32>
    %4 = vector.broadcast %3 : vector<1x256xf32> to vector<384x256xf32>
    %5 = arith.addf %2, %4 : vector<384x256xf32>
    %6 = vector.extract_strided_slice %5 {offsets = [0, 0], sizes = [384, 128], strides = [1, 1]} : vector<384x256xf32> to vector<384x128xf32>
    %7 = math.tanh %6 : vector<384x128xf32>
    %8 = vector.extract_strided_slice %5 {offsets = [0, 128], sizes = [384, 128], strides = [1, 1]} : vector<384x256xf32> to vector<384x128xf32>
    %9 = arith.negf %8 : vector<384x128xf32>
    %10 = math.exp %9 : vector<384x128xf32>
    %cst_5 = arith.constant 1.000000e+00 : f32
    %11 = vector.broadcast %cst_5 : f32 to vector<384x128xf32>
    %12 = arith.addf %11, %10 : vector<384x128xf32>
    %13 = arith.divf %11, %12 : vector<384x128xf32>
    %14 = arith.mulf %7, %13 : vector<384x128xf32>
    %c0_6 = arith.constant 0 : index
    %c0_7 = arith.constant 0 : index
    %15 = vector.load %arg4[%c0_6, %c0_7] : memref<8x128xf32, #tpu.memory_space<vmem>>, vector<8x128xf32>
    %cst_8 = arith.constant dense<0.000000e+00> : vector<8x384xf32>
    %16 = tpu.matmul %15, %14, %cst_8 {dimension_numbers = #tpu.dot_dimension_numbers<[1], [1], [0], [0], [0, 0, 1, 0], [], []>} : vector<8x128xf32>, vector<384x128xf32>, vector<8x384xf32> -> vector<8x384xf32>
    %c0_9 = arith.constant 0 : index
    %c0_10 = arith.constant 0 : index
    %17 = vector.load %arg5[%c0_9, %c0_10] : memref<8x1xf32, #tpu.memory_space<vmem>>, vector<8x1xf32>
    %18 = vector.broadcast %17 : vector<8x1xf32> to vector<8x384xf32>
    %19 = arith.addf %16, %18 : vector<8x384xf32>
    %c0_11 = arith.constant 0 : index
    %c0_12 = arith.constant 0 : index
    %20 = vector.load %arg6[%c0_11, %c0_12] : memref<8x384xf32, #tpu.memory_space<vmem>>, vector<8x384xf32>
    tpu.vector_store %arg6[%c0_11, %c0_12], %19 {strides = array<i32>} : memref<8x384xf32, #tpu.memory_space<vmem>>, vector<8x384xf32>,
    return
  }
  func.func @transform_0(%arg0: i32) -> (i32, i32) {
    %c0_i32 = arith.constant 0 : i32
    %c0_i32_0 = arith.constant 0 : i32
    return %arg0, %c0_i32 : i32, i32
  }
  func.func @transform_1(%arg0: i32) -> (i32, i32) {
    %c0_i32 = arith.constant 0 : i32
    %c0_i32_0 = arith.constant 0 : i32
    %c0_i32_1 = arith.constant 0 : i32
    return %c0_i32, %c0_i32_0 : i32, i32
  }
  func.func @transform_2(%arg0: i32) -> (i32, i32) {
    %c0_i32 = arith.constant 0 : i32
    %c0_i32_0 = arith.constant 0 : i32
    %c0_i32_1 = arith.constant 0 : i32
    return %c0_i32, %c0_i32_0 : i32, i32
  }
  func.func @transform_3(%arg0: i32) -> (i32, i32) {
    %c0_i32 = arith.constant 0 : i32
    %c0_i32_0 = arith.constant 0 : i32
    %c0_i32_1 = arith.constant 0 : i32
    return %c0_i32, %c0_i32_0 : i32, i32
  }
  func.func @transform_4(%arg0: i32) -> (i32, i32) {
    %c0_i32 = arith.constant 0 : i32
    %c0_i32_0 = arith.constant 0 : i32
    %c0_i32_1 = arith.constant 0 : i32
    return %c0_i32, %c0_i32_0 : i32, i32
  }
  func.func @transform_5(%arg0: i32) -> (i32, i32) {
    %c0_i32 = arith.constant 0 : i32
    %c0_i32_0 = arith.constant 0 : i32
    return %c0_i32, %arg0 : i32, i32
  }
}

module attributes {stable_mosaic.version = 11 : i64} {
  func.func @attn_gated_kernel(%arg0: i32, %arg1: memref<384x64xf32, #tpu.memory_space<vmem>>, %arg2: memref<64x256xf32, #tpu.memory_space<vmem>>, %arg3: memref<1x256xf32, #tpu.memory_space<vmem>>, %arg4: memref<8x128xf32, #tpu.memory_space<vmem>>, %arg5: memref<8x1xf32, #tpu.memory_space<vmem>>, %arg6: memref<8x384xf32, #tpu.memory_space<vmem>>) attributes {dimension_semantics = [#tpu.dimension_semantics<parallel>], iteration_bounds = array<i64: 1>, scalar_prefetch = 0 : i64, scratch_operands = 0 : i64, tpu.core_type = #tpu.core_type<tc>, window_params = [{transform_indices = @transform_0, window_bounds = array<i64: 384, 64>}, {pipeline_mode = #tpu.pipeline_mode<synchronous>, transform_indices = @transform_1, window_bounds = array<i64: 64, 256>}, {pipeline_mode = #tpu.pipeline_mode<synchronous>, transform_indices = @transform_2, window_bounds = array<i64: 1, 256>}, {pipeline_mode = #tpu.pipeline_mode<synchronous>, transform_indices = @transform_3, window_bounds = array<i64: 8, 128>}, {pipeline_mode = #tpu.pipeline_mode<synchronous>, transform_indices = @transform_4, window_bounds = array<i64: 8, 1>}, {transform_indices = @transform_5, window_bounds = array<i64: 8, 384>}]} {
    %c0 = arith.constant 0 : index
    %c0_0 = arith.constant 0 : index
    %0 = vector.load %arg1[%c0, %c0_0] : memref<384x64xf32, #tpu.memory_space<vmem>>, vector<384x64xf32>
    %c0_1 = arith.constant 0 : index
    %c0_2 = arith.constant 0 : index
    %1 = vector.load %arg2[%c0_1, %c0_2] : memref<64x256xf32, #tpu.memory_space<vmem>>, vector<64x256xf32>
    %cst = arith.constant dense<0.000000e+00> : vector<384x256xf32>
    %2 = tpu.matmul %0, %1, %cst {dimension_numbers = #tpu.dot_dimension_numbers<[1], [0], [0], [1], [0, 0, 1, 1], [], []>} : vector<384x64xf32>, vector<64x256xf32>, vector<384x256xf32> -> vector<384x256xf32>
    %c0_3 = arith.constant 0 : index
    %c0_4 = arith.constant 0 : index
    %3 = vector.load %arg3[%c0_3, %c0_4] : memref<1x256xf32, #tpu.memory_space<vmem>>, vector<1x256xf32>
    %4 = vector.broadcast %3 : vector<1x256xf32> to vector<384x256xf32>
    %5 = arith.addf %2, %4 : vector<384x256xf32>
    %6 = vector.extract_strided_slice %5 {offsets = [0, 0], sizes = [384, 128], strides = [1, 1]} : vector<384x256xf32> to vector<384x128xf32>
    %7 = math.tanh %6 : vector<384x128xf32>
    %8 = vector.extract_strided_slice %5 {offsets = [0, 128], sizes = [384, 128], strides = [1, 1]} : vector<384x256xf32> to vector<384x128xf32>
    %9 = arith.negf %8 : vector<384x128xf32>
    %10 = math.exp %9 : vector<384x128xf32>
    %cst_5 = arith.constant 1.000000e+00 : f32
    %11 = vector.broadcast %cst_5 : f32 to vector<384x128xf32>
    %12 = arith.addf %11, %10 : vector<384x128xf32>
    %13 = arith.divf %11, %12 : vector<384x128xf32>
    %14 = arith.mulf %7, %13 : vector<384x128xf32>
    %c0_6 = arith.constant 0 : index
    %c0_7 = arith.constant 0 : index
    %15 = vector.load %arg4[%c0_6, %c0_7] : memref<8x128xf32, #tpu.memory_space<vmem>>, vector<8x128xf32>
    %cst_8 = arith.constant dense<0.000000e+00> : vector<8x384xf32>
    %16 = tpu.matmul %15, %14, %cst_8 {dimension_numbers = #tpu.dot_dimension_numbers<[1], [1], [0], [0], [0, 0, 1, 0], [], []>} : vector<8x128xf32>, vector<384x128xf32>, vector<8x384xf32> -> vector<8x384xf32>
    %c0_9 = arith.constant 0 : index
    %c0_10 = arith.constant 0 : index
    %17 = vector.load %arg5[%c0_9, %c0_10] : memref<8x1xf32, #tpu.memory_space<vmem>>, vector<8x1xf32>
    %18 = vector.broadcast %17 : vector<8x1xf32> to vector<8x384xf32>
    %19 = arith.addf %16, %18 : vector<8x384xf32>
    %c0_11 = arith.constant 0 : index
    %c0_12 = arith.constant 0 : index
    %20 = vector.load %arg6[%c0_11, %c0_12] : memref<8x384xf32, #tpu.memory_space<vmem>>, vector<8x384xf32>
    tpu.vector_store %arg6[%c0_11, %c0_12], %19 {strides = array<i32>} : memref<8x384xf32, #tpu.memory_space<vmem>>, vector<8x384xf32>,
    return
  }
  func.func @transform_0(%arg0: i32) -> (i32, i32) {
    %c0_i32 = arith.constant 0 : i32
    %c0_i32_0 = arith.constant 0 : i32
    return %arg0, %c0_i32 : i32, i32
  }
  func.func @transform_1(%arg0: i32) -> (i32, i32) {
    %c0_i32 = arith.constant 0 : i32
    %c0_i32_0 = arith.constant 0 : i32
    %c0_i32_1 = arith.constant 0 : i32
    return %c0_i32, %c0_i32_0 : i32, i32
  }
  func.func @transform_2(%arg0: i32) -> (i32, i32) {
    %c0_i32 = arith.constant 0 : i32
    %c0_i32_0 = arith.constant 0 : i32
    %c0_i32_1 = arith.constant 0 : i32
    return %c0_i32, %c0_i32_0 : i32, i32
  }
  func.func @transform_3(%arg0: i32) -> (i32, i32) {
    %c0_i32 = arith.constant 0 : i32
    %c0_i32_0 = arith.constant 0 : i32
    %c0_i32_1 = arith.constant 0 : i32
    return %c0_i32, %c0_i32_0 : i32, i32
  }
  func.func @transform_4(%arg0: i32) -> (i32, i32) {
    %c0_i32 = arith.constant 0 : i32
    %c0_i32_0 = arith.constant 0 : i32
    %c0_i32_1 = arith.constant 0 : i32
    return %c0_i32, %c0_i32_0 : i32, i32
  }
  func.func @transform_5(%arg0: i32) -> (i32, i32) {
    %c0_i32 = arith.constant 0 : i32
    %c0_i32_0 = arith.constant 0 : i32
    return %c0_i32, %arg0 : i32, i32
  }
}

</mosaic_0001>

<bundles_post_ra>
// kernel: tpu_custom_call.1
= control target key start
LH: loop header
LB: loop body
LE: loop exit
PB: predicated region body
PF: predicated region fallthrough
CT: control target
= control target key end

     0   :  { %s3956_s0 = inlined_call_operand.vmem [shape: f32[384,64], index: 0, kind: input, shape index: {}]   ;;  %s3957_s1 = inlined_call_operand.vmem [shape: f32[64,256], index: 1, kind: input, shape index: {}]   ;;  %s3958_s2 = inlined_call_operand.vmem [shape: f32[1,256], index: 2, kind: input, shape index: {}]   ;;  %s3959_s3 = inlined_call_operand.vmem [shape: f32[8,128], index: 3, kind: input, shape index: {}]   ;;  %s3960_s4 = inlined_call_operand.vmem [shape: f32[8,1], index: 4, kind: input, shape index: {}]   ;;  %s3961_s5 = inlined_call_operand.hbm [shape: f32[8,384], index: 5, kind: output, shape index: {}]  }
   0x1   :  { %v83_v0 = vld [vmem:[%s3957_s1 + $0x70] sm:$0xff]  ;;  %v84_v1 = vld [vmem:[%s3957_s1 + $0x78] sm:$0xff]  ;;  %v81_v2 = vld [vmem:[%s3957_s1 + $0x60] sm:$0xff] }
   0x2   :  { %244 = vmatpush.msra.mxu0 %v83_v0  ;;  %1796 = vmatpush.msra.mxu2 %v83_v0  ;;  %v82_v3 = vld [vmem:[%s3957_s1 + $0x68] sm:$0xff]  ;;  %v79_v4 = vld [vmem:[%s3957_s1 + $0x50] sm:$0xff]  ;;  %v80_v5 = vld [vmem:[%s3957_s1 + $0x58] sm:$0xff] }
   0x3   :  { %405 = vmatpush.msra.mxu1 %v84_v1  ;;  %1797 = vmatpush.msra.mxu3 %v83_v0  ;;  %v77_v6 = vld [vmem:[%s3957_s1 + $0x40] sm:$0xff]  ;;  %v78_v7 = vld [vmem:[%s3957_s1 + $0x48] sm:$0xff]  ;;  %v75_v8 = vld [vmem:[%s3957_s1 + $0x30] sm:$0xff] }
   0x4   :  { %245 = vmatpush.msra.mxu0 %v81_v2  ;;  %1798 = vmatpush.msra.mxu2 %v81_v2  ;;  %v76_v9 = vld [vmem:[%s3957_s1 + $0x38] sm:$0xff] }
   0x5   :  { %406 = vmatpush.msra.mxu1 %v82_v3  ;;  %1799 = vmatpush.msra.mxu3 %v81_v2 }
   0x6   :  { %246 = vmatpush.msra.mxu0 %v79_v4  ;;  %1800 = vmatpush.msra.mxu2 %v79_v4 }
   0x7   :  { %407 = vmatpush.msra.mxu1 %v80_v5  ;;  %1801 = vmatpush.msra.mxu3 %v79_v4 }
   0x8   :  { %247 = vmatpush.msra.mxu0 %v77_v6  ;;  %1802 = vmatpush.msra.mxu2 %v77_v6 }
   0x9   :  { %10 = vsyncpa [#allocation3], 0  ;;  %408 = vmatpush.msra.mxu1 %v78_v7  ;;  %v73_v10 = vld [vmem:[%s3957_s1 + $0x20] sm:$0xff]  ;;  %1803 = vmatpush.msra.mxu3 %v77_v6  ;;  %v74_v11 = vld [vmem:[%s3957_s1 + $0x28] sm:$0xff]  ;;  %vm91_vm0 = vcmask 523264   ;;  %s1643_s23 = sshll.u32 %s3961_s5, 4  ;;  %s1644_s23 = int_to_ptr.hbm [resolvable:$true] %s1643_s23 }
   0xa   :  { %248 = vmatpush.msra.mxu0 %v75_v8  ;;  %1804 = vmatpush.msra.mxu2 %v75_v8  ;;  %v71_v12 = vld [vmem:[%s3957_s1 + $0x10] sm:$0xff]  ;;  %v72_v13 = vld [vmem:[%s3957_s1 + $0x18] sm:$0xff]  ;;  %v69_v14 = vld [vmem:[%s3957_s1] sm:$0xff] }
   0xb   :  { %409 = vmatpush.msra.mxu1 %v76_v9  ;;  %1805 = vmatpush.msra.mxu3 %v75_v8  ;;  %v70_v15 = vld [vmem:[%s3957_s1 + $0x8] sm:$0xff]  ;;  %v21_v16 = vld [vmem:[%s3956_s0] sm:$0xff]  ;;  %v51_v20 = vld [vmem:[%s3956_s0 + $0xf0] sm:$0xff] }
   0xc   :  { %249 = vmatpush.msra.mxu0 %v73_v10  ;;  %1806 = vmatpush.msra.mxu2 %v73_v10  ;;  %v49_v17 = vld [vmem:[%s3956_s0 + $0xe0] sm:$0xff]  ;;  %v22_v18 = vld [vmem:[%s3956_s0 + $0x8] sm:$0xff]  ;;  %v23_v21 = vld [vmem:[%s3956_s0 + $0x10] sm:$0xff] }
   0xd   :  { %410 = vmatpush.msra.mxu1 %v74_v11  ;;  %1807 = vmatpush.msra.mxu3 %v73_v10  ;;  %v50_v19 = vld [vmem:[%s3956_s0 + $0xe8] sm:$0xff]  ;;  %v2245_v22 = vld [vmem:[%s3956_s0 + $0xd8] sm:$0xff]  ;;  %v53_v25 = vld [vmem:[%s3956_s0 + $0x100] sm:$0xff] }
   0xe   :  { %250 = vmatpush.msra.mxu0 %v71_v12  ;;  %1808 = vmatpush.msra.mxu2 %v71_v12  ;;  %v52_v23 = vld [vmem:[%s3956_s0 + $0xf8] sm:$0xff]  ;;  %v25_v26 = vld [vmem:[%s3956_s0 + $0x20] sm:$0xff]  ;;  %v54_v27 = vld [vmem:[%s3956_s0 + $0x108] sm:$0xff] }
   0xf   :  { %411 = vmatpush.msra.mxu1 %v72_v13  ;;  %1809 = vmatpush.msra.mxu3 %v71_v12  ;;  %v24_v24 = vld [vmem:[%s3956_s0 + $0x18] sm:$0xff]  ;;  %v26_v28 = vld [vmem:[%s3956_s0 + $0x28] sm:$0xff]  ;;  %v55_v29 = vld [vmem:[%s3956_s0 + $0x110] sm:$0xff] }
  0x10   :  { %251 = vmatpush.msra.mxu0 %v69_v14  ;;  %1810 = vmatpush.msra.mxu2 %v69_v14  ;;  %v27_v30 = vld [vmem:[%s3956_s0 + $0x30] sm:$0xff]  ;;  %v56_v31 = vld [vmem:[%s3956_s0 + $0x118] sm:$0xff]  ;;  %v57_v33 = vld [vmem:[%s3956_s0 + $0x120] sm:$0xff] }
  0x11   :  { %412 = vmatpush.msra.mxu1 %v70_v15  ;;  %1652 = vmatmul.msk.f32.vlgmr.msra.gmra.mxu0 %vm91_vm0, %v21_v16  ;;  %v28_v32 = vld [vmem:[%s3956_s0 + $0x38] sm:$0xff]  ;;  %v29_v34 = vld [vmem:[%s3956_s0 + $0x40] sm:$0xff]  ;;  %v58_v35 = vld [vmem:[%s3956_s0 + $0x128] sm:$0xff] }
  0x12   :  { %1680 = vmatmul.msk.f32.vlgmr.msra.gmra.mxu2 %vm91_vm0, %v49_v17  ;;  %1700 = vmatmul.msk.f32.vlgmr.msra.gmra.mxu1 %vm91_vm0, %v21_v16  ;;  %v30_v36 = vld [vmem:[%s3956_s0 + $0x48] sm:$0xff]  ;;  %v59_v37 = vld [vmem:[%s3956_s0 + $0x130] sm:$0xff]  ;;  %v60_v39 = vld [vmem:[%s3956_s0 + $0x138] sm:$0xff] }
  0x13   :  { %1812 = vmatpush.msrb.mxu2 %v84_v1  ;;  %1811 = vmatpush.msra.mxu3 %v69_v14  ;;  %v31_v38 = vld [vmem:[%s3956_s0 + $0x50] sm:$0xff]  ;;  %v32_v40 = vld [vmem:[%s3956_s0 + $0x58] sm:$0xff]  ;;  %v61_v41 = vld [vmem:[%s3956_s0 + $0x140] sm:$0xff] }
  0x14   :  { %1682 = vmatmul.msk.f32.vlgmr.msra.gmra.mxu3 %vm91_vm0, %v51_v20  ;;  %v33_v42 = vld [vmem:[%s3956_s0 + $0x60] sm:$0xff]  ;;  %v62_v43 = vld [vmem:[%s3956_s0 + $0x148] sm:$0xff]  ;;  %v63_v45 = vld [vmem:[%s3956_s0 + $0x150] sm:$0xff] }
  0x15   :  { %1813 = vmatpush.msrb.mxu2 %v82_v3  ;;  %v34_v44 = vld [vmem:[%s3956_s0 + $0x68] sm:$0xff]  ;;  %v35_v46 = vld [vmem:[%s3956_s0 + $0x70] sm:$0xff]  ;;  %v64_v47 = vld [vmem:[%s3956_s0 + $0x158] sm:$0xff] }
  0x16   :  { %v36_v48 = vld [vmem:[%s3956_s0 + $0x78] sm:$0xff]  ;;  %v65_v49 = vld [vmem:[%s3956_s0 + $0x160] sm:$0xff]  ;;  %v66_v53 = vld [vmem:[%s3956_s0 + $0x168] sm:$0xff] }
  0x17   :  { %1814 = vmatpush.msrb.mxu2 %v80_v5  ;;  %v37_v51 = vld [vmem:[%s3956_s0 + $0x80] sm:$0xff]  ;;  %v38_v56 = vld [vmem:[%s3956_s0 + $0x88] sm:$0xff]  ;;  %v67_v58 = vld [vmem:[%s3956_s0 + $0x170] sm:$0xff] }
  0x18   :  { %v39_v61 = vld [vmem:[%s3956_s0 + $0x90] sm:$0xff]  ;;  %v85_v63 = vld [vmem:[%s3958_s2] sm:$0x3]  ;;  %v2419_v0 = vld [vmem:[%s3956_s0 + $0x178] sm:$0xff] }
  0x19   :  { %1815 = vmatpush.msrb.mxu2 %v78_v7  ;;  %1653 = vmatmul.msk.f32.gmra.mxu0 %vm91_vm0, %v22_v18  ;;  %v2423_v1 = vperm.slane %v85_v63, 1  ;;  %v40_v4 = vld [vmem:[%s3956_s0 + $0x98] sm:$0xff] }
  0x1a   :  { %1681 = vmatmul.msk.f32.gmra.mxu2 %vm91_vm0, %v50_v19  ;;  %1701 = vmatmul.msk.f32.gmra.mxu1 %vm91_vm0, %v22_v18 }
  0x1b   :  { %1816 = vmatpush.msrb.mxu2 %v76_v9 }
  0x1c   :  { %1683 = vmatmul.msk.f32.gmra.mxu3 %vm91_vm0, %v52_v23 }
  0x1d   :  { %1817 = vmatpush.msrb.mxu2 %v74_v11  ;;  %v41_v11 = vld [vmem:[%s3956_s0 + $0xa0] sm:$0xff] }
  0x1f   :  { %1818 = vmatpush.msrb.mxu2 %v72_v13  ;;  %v2442_v13 = vperm.slane %v85_v63, 0 }
  0x21   :  { %1819 = vmatpush.msrb.mxu2 %v70_v15  ;;  %1654 = vmatmul.msk.f32.gmra.mxu0 %vm91_vm0, %v23_v21 }
  0x22   :  { %1702 = vmatmul.msk.f32.gmra.mxu1 %vm91_vm0, %v23_v21  ;;  %1727 = vmatmul.msk.f32.vlgmr.msrb.gmra.mxu2 %vm91_vm0, %v2245_v22 }
  0x24   :  { %1684 = vmatmul.msk.f32.gmra.mxu3 %vm91_vm0, %v53_v25 }
  0x29   :  { %1655 = vmatmul.msk.f32.gmra.mxu0 %vm91_vm0, %v24_v24 }
  0x2a   :  { %1703 = vmatmul.msk.f32.gmra.mxu1 %vm91_vm0, %v24_v24  ;;  %1728 = vmatmul.msk.f32.gmra.mxu2 %vm91_vm0, %v49_v17 }
  0x2c   :  { %1685 = vmatmul.msk.f32.gmra.mxu3 %vm91_vm0, %v54_v27 }
  0x31   :  { %1656 = vmatmul.msk.f32.gmra.mxu0 %vm91_vm0, %v25_v26 }
  0x32   :  { %1704 = vmatmul.msk.f32.gmra.mxu1 %vm91_vm0, %v25_v26  ;;  %1729 = vmatmul.msk.f32.gmra.mxu2 %vm91_vm0, %v50_v19 }
  0x34   :  { %1686 = vmatmul.msk.f32.gmra.mxu3 %vm91_vm0, %v55_v29 }
  0x39   :  { %1657 = vmatmul.msk.f32.gmra.mxu0 %vm91_vm0, %v26_v28 }
  0x3a   :  { %1705 = vmatmul.msk.f32.gmra.mxu1 %vm91_vm0, %v26_v28  ;;  %1730 = vmatmul.msk.f32.gmra.mxu2 %vm91_vm0, %v51_v20 }
  0x3c   :  { %1687 = vmatmul.msk.f32.gmra.mxu3 %vm91_vm0, %v56_v31 }
  0x41   :  { %1658 = vmatmul.msk.f32.gmra.mxu0 %vm91_vm0, %v27_v30 }
  0x42   :  { %1706 = vmatmul.msk.f32.gmra.mxu1 %vm91_vm0, %v27_v30  ;;  %1731 = vmatmul.msk.f32.gmra.mxu2 %vm91_vm0, %v52_v23 }
  0x44   :  { %1688 = vmatmul.msk.f32.gmra.mxu3 %vm91_vm0, %v57_v33 }
  0x49   :  { %1659 = vmatmul.msk.f32.gmra.mxu0 %vm91_vm0, %v28_v32 }
  0x4a   :  { %1707 = vmatmul.msk.f32.gmra.mxu1 %vm91_vm0, %v28_v32  ;;  %1732 = vmatmul.msk.f32.gmra.mxu2 %vm91_vm0, %v53_v25  ;;  %v42_v25 = vld [vmem:[%s3956_s0 + $0xa8] sm:$0xff] }
  0x4c   :  { %1689 = vmatmul.msk.f32.gmra.mxu3 %vm91_vm0, %v58_v35 }
  0x51   :  { %1660 = vmatmul.msk.f32.gmra.mxu0 %vm91_vm0, %v29_v34 }
  0x52   :  { %1708 = vmatmul.msk.f32.gmra.mxu1 %vm91_vm0, %v29_v34  ;;  %1733 = vmatmul.msk.f32.gmra.mxu2 %vm91_vm0, %v54_v27 }
  0x54   :  { %1690 = vmatmul.msk.f32.gmra.mxu3 %vm91_vm0, %v59_v37 }
  0x59   :  { %1661 = vmatmul.msk.f32.gmra.mxu0 %vm91_vm0, %v30_v36 }
  0x5a   :  { %1709 = vmatmul.msk.f32.gmra.mxu1 %vm91_vm0, %v30_v36  ;;  %1734 = vmatmul.msk.f32.gmra.mxu2 %vm91_vm0, %v55_v29 }
  0x5c   :  { %1691 = vmatmul.msk.f32.gmra.mxu3 %vm91_vm0, %v60_v39 }
  0x61   :  { %1662 = vmatmul.msk.f32.gmra.mxu0 %vm91_vm0, %v31_v38 }
  0x62   :  { %1710 = vmatmul.msk.f32.gmra.mxu1 %vm91_vm0, %v31_v38  ;;  %1735 = vmatmul.msk.f32.gmra.mxu2 %vm91_vm0, %v56_v31 }
  0x64   :  { %1692 = vmatmul.msk.f32.gmra.mxu3 %vm91_vm0, %v61_v41 }
  0x69   :  { %1663 = vmatmul.msk.f32.gmra.mxu0 %vm91_vm0, %v32_v40 }
  0x6a   :  { %1711 = vmatmul.msk.f32.gmra.mxu1 %vm91_vm0, %v32_v40  ;;  %1736 = vmatmul.msk.f32.gmra.mxu2 %vm91_vm0, %v57_v33 }
  0x6c   :  { %1693 = vmatmul.msk.f32.gmra.mxu3 %vm91_vm0, %v62_v43 }
  0x71   :  { %1664 = vmatmul.msk.f32.gmra.mxu0 %vm91_vm0, %v33_v42 }
  0x72   :  { %1712 = vmatmul.msk.f32.gmra.mxu1 %vm91_vm0, %v33_v42  ;;  %1737 = vmatmul.msk.f32.gmra.mxu2 %vm91_vm0, %v58_v35 }
  0x74   :  { %1694 = vmatmul.msk.f32.gmra.mxu3 %vm91_vm0, %v63_v45 }
  0x79   :  { %1665 = vmatmul.msk.f32.gmra.mxu0 %vm91_vm0, %v34_v44 }
  0x7a   :  { %1713 = vmatmul.msk.f32.gmra.mxu1 %vm91_vm0, %v34_v44  ;;  %1738 = vmatmul.msk.f32.gmra.mxu2 %vm91_vm0, %v59_v37 }
  0x7c   :  { %1695 = vmatmul.msk.f32.gmra.mxu3 %vm91_vm0, %v64_v47 }
  0x81   :  { %1666 = vmatmul.msk.f32.gmra.mxu0 %vm91_vm0, %v35_v46 }
  0x82   :  { %1714 = vmatmul.msk.f32.gmra.mxu1 %vm91_vm0, %v35_v46  ;;  %1739 = vmatmul.msk.f32.gmra.mxu2 %vm91_vm0, %v60_v39 }
  0x84   :  { %1696 = vmatmul.msk.f32.gmra.mxu3 %vm91_vm0, %v65_v49 }
  0x89   :  { %1667 = vmatmul.msk.f32.gmra.mxu0 %vm91_vm0, %v36_v48 }
  0x8a   :  { %1715 = vmatmul.msk.f32.gmra.mxu1 %vm91_vm0, %v36_v48  ;;  %1740 = vmatmul.msk.f32.gmra.mxu2 %vm91_vm0, %v61_v41 }
  0x8c   :  { %1697 = vmatmul.msk.f32.gmra.mxu3 %vm91_vm0, %v66_v53 }
  0x8e   :  { %v253_v50 = vpop.f32.mrf.mxu0 }
  0x8f   :  { %v414_v52 = vpop.f32.mrf.mxu1  ;;  %v254_v19 = vadd.f32 %v253_v50, %v2442_v13 }
  0x90   :  { %v415_v6 = vadd.f32 %v414_v52, %v2423_v1 }
  0x91   :  { %1668 = vmatmul.msk.f32.gmra.mxu0 %vm91_vm0, %v37_v51 }
  0x92   :  { %1716 = vmatmul.msk.f32.gmra.mxu1 %vm91_vm0, %v37_v51  ;;  %1741 = vmatmul.msk.f32.gmra.mxu2 %vm91_vm0, %v62_v43  ;;  %v1748_v7 = vmul.f32 -1.442695, %v415_v6 }
  0x94   :  { %1698 = vmatmul.msk.f32.gmra.mxu3 %vm91_vm0, %v67_v58  ;;  %1823 = vpow2.f32 %v1748_v7 }
  0x95   :  { %v337_v54 = vpop.f32.mrf.mxu2 }
  0x96   :  { %v256_v55 = vpop.f32.mrf.mxu0  ;;  %v338_v20 = vadd.f32 %v337_v54, %v2442_v13 }
  0x97   :  { %v417_v57 = vpop.f32.mrf.mxu1  ;;  %v2448_v17 = vpop.f32.mrf.mxu3  ;;  %v257_v23 = vadd.f32 %v256_v55, %v2442_v13 }
  0x98   :  { %v418_v8 = vadd.f32 %v417_v57, %v2423_v1 }
  0x99   :  { %1669 = vmatmul.msk.f32.gmra.mxu0 %vm91_vm0, %v38_v56 }
  0x9a   :  { %1717 = vmatmul.msk.f32.gmra.mxu1 %vm91_vm0, %v38_v56  ;;  %1742 = vmatmul.msk.f32.gmra.mxu2 %vm91_vm0, %v63_v45  ;;  %v1749_v15 = vmul.f32 -1.442695, %v418_v8  ;;  %v1824_v26 = vpop.eup %1823  ;;  %v43_v45 = vld [vmem:[%s3956_s0 + $0xb0] sm:$0xff] }
  0x9b   :  { %v2464_v32 = vadd.f32 1.0, %v1824_v26 }
  0x9c   :  { %1699 = vmatmul.msk.f32.gmra.mxu3 %vm91_vm0, %v2419_v0 }
  0x9d   :  { %v340_v59 = vpop.f32.mrf.mxu2 }
  0x9e   :  { %v2405_v60 = vpop.f32.mrf.mxu0  ;;  %v341_v36 = vadd.f32 %v340_v59, %v2442_v13 }
  0x9f   :  { %v420_v62 = vpop.f32.mrf.mxu1  ;;  %v2468_v34 = vpop.f32.mrf.mxu3  ;;  %v260_v39 = vadd.f32 %v2405_v60, %v2442_v13 }
  0xa0   :  { %v421_v18 = vadd.f32 %v420_v62, %v2423_v1 }
  0xa1   :  { %1670 = vmatmul.msk.f32.gmra.mxu0 %vm91_vm0, %v39_v61 }
  0xa2   :  { %1718 = vmatmul.msk.f32.gmra.mxu1 %vm91_vm0, %v39_v61  ;;  %1743 = vmatmul.msk.f32.gmra.mxu2 %vm91_vm0, %v64_v47  ;;  %v1750_v27 = vmul.f32 -1.442695, %v421_v18 }
  0xa5   :  { %v495_v2 = vpop.f32.mrf.mxu2 }
  0xa6   :  { %v2425_v3 = vpop.f32.mrf.mxu0  ;;  %v496_v29 = vadd.f32 %v495_v2, %v2423_v1 }
  0xa7   :  { %v423_v5 = vpop.f32.mrf.mxu1  ;;  %v263_v47 = vadd.f32 %v2425_v3, %v2442_v13  ;;  %v2501_v55 = vpop.f32.mrf.mxu3 }
  0xa8   :  { %v1775_v38 = vmul.f32 -1.442695, %v496_v29  ;;  %v424_v43 = vadd.f32 %v423_v5, %v2423_v1  ;;  %v44_v5 = vld [vmem:[%s3956_s0 + $0xb8] sm:$0xff] }
  0xa9   :  { %1671 = vmatmul.msk.f32.gmra.mxu0 %vm91_vm0, %v40_v4 }
  0xaa   :  { %1719 = vmatmul.msk.f32.gmra.mxu1 %vm91_vm0, %v40_v4  ;;  %1744 = vmatmul.msk.f32.gmra.mxu2 %vm91_vm0, %v65_v49 }
  0xad   :  { %v2435_v9 = vpop.f32.mrf.mxu2 }
  0xae   :  { %v2437_v10 = vpop.f32.mrf.mxu0  ;;  %v499_v57 = vadd.f32 %v2435_v9, %v2423_v1 }
  0xaf   :  { %v426_v12 = vpop.f32.mrf.mxu1  ;;  %v2544_v26 = vpop.f32.mrf.mxu3 }
  0xb0   :  { %v427_v14 = vadd.f32 %v426_v12, %v2423_v1  ;;  %v1776_v8 = vmul.f32 -1.442695, %v499_v57 }
  0xb1   :  { %1672 = vmatmul.msk.f32.gmra.mxu0 %vm91_vm0, %v41_v11 }
  0xb2   :  { %v1752_v16 = vmul.f32 -1.442695, %v427_v14  ;;  %1720 = vmatmul.msk.f32.gmra.mxu1 %vm91_vm0, %v41_v11  ;;  %1745 = vmatmul.msk.f32.gmra.mxu2 %vm91_vm0, %v66_v53  ;;  %v1751_v53 = vmul.f32 -1.442695, %v424_v43 }
  0xb4   :  { %1825 = vpow2.f32 %v1752_v16 }
  0xb5   :  { %1827 = vpow2.f32 %v1749_v15  ;;  %v2453_v21 = vpop.f32.mrf.mxu2 }
  0xb6   :  { %v2456_v24 = vpop.f32.mrf.mxu0  ;;  %1829 = vtanh.f32 %v254_v19  ;;  %v502_v19 = vadd.f32 %v2453_v21, %v2423_v1 }
  0xb7   :  { %v429_v28 = vpop.f32.mrf.mxu1  ;;  %1831 = vtanh.f32 %v338_v20  ;;  %v269_v21 = vadd.f32 %v2456_v24, %v2442_v13 }
  0xb8   :  { %v430_v30 = vadd.f32 %v429_v28, %v2423_v1  ;;  %1833 = vtanh.f32 %v257_v23  ;;  %v1777_v24 = vmul.f32 -1.442695, %v502_v19 }
  0xb9   :  { %1673 = vmatmul.msk.f32.gmra.mxu0 %vm91_vm0, %v42_v25  ;;  %1835 = vpow2.f32 %v1750_v27 }
  0xba   :  { %v1826_v31 = vpop.eup %1825  ;;  %v1753_v33 = vmul.f32 -1.442695, %v430_v30  ;;  %1721 = vmatmul.msk.f32.gmra.mxu1 %vm91_vm0, %v42_v25  ;;  %1746 = vmatmul.msk.f32.gmra.mxu2 %vm91_vm0, %v67_v58  ;;  %v266_v58 = vadd.f32 %v2437_v10, %v2442_v13 }
  0xbb   :  { %v1828_v35 = vpop.eup %1827  ;;  %v2471_v37 = vadd.f32 1.0, %v1826_v31 }
  0xbc   :  { %1837 = vpow2.f32 %v1753_v33  ;;  %v2478_v41 = vpop.eup %1829  ;;  %v2481_v42 = vadd.f32 1.0, %v1828_v35 }
  0xbd   :  { %1839 = vrcp.f32 %v2471_v37  ;;  %v2476_v40 = vpop.f32.mrf.mxu2  ;;  %4010 = vst [vmem:[#allocation5_spill] sm:$0xff] %v2478_v41  ;;  %v2489_v46 = vpop.eup %1831  ;;  %v869_v10 = vand.u32 2147483648, %v2471_v37  ;;  %v867_v20 = vand.u32 2147483647, %v2471_v37  ;;  %vm863_vm2 = vweird.f32 %v2471_v37 }
  0xbe   :  { %1841 = vrcp.f32 %v2464_v32  ;;  %v2484_v44 = vpop.f32.mrf.mxu0  ;;  %v2493_v49 = vpop.eup %1833 }
  0xbf   :  { %1843 = vtanh.f32 %v341_v36  ;;  %v432_v48 = vpop.f32.mrf.mxu1  ;;  %4011 = vst [vmem:[#allocation6_spill] sm:$0xff] %v2493_v49  ;;  %v1836_v51 = vpop.eup %1835  ;;  %v870_v36 = vor.u32 1.1754944e-38, %v869_v10  ;;  %vm868_vm4 = vcmp.eq.f32.partialorder %v867_v20, 8.507059e+37 }
  0xc0   :  { %1845 = vpow2.f32 %v1775_v38  ;;  %v433_v50 = vadd.f32 %v432_v48, %v2423_v1  ;;  %v2517_v63 = vadd.f32 1.0, %v1836_v51 }
  0xc1   :  { %1847 = vtanh.f32 %v260_v39  ;;  %1674 = vmatmul.msk.f32.gmra.mxu0 %vm91_vm0, %v43_v45  ;;  %v505_v39 = vadd.f32 %v2476_v40, %v2423_v1 }
  0xc2   :  { %v1838_v52 = vpop.eup %1837  ;;  %1849 = vrcp.f32 %v2481_v42  ;;  %v1754_v54 = vmul.f32 -1.442695, %v433_v50  ;;  %1722 = vmatmul.msk.f32.gmra.mxu1 %vm91_vm0, %v43_v45  ;;  %1747 = vmatmul.msk.f32.gmra.mxu2 %vm91_vm0, %v2419_v0  ;;  %v45_v45 = vld [vmem:[%s3956_s0 + $0xc0] sm:$0xff] }
  0xc3   :  { %v2503_v56 = vpop.eup %1839  ;;  %1851 = vtanh.f32 %v263_v47  ;;  %v2509_v59 = vadd.f32 1.0, %v1838_v52 }
  0xc4   :  { %v2511_v60 = vpop.eup %1841  ;;  %1853 = vpow2.f32 %v1754_v54  ;;  %v859_v61 = vmul.f32 %v2503_v56, %v2471_v37  ;;  %vm864_vm1 = vweird.f32 %v2503_v56 }
  0xc5   :  { %v2515_v62 = vpop.eup %1843  ;;  %1855 = vrcp.f32 %v2509_v59  ;;  %v507_v0 = vpop.f32.mrf.mxu2  ;;  %vm2556_vm3 = vmor %vm863_vm2, %vm864_vm1  ;;  %v884_v40 = vand.u32 2147483648, %v2509_v59  ;;  %vm878_vm6 = vweird.f32 %v2509_v59 }
  0xc6   :  { %v1846_v2 = vpop.eup %1845  ;;  %1857 = vpow2.f32 %v1751_v53  ;;  %v508_v3 = vadd.f32 %v507_v0, %v2423_v1  ;;  %v2521_v4 = vpop.f32.mrf.mxu0  ;;  %v860_v6 = vsub.f32 1.0, %v859_v61  ;;  %v882_v61 = vand.u32 2147483647, %v2509_v59 }
  0xc7   :  { %v2526_v7 = vpop.eup %1847  ;;  %1859 = vtanh.f32 %v266_v58  ;;  %v435_v9 = vpop.f32.mrf.mxu1  ;;  %v2537_v18 = vadd.f32 1.0, %v1846_v2  ;;  %v1778_v2 = vmul.f32 -1.442695, %v505_v39  ;;  %v885_v20 = vor.u32 1.1754944e-38, %v884_v40 }
  0xc8   :  { %4012 = vst [vmem:[#allocation7_spill] sm:$0xff] %v2526_v7  ;;  %v2529_v11 = vpop.eup %1849  ;;  %v1779_v12 = vmul.f32 -1.442695, %v508_v3  ;;  %v436_v14 = vadd.f32 %v435_v9, %v2423_v1  ;;  %v861_v15 = vmul.f32 %v2503_v56, %v860_v6  ;;  %1861 = vrcp.f32 %v2517_v63 }
  0xc9   :  { %v2534_v16 = vpop.eup %1851  ;;  %1675 = vmatmul.msk.f32.gmra.mxu0 %vm91_vm0, %v44_v5  ;;  %vm883_vm8 = vcmp.eq.f32.partialorder %v882_v61, 8.507059e+37  ;;  %v275_v40 = vadd.f32 %v2521_v4, %v2442_v13 }
  0xca   :  { %4013 = vst [vmem:[#allocation8_spill] sm:$0xff] %v2534_v16  ;;  %v1854_v23 = vpop.eup %1853  ;;  %1863 = vpow2.f32 %v1779_v12  ;;  %v1755_v25 = vmul.f32 -1.442695, %v436_v14  ;;  %1723 = vmatmul.msk.f32.gmra.mxu1 %vm91_vm0, %v44_v5  ;;  %v862_v27 = vadd.f32 %v2503_v56, %v861_v15  ;;  %v2589_v5 = vpop.f32.mrf.mxu3  ;;  %v344_v12 = vadd.f32 %v2448_v17, %v2442_v13 }
  0xcb   :  { %v2548_v28 = vpop.eup %1855  ;;  %1865 = vpow2.f32 %v1776_v8  ;;  %v2552_v29 = vadd.f32 1.0, %v1854_v23  ;;  %v272_v17 = vadd.f32 %v2484_v44, %v2442_v13 }
  0xcc   :  { %v1858_v31 = vpop.eup %1857  ;;  %1867 = vpow2.f32 %v1755_v25  ;;  %v874_v33 = vmul.f32 %v2548_v28, %v2509_v59  ;;  %v866_v35 = vsel %vm2556_vm3, %v2503_v56, %v862_v27  ;;  %vm879_vm5 = vweird.f32 %v2548_v28 }
  0xcd   :  { %v1860_v37 = vpop.eup %1859  ;;  %1869 = vrcp.f32 %v2552_v29  ;;  %v2566_v38 = vpop.f32.mrf.mxu2  ;;  %v871_v48 = vsel %vm868_vm4, %v870_v36, %v866_v35  ;;  %v2595_v9 = vadd.f32 1.0, %v1858_v31  ;;  %vm2604_vm7 = vmor %vm878_vm6, %vm879_vm5  ;;  %v897_v39 = vand.u32 2147483647, %v2552_v29 }
  0xce   :  { %1871 = vrcp.f32 %v2537_v18  ;;  %v2571_v43 = vpop.f32.mrf.mxu0  ;;  %v875_v47 = vsub.f32 1.0, %v874_v33  ;;  %v2576_v50 = vpop.eup %1861  ;;  %v2578_v52 = vmul.f32 %v1860_v37, %v871_v48  ;;  %vm893_vm10 = vweird.f32 %v2552_v29 }
  0xcf   :  { %1873 = vtanh.f32 %v269_v21  ;;  %v438_v51 = vpop.f32.mrf.mxu1  ;;  %4017 = vst [vmem:[#allocation10_spill] sm:$0xff] %v2595_v9  ;;  %v46_v21 = vld [vmem:[%s3956_s0 + $0xc8] sm:$0xff]  ;;  %vm898_vm12 = vcmp.eq.f32.partialorder %v897_v39, 8.507059e+37 }
  0xd0   :  { %4016 = vst [vmem:[#allocation9_spill] sm:$0xff] %v2578_v52  ;;  %v1864_v53 = vpop.eup %1863  ;;  %v439_v54 = vadd.f32 %v438_v51, %v2423_v1  ;;  %v876_v56 = vmul.f32 %v2548_v28, %v875_v47  ;;  %1875 = vpow2.f32 %v1777_v24 }
  0xd1   :  { %v1866_v57 = vpop.eup %1865  ;;  %v2584_v58 = vadd.f32 1.0, %v1864_v53  ;;  %1676 = vmatmul.msk.f32.gmra.mxu0 %vm91_vm0, %v45_v45 }
  0xd2   :  { %v1868_v0 = vpop.eup %1867  ;;  %v1756_v3 = vmul.f32 -1.442695, %v439_v54  ;;  %1724 = vmatmul.msk.f32.gmra.mxu1 %vm91_vm0, %v45_v45  ;;  %v877_v6 = vadd.f32 %v2548_v28, %v876_v56  ;;  %v2626_v33 = vadd.f32 1.0, %v1866_v57  ;;  %v899_v45 = vand.u32 2147483648, %v2552_v29  ;;  %v2640_v53 = vpop.f32.mrf.mxu3 }
  0xd3   :  { %v2593_v8 = vpop.eup %1869  ;;  %1877 = vrcp.f32 %v2584_v58  ;;  %v2598_v10 = vadd.f32 1.0, %v1868_v0  ;;  %vm1268_vm2 = vweird.f32 %v2584_v58 }
  0xd4   :  { %v2608_v15 = vpop.eup %1871  ;;  %1879 = vpow2.f32 %v1756_v3  ;;  %v889_v59 = vmul.f32 %v2593_v8, %v2552_v29  ;;  %v881_v19 = vsel %vm2604_vm7, %v2548_v28, %v877_v6  ;;  %vm894_vm9 = vweird.f32 %v2593_v8  ;;  %v47_v29 = vld [vmem:[%s3956_s0 + $0xd0] sm:$0xff] }
  0xd5   :  { %v1874_v23 = vpop.eup %1873  ;;  %1881 = vrcp.f32 %v2598_v10  ;;  %v2618_v25 = vpop.f32.mrf.mxu2  ;;  %v886_v31 = vsel %vm883_vm8, %v885_v20, %v881_v19  ;;  %v347_v6 = vadd.f32 %v2468_v34, %v2442_v13  ;;  %vm895_vm11 = vmor %vm893_vm10, %vm894_vm9  ;;  %v900_v4 = vor.u32 1.1754944e-38, %v899_v45 }
  0xd6   :  { %1883 = vpow2.f32 %v1778_v2  ;;  %v2620_v27 = vpop.f32.mrf.mxu0  ;;  %v890_v30 = vsub.f32 1.0, %v889_v59  ;;  %v1876_v28 = vpop.eup %1875  ;;  %v2628_v35 = vmul.f32 %v1874_v23, %v886_v31  ;;  %v511_v34 = vadd.f32 %v2566_v38, %v2423_v1 }
  0xd7   :  { %1885 = vrcp.f32 %v2595_v9  ;;  %v441_v44 = vpop.f32.mrf.mxu1  ;;  %v2653_v3 = vadd.f32 1.0, %v1876_v28  ;;  %vm908_vm14 = vweird.f32 %v2598_v10 }
  0xd8   :  { %4020 = vst [vmem:[#allocation11_spill] sm:$0xff] %v2628_v35  ;;  %1887 = vtanh.f32 %v344_v12  ;;  %v442_v36 = vadd.f32 %v441_v44, %v2423_v1  ;;  %v891_v37 = vmul.f32 %v2593_v8, %v890_v30  ;;  %v914_v44 = vand.u32 2147483648, %v2598_v10 }
  0xd9   :  { %v2632_v24 = vpop.eup %1877  ;;  %1889 = vtanh.f32 %v272_v17  ;;  %1677 = vmatmul.msk.f32.gmra.mxu0 %vm91_vm0, %v46_v21  ;;  %v1242_v16 = vand.u32 2147483647, %v2653_v3 }
  0xda   :  { %v1880_v47 = vpop.eup %1879  ;;  %v1264_v48 = vmul.f32 %v2632_v24, %v2584_v58  ;;  %v1757_v51 = vmul.f32 -1.442695, %v442_v36  ;;  %1725 = vmatmul.msk.f32.gmra.mxu1 %vm91_vm0, %v46_v21  ;;  %v892_v54 = vadd.f32 %v2593_v8, %v891_v37  ;;  %1891 = vrcp.f32 %v2626_v33  ;;  %v2681_v38 = vpop.f32.mrf.mxu3 }
  0xdb   :  { %v1882_v56 = vpop.eup %1881  ;;  %v2647_v57 = vadd.f32 1.0, %v1880_v47  ;;  %vm1269_vm3 = vweird.f32 %v2632_v24 }
  0xdc   :  { %v1884_v61 = vpop.eup %1883  ;;  %1893 = vpow2.f32 %v1757_v51  ;;  %v904_v0 = vmul.f32 %v1882_v56, %v2598_v10  ;;  %v1265_v59 = vsub.f32 1.0, %v1264_v48  ;;  %v896_v23 = vsel %vm895_vm11, %v2593_v8, %v892_v54  ;;  %vm2726_vm5 = vmor %vm1268_vm2, %vm1269_vm3 }
  0xdd   :  { %v2651_v2 = vpop.eup %1885  ;;  %1895 = vrcp.f32 %v2647_v57  ;;  %v2658_v12 = vpop.f32.mrf.mxu2  ;;  %v2668_v21 = vadd.f32 1.0, %v1884_v61  ;;  %v901_v31 = vsel %vm898_vm12, %v900_v4, %v896_v23  ;;  %vm909_vm13 = vweird.f32 %v1882_v56 }
  0xde   :  { %v2660_v14 = vpop.eup %1887  ;;  %v2662_v19 = vpop.f32.mrf.mxu0  ;;  %v905_v20 = vsub.f32 1.0, %v904_v0  ;;  %1897 = vtanh.f32 %v275_v40  ;;  %v912_v8 = vand.u32 2147483647, %v2598_v10  ;;  %v1266_v47 = vmul.f32 %v2632_v24, %v1265_v59  ;;  %vm910_vm15 = vmor %vm908_vm14, %vm909_vm13 }
  0xdf   :  { %v1890_v17 = vpop.eup %1889  ;;  %v444_v30 = vpop.f32.mrf.mxu1  ;;  %1899 = vtanh.f32 %v347_v6  ;;  %v278_v51 = vadd.f32 %v2571_v43, %v2442_v13  ;;  %v1780_v40 = vmul.f32 -1.442695, %v511_v34  ;;  %v915_v6 = vor.u32 1.1754944e-38, %v914_v44 }
  0xe0   :  { %v906_v28 = vmul.f32 %v1882_v56, %v905_v20  ;;  %v2673_v36 = vmul.f32 %v1890_v17, %v901_v31  ;;  %v2675_v37 = vpop.eup %1891  ;;  %1901 = vrcp.f32 %v2653_v3  ;;  %v514_v4 = vadd.f32 %v2618_v25, %v2423_v1 }
  0xe1   :  { %1678 = vmatmul.msk.f32.gmra.mxu0 %vm91_vm0, %v47_v29  ;;  %1903 = vrcp.f32 %v2668_v21  ;;  %vm913_vm1 = vcmp.eq.f32.partialorder %v912_v8, 8.507059e+37  ;;  %v1267_v23 = vadd.f32 %v2632_v24, %v1266_v47  ;;  %v350_v25 = vadd.f32 %v2501_v55, %v2442_v13 }
  0xe2   :  { %4021 = vst [vmem:[#allocation12_spill] sm:$0xff] %v2673_v36  ;;  %v1894_v39 = vpop.eup %1893  ;;  %1726 = vmatmul.msk.f32.gmra.mxu1 %vm91_vm0, %v47_v29  ;;  %v907_v45 = vadd.f32 %v1882_v56, %v906_v28  ;;  %v1274_v31 = vand.u32 2147483648, %v2584_v58  ;;  %v929_v8 = vand.u32 2147483648, %v2647_v57  ;;  %v445_v55 = vadd.f32 %v444_v30, %v2423_v1 }
  0xe3   :  { %v2685_v48 = vpop.eup %1895  ;;  %v2690_v54 = vadd.f32 1.0, %v1894_v39  ;;  %v1272_v39 = vand.u32 2147483647, %v2584_v58  ;;  %v927_v47 = vand.u32 2147483647, %v2647_v57  ;;  %vm923_vm6 = vweird.f32 %v2647_v57 }
  0xe4   :  { %v919_v61 = vmul.f32 %v2685_v48, %v2647_v57  ;;  %v911_v0 = vsel %vm910_vm15, %v1882_v56, %v907_v45  ;;  %v1898_v10 = vpop.eup %1897  ;;  %vm924_vm4 = vweird.f32 %v2685_v48  ;;  %v517_v58 = vadd.f32 %v2658_v12, %v2423_v1 }
  0xe5   :  { %1905 = vrcp.f32 %v2690_v54  ;;  %v2698_v59 = vpop.f32.mrf.mxu2  ;;  %v916_v20 = vsel %vm913_vm1, %v915_v6, %v911_v0  ;;  %v1900_v56 = vpop.eup %1899  ;;  %v281_v6 = vadd.f32 %v2620_v27, %v2442_v13  ;;  %vm1273_vm7 = vcmp.eq.f32.partialorder %v1272_v39, 8.507059e+37 }
  0xe6   :  { %v2701_v43 = vpop.f32.mrf.mxu0  ;;  %v920_v29 = vsub.f32 1.0, %v919_v61  ;;  %1907 = vtanh.f32 %v278_v51  ;;  %v2707_v34 = vmul.f32 %v1898_v10, %v916_v20  ;;  %v2710_v28 = vpop.eup %1901  ;;  %v1781_v61 = vmul.f32 -1.442695, %v514_v4 }
  0xe7   :  { %v447_v17 = vpop.f32.mrf.mxu1  ;;  %v2716_v45 = vpop.eup %1903  ;;  %1909 = vpow2.f32 %v1780_v40  ;;  %v1275_v4 = vor.u32 1.1754944e-38, %v1274_v31  ;;  %v1758_v20 = vmul.f32 -1.442695, %v445_v55  ;;  %vm928_vm8 = vcmp.eq.f32.partialorder %v927_v47, 8.507059e+37 }
  0xe8   :  { %4022 = vst [vmem:[#allocation13_spill] sm:$0xff] %v2707_v34  ;;  %v921_v44 = vmul.f32 %v2685_v48, %v920_v29  ;;  %v2730_v0 = vpop.f32.mrf.mxu3  ;;  %1911 = vtanh.f32 %v350_v25  ;;  %v930_v29 = vor.u32 1.1754944e-38, %v929_v8  ;;  %v1249_v12 = vmul.f32 %v2716_v45, %v2668_v21 }
  0xe9   :  { %1679 = vmatmul.msk.f32.gmra.mxu0 %vm91_vm0, %v2245_v22  ;;  %v1271_v22 = vsel %vm2726_vm5, %v2632_v24, %v1267_v23  ;;  %vm2743_vm0 = vmor %vm923_vm6, %vm924_vm4  ;;  %1913 = vpow2.f32 %v1781_v61  ;;  %v448_v31 = vadd.f32 %v447_v17, %v2423_v1  ;;  %v353_v8 = vadd.f32 %v2544_v26, %v2442_v13 }
  0xea   :  { %v922_v40 = vadd.f32 %v2685_v48, %v921_v44  ;;  %v1276_v25 = vsel %vm1273_vm7, %v1275_v4, %v1271_v22  ;;  %1915 = vtanh.f32 %v281_v6  ;;  %v944_v47 = vand.u32 2147483648, %v2690_v54 }
  0xeb   :  { %v1906_v30 = vpop.eup %1905  ;;  %v2763_v61 = vmul.f32 %v1900_v56, %v1276_v25  ;;  %1917 = vpow2.f32 %v1758_v20  ;;  %v356_v22 = vadd.f32 %v2589_v5, %v2442_v13  ;;  %v942_v6 = vand.u32 2147483647, %v2690_v54 }
  0xec   :  { %v934_v57 = vmul.f32 %v1906_v30, %v2690_v54  ;;  %v926_v24 = vsel %vm2743_vm0, %v2685_v48, %v922_v40  ;;  %v1908_v27 = vpop.eup %1907  ;;  %v1782_v48 = vmul.f32 -1.442695, %v517_v58  ;;  %vm939_vm9 = vweird.f32 %v1906_v30 }
  0xed   :  { %v2753_v23 = vpop.f32.mrf.mxu2  ;;  %v931_v52 = vsel %vm928_vm8, %v930_v29, %v926_v24  ;;  %v1910_v10 = vpop.eup %1909  ;;  %4028 = vst [vmem:[#allocation15_spill] sm:$0xff] %v2763_v61  ;;  %v1250_v58 = vsub.f32 1.0, %v1249_v12  ;;  %v520_v26 = vadd.f32 %v2698_v59, %v2423_v1  ;;  %vm938_vm10 = vweird.f32 %v2690_v54 }
  0xee   :  { %v2756_v44 = vpop.f32.mrf.mxu0  ;;  %v935_v51 = vsub.f32 1.0, %v934_v57  ;;  %v2760_v40 = vmul.f32 %v1908_v27, %v931_v52  ;;  %v2765_v17 = vpop.eup %1911  ;;  %v1759_v52 = vmul.f32 -1.442695, %v448_v31  ;;  %v2775_v56 = vadd.f32 1.0, %v1910_v10  ;;  %vm2780_vm11 = vmor %vm938_vm10, %vm939_vm9 }
  0xef   :  { %v450_v39 = vpop.f32.mrf.mxu1  ;;  %4029 = vst [vmem:[#allocation16_spill] sm:$0xff] %v2765_v17  ;;  %1919 = vtanh.f32 %v353_v8  ;;  %v359_v24 = vadd.f32 %v2640_v53, %v2442_v13  ;;  %v1914_v29 = vpop.eup %1913  ;;  %v945_v12 = vor.u32 1.1754944e-38, %v944_v47  ;;  %v284_v20 = vadd.f32 %v2662_v19, %v2442_v13 }
  0xf0   :  { %4027 = vst [vmem:[#allocation14_spill] sm:$0xff] %v2760_v40  ;;  %v936_v55 = vmul.f32 %v1906_v30, %v935_v51  ;;  %v2772_v4 = vpop.f32.mrf.mxu3  ;;  %1921 = vpow2.f32 %v1782_v48  ;;  %v451_v59 = vadd.f32 %v450_v39, %v2423_v1  ;;  %v1916_v54 = vpop.eup %1915  ;;  %vm943_vm12 = vcmp.eq.f32.partialorder %v942_v6, 8.507059e+37 }
  0xf1   :  { %4030 = vst [vmem:[#allocation17_spill] sm:$0xff] %v2775_v56  ;;  %1923 = vtanh.f32 %v356_v22  ;;  %v1251_v53 = vmul.f32 %v2716_v45, %v1250_v58  ;;  %v1783_v31 = vmul.f32 -1.442695, %v520_v26  ;;  %v1918_v48 = vpop.eup %1917  ;;  %v799_v19 = vmul.f32 %v2511_v60, %v2464_v32 }
  0xf2   :  { %v937_v57 = vadd.f32 %v1906_v30, %v936_v55  ;;  %1925 = vpow2.f32 %v1759_v52  ;;  %v1760_v55 = vmul.f32 -1.442695, %v451_v59  ;;  %vm1253_vm13 = vweird.f32 %v2668_v21 }
  0xf3   :  { %1927 = vrcp.f32 %v2775_v56  ;;  %v362_v6 = vadd.f32 %v2681_v38, %v2442_v13  ;;  %v1252_v58 = vadd.f32 %v2716_v45, %v1251_v53  ;;  %vm1254_vm14 = vweird.f32 %v2716_v45 }
  0xf4   :  { %v941_v27 = vsel %vm2780_vm11, %v1906_v30, %v937_v57  ;;  %v2795_v30 = vadd.f32 1.0, %v1914_v29  ;;  %1929 = vtanh.f32 %v359_v24  ;;  %v523_v52 = vadd.f32 %v2753_v23, %v2423_v1  ;;  %vm2826_vm15 = vmor %vm1253_vm13, %vm1254_vm14 }
  0xf5   :  { %v2789_v25 = vpop.f32.mrf.mxu2  ;;  %v946_v10 = vsel %vm943_vm12, %v945_v12, %v941_v27  ;;  %v2803_v22 = vpop.eup %1919  ;;  %1931 = vtanh.f32 %v284_v20  ;;  %v1259_v24 = vand.u32 2147483648, %v2668_v21  ;;  %v2817_v59 = vadd.f32 1.0, %v1918_v48 }
  0xf6   :  { %v2792_v51 = vpop.f32.mrf.mxu0  ;;  %4033 = vst [vmem:[#allocation18_spill] sm:$0xff] %v2795_v30  ;;  %v2797_v39 = vmul.f32 %v1916_v54, %v946_v10  ;;  %v1922_v26 = vpop.eup %1921  ;;  %1933 = vpow2.f32 %v1783_v31  ;;  %v800_v38 = vsub.f32 1.0, %v799_v19  ;;  %v1257_v27 = vand.u32 2147483647, %v2668_v21 }
  0xf7   :  { %v453_v8 = vpop.f32.mrf.mxu1  ;;  %4035 = vst [vmem:[#allocation20_spill] sm:$0xff] %v2803_v22  ;;  %v2814_v29 = vpop.eup %1923  ;;  %1935 = vrcp.f32 %v2795_v30  ;;  %v287_v54 = vadd.f32 %v2701_v43, %v2442_v13  ;;  %v2832_v53 = vadd.f32 1.0, %v1922_v26  ;;  %v807_v10 = vand.u32 2147483647, %v2464_v32 }
  0xf8   :  { %4034 = vst [vmem:[#allocation19_spill] sm:$0xff] %v2797_v39  ;;  %v454_v47 = vadd.f32 %v453_v8, %v2423_v1  ;;  %v2811_v5 = vpop.f32.mrf.mxu3  ;;  %v1926_v12 = vpop.eup %1925  ;;  %1937 = vpow2.f32 %v1760_v55  ;;  %v1256_v43 = vsel %vm2826_vm15, %v2716_v45, %v1252_v58  ;;  %v1784_v21 = vmul.f32 -1.442695, %v523_v52 }
  0xf9   :  { %4036 = vst [vmem:[#allocation21_spill] sm:$0xff] %v2814_v29  ;;  %v2830_v20 = vpop.eup %1927  ;;  %1939 = vtanh.f32 %v362_v6  ;;  %v809_v19 = vand.u32 2147483648, %v2464_v32  ;;  %v1260_v55 = vor.u32 1.1754944e-38, %v1259_v24  ;;  %v2848_v6 = vadd.f32 1.0, %v1926_v12 }
  0xfa   :  { %v1761_v57 = vmul.f32 -1.442695, %v454_v47  ;;  %4039 = vst [vmem:[#allocation22_spill] sm:$0xff] %v2830_v20  ;;  %v2840_v48 = vpop.eup %1929  ;;  %v801_v17 = vmul.f32 %v2511_v60, %v800_v38  ;;  %vm1258_vm1 = vcmp.eq.f32.partialorder %v1257_v27, 8.507059e+37  ;;  %vm804_vm2 = vweird.f32 %v2511_v60 }
  0xfb   :  { %4040 = vst [vmem:[#allocation23_spill] sm:$0xff] %v2832_v53  ;;  %v2845_v47 = vpop.eup %1931  ;;  %v1261_v52 = vsel %vm1258_vm1, %v1260_v55, %v1256_v43  ;;  %v365_v24 = vadd.f32 %v2730_v0, %v2442_v13  ;;  %v814_v12 = vmul.f32 %v2529_v11, %v2481_v42  ;;  %v526_v23 = vadd.f32 %v2789_v25, %v2423_v1 }
  0xfc   :  { %4041 = vst [vmem:[#allocation24_spill] sm:$0xff] %v2840_v48  ;;  %1941 = vpow2.f32 %v1761_v57  ;;  %v1934_v45 = vpop.eup %1933  ;;  %v2861_v38 = vmul.f32 %v2660_v14, %v1261_v52  ;;  %v824_v14 = vand.u32 2147483648, %v2481_v42  ;;  %v802_v52 = vadd.f32 %v2511_v60, %v801_v17 }
  0xfd   :  { %v2834_v31 = vpop.f32.mrf.mxu2  ;;  %1943 = vrcp.f32 %v2817_v59  ;;  %v2853_v57 = vpop.eup %1935  ;;  %v2871_v0 = vadd.f32 1.0, %v1934_v45  ;;  %vm803_vm3 = vweird.f32 %v2464_v32  ;;  %vm2879_vm4 = vcmp.eq.f32.partialorder %v807_v10, 8.507059e+37 }
  0xfe   :  { %v2842_v8 = vpop.f32.mrf.mxu0  ;;  %1945 = vtanh.f32 %v287_v54  ;;  %4042 = vst [vmem:[#allocation25_spill] sm:$0xff] %v2853_v57  ;;  %v1938_v27 = vpop.eup %1937  ;;  %v290_v54 = vadd.f32 %v2756_v44, %v2442_v13  ;;  %v368_v44 = vadd.f32 %v2772_v4, %v2442_v13  ;;  %v815_v29 = vsub.f32 1.0, %v814_v12  ;;  %vm2898_vm5 = vmor %vm803_vm3, %vm804_vm2 }
  0xff   :  { %v456_v26 = vpop.f32.mrf.mxu1  ;;  %1947 = vrcp.f32 %v2832_v53  ;;  %4043 = vst [vmem:[#allocation26_spill] sm:$0xff] %v2861_v38  ;;  %v2885_v45 = vadd.f32 1.0, %v1938_v27  ;;  %v810_v17 = vor.u32 1.1754944e-38, %v809_v19  ;;  %v1234_v4 = vmul.f32 %v2710_v28, %v2653_v3 }
 0x100   :  { %v457_v58 = vadd.f32 %v456_v26, %v2423_v1  ;;  %1949 = vpow2.f32 %v1784_v21  ;;  %v2867_v55 = vpop.f32.mrf.mxu3  ;;  %v2869_v26 = vpop.eup %1939  ;;  %4045 = vst [vmem:[#allocation28_spill] sm:$0xff] %v2871_v0  ;;  %v1785_v32 = vmul.f32 -1.442695, %v526_v23  ;;  %v2960_v25 = vmul.f32 %v2651_v2, %v2595_v9 }
 0x101   :  { %4044 = vst [vmem:[#allocation27_spill] sm:$0xff] %v2869_v26  ;;  %1951 = vrcp.f32 %v2848_v6  ;;  %v2907_v26 = vor.u32 1.1754944e-38, %v824_v14  ;;  %v529_v14 = vadd.f32 %v2834_v31, %v2423_v1  ;;  %vm1238_vm6 = vweird.f32 %v2653_v3 }
 0x102   :  { %v1762_v43 = vmul.f32 -1.442695, %v457_v58  ;;  %v1942_v21 = vpop.eup %1941  ;;  %vm1239_vm0 = vweird.f32 %v2710_v28  ;;  %vm1243_vm8 = vcmp.eq.f32.partialorder %v1242_v16, 8.507059e+37  ;;  %vm1223_vm10 = vweird.f32 %v2626_v33 }
 0x103   :  { %v2883_v58 = vpop.eup %1943  ;;  %v2905_v19 = vadd.f32 1.0, %v1942_v21  ;;  %4051 = vst [vmem:[#allocation30_spill] sm:$0xff] %v2907_v26  ;;  %v2923_v21 = vmul.f32 %v2576_v50, %v2517_v63  ;;  %vm3013_vm7 = vmor %vm1238_vm6, %vm1239_vm0  ;;  %vm1224_vm11 = vweird.f32 %v2675_v37 }
 0x104   :  { %1953 = vpow2.f32 %v1762_v43  ;;  %v2889_v48 = vpop.eup %1945  ;;  %v949_v38 = vmul.f32 %v2883_v58, %v2817_v59  ;;  %vm3070_vm14 = vmor %vm1223_vm10, %vm1224_vm11  ;;  %vm968_vm10 = vweird.f32 %v2848_v6 }
 0x105   :  { %v2887_v22 = vpop.f32.mrf.mxu2  ;;  %1955 = vtanh.f32 %v365_v24  ;;  %v2902_v24 = vpop.eup %1947  ;;  %vm998_vm13 = vweird.f32 %v2905_v19 }
 0x106   :  { %1957 = vtanh.f32 %v290_v54  ;;  %v2893_v10 = vpop.f32.mrf.mxu0  ;;  %4050 = vst [vmem:[#allocation29_spill] sm:$0xff] %v2902_v24  ;;  %v806_v54 = vsel %vm2898_vm5, %v2511_v60, %v802_v52  ;;  %v1950_v23 = vpop.eup %1949  ;;  %v816_v60 = vmul.f32 %v2529_v11, %v815_v29  ;;  %v371_v29 = vadd.f32 %v2811_v5, %v2442_v13 }
 0x107   :  { %1959 = vrcp.f32 %v2871_v0  ;;  %v459_v12 = vpop.f32.mrf.mxu1  ;;  %v2916_v35 = vpop.eup %1951  ;;  %v2930_v36 = vadd.f32 1.0, %v1950_v23  ;;  %v1786_v23 = vmul.f32 -1.442695, %v529_v14 }
 0x108   :  { %v460_v43 = vadd.f32 %v459_v12, %v2423_v1  ;;  %1961 = vtanh.f32 %v368_v44  ;;  %v293_v44 = vadd.f32 %v2792_v51, %v2442_v13  ;;  %v1235_v12 = vsub.f32 1.0, %v1234_v4 }
 0x109   :  { %1963 = vrcp.f32 %v2885_v45  ;;  %4053 = vst [vmem:[#allocation32_spill] sm:$0xff] %v2930_v36  ;;  %v950_v51 = vsub.f32 1.0, %v949_v38  ;;  %v2944_v4 = vsel %vm2879_vm4, %v810_v17, %v806_v54  ;;  %v964_v34 = vmul.f32 %v2916_v35, %v2848_v6 }
 0x10a   :  { %v1954_v52 = vpop.eup %1953  ;;  %1965 = vpow2.f32 %v1785_v32  ;;  %v1763_v27 = vmul.f32 -1.442695, %v460_v43  ;;  %v2940_v32 = vpop.f32.mrf.mxu3  ;;  %4054 = vst [vmem:[#allocation33_spill] sm:$0xff] %v2944_v4  ;;  %v1236_v54 = vmul.f32 %v2710_v28, %v1235_v12  ;;  %vm983_vm4 = vweird.f32 %v2885_v45 }
 0x10b   :  { %v2928_v61 = vpop.eup %1955  ;;  %1967 = vrcp.f32 %v2905_v19  ;;  %v2933_v31 = vadd.f32 1.0, %v1954_v52  ;;  %v2974_v12 = vmul.f32 %v2883_v58, %v950_v51 }
 0x10c   :  { %4052 = vst [vmem:[#allocation31_spill] sm:$0xff] %v2928_v61  ;;  %v2936_v0 = vpop.eup %1957  ;;  %1969 = vpow2.f32 %v1763_v27  ;;  %v2952_v27 = vadd.f32 %v2529_v11, %v816_v60  ;;  %v1219_v61 = vmul.f32 %v2675_v37, %v2626_v33 }
 0x10d   :  { %v2946_v43 = vpop.eup %1959  ;;  %1971 = vrcp.f32 %v2933_v31  ;;  %v534_v52 = vpop.f32.mrf.mxu2  ;;  %vm1013_vm9 = vweird.f32 %v2933_v31 }
 0x10e   :  { %4055 = vst [vmem:[#allocation34_spill] sm:$0xff] %v2946_v43  ;;  %v2954_v5 = vpop.eup %1961  ;;  %1973 = vtanh.f32 %v293_v44  ;;  %v2956_v38 = vpop.f32.mrf.mxu0  ;;  %v965_v44 = vsub.f32 1.0, %v964_v34  ;;  %v1244_v34 = vand.u32 2147483648, %v2653_v3  ;;  %v1220_v20 = vsub.f32 1.0, %v1219_v61 }
 0x10f   :  { %4056 = vst [vmem:[#allocation35_spill] sm:$0xff] %v2954_v5  ;;  %v2964_v14 = vpop.eup %1963  ;;  %1975 = vrcp.f32 %v2930_v36  ;;  %v462_v60 = vpop.f32.mrf.mxu1  ;;  %v296_v36 = vadd.f32 %v2842_v8, %v2442_v13  ;;  %v1237_v5 = vadd.f32 %v2710_v28, %v1236_v54  ;;  %v532_v8 = vadd.f32 %v2887_v22, %v2423_v1 }
 0x110   :  { %v1966_v43 = vpop.eup %1965  ;;  %1977 = vtanh.f32 %v371_v29  ;;  %v979_v29 = vmul.f32 %v2964_v14, %v2885_v45  ;;  %v374_v54 = vadd.f32 %v2867_v55, %v2442_v13  ;;  %vm984_vm1 = vweird.f32 %v2964_v14 }
 0x111   :  { %v2976_v53 = vpop.eup %1967  ;;  %1979 = vpow2.f32 %v1786_v23  ;;  %v2988_v17 = vadd.f32 1.0, %v1966_v43  ;;  %v1241_v49 = vsel %vm3013_vm7, %v2710_v28, %v1237_v5  ;;  %v1787_v41 = vmul.f32 -1.442695, %v532_v8 }
 0x112   :  { %v1970_v30 = vpop.eup %1969  ;;  %v994_v56 = vmul.f32 %v2976_v53, %v2905_v19  ;;  %v3023_v7 = vpop.f32.mrf.mxu3  ;;  %v980_v40 = vsub.f32 1.0, %v979_v29  ;;  %v463_v29 = vadd.f32 %v462_v60, %v2423_v1  ;;  %vm999_vm0 = vweird.f32 %v2976_v53 }
 0x113   :  { %v2986_v51 = vpop.eup %1971  ;;  %4057 = vst [vmem:[#allocation36_spill] sm:$0xff] %v2988_v17  ;;  %v2992_v23 = vadd.f32 1.0, %v1970_v30  ;;  %v535_v30 = vadd.f32 %v534_v52, %v2423_v1  ;;  %v299_v52 = vadd.f32 %v2893_v10, %v2442_v13  ;;  %vm3116_vm11 = vmor %vm998_vm13, %vm999_vm0  ;;  %vm833_vm0 = vweird.f32 %v2517_v63 }
 0x114   :  { %v2995_v24 = vpop.eup %1973  ;;  %v1009_v57 = vmul.f32 %v2986_v51, %v2933_v31  ;;  %v995_v26 = vsub.f32 1.0, %v994_v56  ;;  %v3037_v8 = vmul.f32 %v2964_v14, %v980_v40  ;;  %v1764_v60 = vmul.f32 -1.442695, %v463_v29 }
 0x115   :  { %v3002_v43 = vpop.eup %1975  ;;  %1981 = vrcp.f32 %v2992_v23  ;;  %v537_v22 = vpop.f32.mrf.mxu2  ;;  %v1788_v39 = vmul.f32 -1.442695, %v535_v30  ;;  %vm1014_vm12 = vweird.f32 %v2986_v51  ;;  %v1229_v29 = vand.u32 2147483648, %v2626_v33 }
 0x116   :  { %4058 = vst [vmem:[#allocation37_spill] sm:$0xff] %v3002_v43  ;;  %v3017_v61 = vpop.eup %1977  ;;  %1983 = vtanh.f32 %v296_v36  ;;  %v3021_v43 = vpop.f32.mrf.mxu0  ;;  %v1245_v36 = vor.u32 1.1754944e-38, %v1244_v34  ;;  %v1010_v10 = vsub.f32 1.0, %v1009_v57  ;;  %v538_v30 = vadd.f32 %v537_v22, %v2423_v1  ;;  %vm3087_vm3 = vmor %vm1013_vm9, %vm1014_vm12 }
 0x117   :  { %4061 = vst [vmem:[#allocation38_spill] sm:$0xff] %v3017_v61  ;;  %v1980_v3 = vpop.eup %1979  ;;  %1985 = vrcp.f32 %v2988_v17  ;;  %v465_v4 = vpop.f32.mrf.mxu1  ;;  %v3030_v61 = vmul.f32 %v2916_v35, %v965_v44  ;;  %v1230_v17 = vor.u32 1.1754944e-38, %v1229_v29  ;;  %vm1028_vm2 = vweird.f32 %v2992_v23 }
 0x118   :  { %4062 = vst [vmem:[#allocation39_spill] sm:$0xff] %v3021_v43  ;;  %1987 = vtanh.f32 %v374_v54  ;;  %v1221_v43 = vmul.f32 %v2675_v37, %v1220_v20  ;;  %v1246_v55 = vsel %vm1243_vm8, %v1245_v36, %v1241_v49  ;;  %v3039_v34 = vadd.f32 1.0, %v1980_v3 }
 0x119   :  { %1989 = vtanh.f32 %v299_v52  ;;  %v3043_v16 = vmul.f32 %v2515_v62, %v1246_v55  ;;  %v1011_v56 = vmul.f32 %v2986_v51, %v1010_v10  ;;  %v996_v54 = vmul.f32 %v2976_v53, %v995_v26 }
 0x11a   :  { %1991 = vpow2.f32 %v1787_v41  ;;  %v1222_v57 = vadd.f32 %v2675_v37, %v1221_v43  ;;  %v466_v43 = vadd.f32 %v465_v4, %v2423_v1  ;;  %v1032_v26 = vand.u32 2147483647, %v2992_v23  ;;  %v382_v4 = vpop.f32.mrf.mxu3 }
 0x11b   :  { %v1982_v44 = vpop.eup %1981  ;;  %4063 = vst [vmem:[#allocation40_spill] sm:$0xff] %v3043_v16  ;;  %1993 = vpow2.f32 %v1788_v39  ;;  %v1227_v39 = vand.u32 2147483647, %v2626_v33  ;;  %v1034_v10 = vand.u32 2147483648, %v2992_v23  ;;  %v1012_v28 = vadd.f32 %v2986_v51, %v1011_v56 }
 0x11c   :  { %v3045_v20 = vpop.eup %1983  ;;  %v1024_v49 = vmul.f32 %v1982_v44, %v2992_v23  ;;  %vm1029_vm15 = vweird.f32 %v1982_v44  ;;  %v1226_v5 = vsel %vm3070_vm14, %v2675_v37, %v1222_v57  ;;  %1995 = vpow2.f32 %v1764_v60 }
 0x11d   :  { %v3051_v40 = vpop.eup %1985  ;;  %v3053_v41 = vpop.f32.mrf.mxu2  ;;  %v1017_v16 = vand.u32 2147483647, %v2933_v31  ;;  %v1789_v33 = vmul.f32 -1.442695, %v538_v30  ;;  %vm1228_vm5 = vcmp.eq.f32.partialorder %v1227_v39, 8.507059e+37  ;;  %vm1030_vm6 = vmor %vm1028_vm2, %vm1029_vm15  ;;  %v1035_v57 = vor.u32 1.1754944e-38, %v1034_v10 }
 0x11e   :  { %4064 = vst [vmem:[#allocation41_spill] sm:$0xff] %v3051_v40  ;;  %v3057_v62 = vpop.eup %1987  ;;  %v3060_v52 = vpop.f32.mrf.mxu0  ;;  %v1025_v3 = vsub.f32 1.0, %v1024_v49  ;;  %v1019_v40 = vand.u32 2147483648, %v2933_v31  ;;  %v997_v60 = vadd.f32 %v2976_v53, %v996_v54  ;;  %v1231_v23 = vsel %vm1228_vm5, %v1230_v17, %v1226_v5  ;;  %vm3146_vm15 = vmor %vm983_vm4, %vm984_vm1 }
 0x11f   :  { %4065 = vst [vmem:[#allocation42_spill] sm:$0xff] %v3057_v62  ;;  %v468_v36 = vpop.f32.mrf.mxu1  ;;  %v1990_v55 = vpop.eup %1989  ;;  %v1765_v30 = vmul.f32 -1.442695, %v466_v43  ;;  %vm1033_vm7 = vcmp.eq.f32.partialorder %v1032_v26, 8.507059e+37  ;;  %v1016_v31 = vsel %vm3087_vm3, %v2986_v51, %v1012_v28  ;;  %vm969_vm8 = vweird.f32 %v2916_v35 }
 0x120   :  { %v1026_v49 = vmul.f32 %v1982_v44, %v1025_v3  ;;  %v1992_v62 = vpop.eup %1991  ;;  %v377_v29 = vadd.f32 %v2940_v32, %v2442_v13  ;;  %v1020_v10 = vor.u32 1.1754944e-38, %v1019_v40  ;;  %v3102_v54 = vmul.f32 %v2489_v46, %v1231_v23  ;;  %vm3181_vm4 = vmor %vm968_vm10, %vm969_vm8 }
 0x121   :  { %v1994_v37 = vpop.eup %1993  ;;  %v302_v17 = vadd.f32 %v2956_v38, %v2442_v13  ;;  %1997 = vpow2.f32 %v1789_v33  ;;  %vm1018_vm9 = vcmp.eq.f32.partialorder %v1017_v16, 8.507059e+37  ;;  %v3110_v28 = vadd.f32 1.0, %v1992_v62 }
 0x122   :  { %v1027_v9 = vadd.f32 %v1982_v44, %v1026_v49  ;;  %v1996_v51 = vpop.eup %1995  ;;  %1999 = vrcp.f32 %v3039_v34  ;;  %v982_v38 = vadd.f32 %v2964_v14, %v3037_v8  ;;  %v541_v16 = vadd.f32 %v3053_v41, %v2423_v1 }
 0x123   :  { %2001 = vpow2.f32 %v1765_v30  ;;  %v1001_v40 = vsel %vm3116_vm11, %v2976_v53, %v997_v60  ;;  %v380_v62 = vadd.f32 %v3023_v7, %v2442_v13  ;;  %vm954_vm12 = vweird.f32 %v2883_v58  ;;  %v385_v7 = vpop.f32.mrf.mxu3 }
 0x124   :  { %v1031_v3 = vsel %vm1030_vm6, %v1982_v44, %v1027_v9  ;;  %v1021_v44 = vsel %vm1018_vm9, %v1020_v10, %v1016_v31  ;;  %v3130_v43 = vadd.f32 1.0, %v1994_v37  ;;  %v469_v26 = vadd.f32 %v468_v36, %v2423_v1 }
 0x125   :  { %v543_v22 = vpop.f32.mrf.mxu2  ;;  %v1036_v39 = vsel %vm1033_vm7, %v1035_v57, %v1031_v3  ;;  %2003 = vtanh.f32 %v377_v29  ;;  %v4072_v8 = vand.u32 2147483648, %v2905_v19  ;;  %v3135_v41 = vadd.f32 1.0, %v1996_v51 }
 0x126   :  { %v3106_v9 = vpop.f32.mrf.mxu0  ;;  %v1533_v5 = vmul.f32 %v1990_v55, %v1036_v39  ;;  %2005 = vtanh.f32 %v302_v17  ;;  %v1532_v49 = vmul.f32 %v3045_v20, %v1021_v44  ;;  %v4074_v53 = vand.u32 2147483647, %v2905_v19 }
 0x127   :  { %v471_v32 = vpop.f32.mrf.mxu1  ;;  %v1005_v55 = vor.u32 1.1754944e-38, %v4072_v8  ;;  %4073 = vst [vmem:[#allocation43_spill] sm:$0xff] %v3135_v41  ;;  %vm953_vm14 = vweird.f32 %v2817_v59  ;;  %2007 = vrcp.f32 %v3110_v28  ;;  %v967_v20 = vadd.f32 %v2916_v35, %v3030_v61  ;;  %v1998_v56 = vpop.eup %1997 }
 0x128   :  { %1573 = vmatpush.xpose.msrb.mxu3 %v1533_v5  ;;  %vm1003_vm13 = vcmp.eq.f32.partialorder %v4074_v53, 8.507059e+37  ;;  %v383_v19 = vadd.f32 %v382_v4, %v2442_v13  ;;  %v1790_v37 = vmul.f32 -1.442695, %v541_v16  ;;  %v544_v57 = vadd.f32 %v543_v22, %v2423_v1  ;;  %v3158_v23 = vpop.eup %1999  ;;  %vm3218_vm6 = vmor %vm953_vm14, %vm954_vm12 }
 0x129   :  { %v1006_v33 = vsel %vm1003_vm13, %v1005_v55, %v1001_v40  ;;  %2009 = vtanh.f32 %v380_v62  ;;  %v986_v60 = vsel %vm3146_vm15, %v2964_v14, %v982_v38  ;;  %vm819_vm1 = vweird.f32 %v2529_v11  ;;  %v2002_v22 = vpop.eup %2001 }
 0x12a   :  { %2011 = vrcp.f32 %v3130_v43  ;;  %v1766_v30 = vmul.f32 -1.442695, %v469_v26  ;;  %v4077_v4 = vand.u32 2147483647, %v2885_v45  ;;  %v4078_v3 = vand.u32 2147483648, %v2885_v45 }
 0x12b   :  { %2013 = vrcp.f32 %v3135_v41  ;;  %v308_v14 = vadd.f32 %v3060_v52, %v2442_v13  ;;  %v472_v39 = vadd.f32 %v471_v32, %v2423_v1  ;;  %v1531_v10 = vmul.f32 %v2995_v24, %v1006_v33  ;;  %v3173_v17 = vpop.eup %2003 }
 0x12c   :  { %1574 = vmatpush.xpose.msrb.mxu3 %v1532_v49  ;;  %vm988_vm2 = vcmp.eq.f32.partialorder %v4077_v4, 8.507059e+37  ;;  %v990_v31 = vor.u32 1.1754944e-38, %v4078_v3  ;;  %vm818_vm3 = vweird.f32 %v2481_v42  ;;  %v3175_v5 = vadd.f32 1.0, %v1998_v56  ;;  %v3191_v44 = vpop.eup %2005 }
 0x12d   :  { %v546_v61 = vpop.f32.mrf.mxu2  ;;  %v4081_v32 = vand.u32 2147483647, %v2848_v6  ;;  %2015 = vtanh.f32 %v383_v19  ;;  %4084 = vst [vmem:[#allocation44_spill] sm:$0xff] %v3191_v44  ;;  %v1791_v46 = vmul.f32 -1.442695, %v544_v57  ;;  %v971_v38 = vsel %vm3181_vm4, %v2916_v35, %v967_v20  ;;  %v3198_v40 = vpop.eup %2007  ;;  %vm3258_vm10 = vmor %vm818_vm3, %vm819_vm1 }
 0x12e   :  { %v3169_v29 = vpop.f32.mrf.mxu0  ;;  %v991_v51 = vsel %vm988_vm2, %v990_v31, %v986_v60  ;;  %2017 = vpow2.f32 %v1790_v37  ;;  %v952_v16 = vadd.f32 %v2883_v58, %v2974_v12  ;;  %v3200_v62 = vadd.f32 1.0, %v2002_v22  ;;  %v388_v57 = vpop.f32.mrf.mxu3 }
 0x12f   :  { %v474_v45 = vpop.f32.mrf.mxu1  ;;  %vm3187_vm5 = vcmp.eq.f32.partialorder %v4081_v32, 8.507059e+37  ;;  %2019 = vpow2.f32 %v1766_v30  ;;  %v547_v26 = vadd.f32 %v546_v61, %v2423_v1  ;;  %v4086_v8 = vand.u32 2147483648, %v2848_v6  ;;  %v3205_v49 = vpop.eup %2009 }
 0x130   :  { %1575 = vmatpush.xpose.msrb.mxu3 %v1531_v10  ;;  %4085 = vst [vmem:[#allocation45_spill] sm:$0xff] %v3200_v62  ;;  %2021 = vtanh.f32 %v308_v14  ;;  %v1767_v53 = vmul.f32 -1.442695, %v472_v39  ;;  %v475_v33 = vadd.f32 %v474_v45, %v2423_v1  ;;  %v1530_v35 = vmul.f32 %v2936_v0, %v991_v51  ;;  %v3209_v36 = vpop.eup %2011 }
 0x131   :  { %v975_v55 = vor.u32 1.1754944e-38, %v4086_v8  ;;  %2023 = vrcp.f32 %v3175_v5  ;;  %v386_v20 = vadd.f32 %v385_v7, %v2442_v13  ;;  %v845_v19 = vsub.f32 1.0, %v2960_v25  ;;  %v3224_v0 = vpop.eup %2013 }
 0x132   :  { %4089 = vst [vmem:[#allocation46_spill] sm:$0xff] %v3224_v0  ;;  %2025 = vpow2.f32 %v1791_v46  ;;  %v311_v56 = vadd.f32 %v3106_v9, %v2442_v13  ;;  %v956_v37 = vsel %vm3218_vm6, %v2883_v58, %v952_v16  ;;  %v4090_v60 = vsub.f32 1.0, %v2923_v21 }
 0x133   :  { %v976_v12 = vsel %vm3187_vm5, %v975_v55, %v971_v38  ;;  %v3235_v7 = vpop.eup %2015  ;;  %2027 = vrcp.f32 %v3200_v62  ;;  %v1792_v25 = vmul.f32 -1.442695, %v547_v26  ;;  %v4091_v9 = vand.u32 2147483647, %v2817_v59 }
 0x134   :  { %1576 = vmatpush.xpose.msrb.mxu3 %v1530_v35  ;;  %v831_v30 = vmul.f32 %v2576_v50, %v4090_v60  ;;  %v4092_v4 = vand.u32 2147483648, %v2817_v59  ;;  %v4093_v58 = vand.u32 2147483647, %v2481_v42  ;;  %v2018_v31 = vpop.eup %2017  ;;  %2029 = vpow2.f32 %v1767_v53 }
 0x135   :  { %v549_v61 = vpop.f32.mrf.mxu2  ;;  %vm958_vm7 = vcmp.eq.f32.partialorder %v4091_v9, 8.507059e+37  ;;  %v1768_v22 = vmul.f32 -1.442695, %v475_v33  ;;  %v1529_v10 = vmul.f32 %v2889_v48, %v976_v12  ;;  %v2020_v45 = vpop.eup %2019  ;;  %2031 = vtanh.f32 %v386_v20 }
 0x136   :  { %v960_v3 = vor.u32 1.1754944e-38, %v4092_v4  ;;  %vm3244_vm8 = vcmp.eq.f32.partialorder %v4093_v58, 8.507059e+37  ;;  %v550_v14 = vadd.f32 %v549_v61, %v2423_v1  ;;  %v3249_v39 = vpop.f32.mrf.mxu0  ;;  %v846_v59 = vmul.f32 %v2651_v2, %v845_v19  ;;  %v3262_v24 = vpop.eup %2021 }
 0x137   :  { %v477_v51 = vpop.f32.mrf.mxu1  ;;  %vm834_vm9 = vweird.f32 %v2576_v50  ;;  %4098 = vst [vmem:[#allocation47_spill] sm:$0xff] %v3262_v24  ;;  %2033 = vtanh.f32 %v311_v56  ;;  %v4099_v38 = vand.u32 2147483647, %v2517_v63  ;;  %v821_v42 = vsel %vm3258_vm10, %v2529_v11, %v2952_v27  ;;  %v3275_v26 = vpop.eup %2023 }
 0x138   :  { %v961_v52 = vsel %vm958_vm7, %v960_v3, %v956_v37  ;;  %v1793_v48 = vmul.f32 -1.442695, %v550_v14  ;;  %v478_v46 = vadd.f32 %v477_v51, %v2423_v1  ;;  %1577 = vmatpush.xpose.msrb.mxu3 %v1529_v10  ;;  %v1204_v8 = vmul.f32 %v2608_v15, %v2537_v18  ;;  %v2026_v33 = vpop.eup %2025  ;;  %v4104_v37 = vld [vmem:[#allocation10_spill] sm:$0xff]  ;;  %vm3306_vm14 = vmor %vm833_vm0, %vm834_vm9 }
 0x139   :  { %vm3267_vm11 = vcmp.eq.f32.partialorder %v4099_v38, 8.507059e+37  ;;  %v3279_v55 = vadd.f32 1.0, %v2018_v31  ;;  %2035 = vpow2.f32 %v1792_v25  ;;  %v832_v53 = vadd.f32 %v2576_v50, %v831_v30  ;;  %v3285_v20 = vpop.eup %2027  ;;  %v391_v31 = vpop.f32.mrf.mxu3  ;;  %v4111_v14 = vld [vmem:[#allocation30_spill] sm:$0xff] }
 0x13a   :  { %v3282_v35 = vadd.f32 1.0, %v2020_v45  ;;  %2037 = vpow2.f32 %v1768_v22  ;;  %v1769_v12 = vmul.f32 -1.442695, %v478_v46  ;;  %v1528_v6 = vmul.f32 %v2845_v47, %v961_v52  ;;  %4103 = vst [vmem:[#allocation49_spill] sm:$0xff] %v3285_v20  ;;  %v2030_v19 = vpop.eup %2029  ;;  %v4121_v22 = vld [vmem:[#allocation17_spill] sm:$0xff] }
 0x13b   :  { %2039 = vpow2.f32 %v1793_v48  ;;  %v389_v11 = vadd.f32 %v388_v57, %v2442_v13  ;;  %v847_v27 = vadd.f32 %v2651_v2, %v846_v59  ;;  %vm849_vm12 = vweird.f32 %v2651_v2  ;;  %v3295_v25 = vpop.eup %2031 }
 0x13c   :  { %4102 = vst [vmem:[#allocation48_spill] sm:$0xff] %v3282_v35  ;;  %v314_v56 = vadd.f32 %v3169_v29, %v2442_v13  ;;  %2041 = vpow2.f32 %v1769_v12  ;;  %1578 = vmatpush.xpose.msrb.mxu3 %v1528_v6  ;;  %v854_v60 = vand.u32 2147483648, %v4104_v37  ;;  %v4105_v30 = vand.u32 2147483648, %v2517_v63  ;;  %v4120_v29 = vld [vmem:[#allocation6_spill] sm:$0xff] }
 0x13d   :  { %2043 = vrcp.f32 %v3279_v55  ;;  %v3298_v57 = vadd.f32 1.0, %v2026_v33  ;;  %v552_v61 = vpop.f32.mrf.mxu2  ;;  %vm848_vm13 = vweird.f32 %v4104_v37  ;;  %v852_v9 = vand.u32 2147483647, %v4104_v37  ;;  %v3310_v4 = vpop.eup %2033 }
 0x13e   :  { %v840_v47 = vor.u32 1.1754944e-38, %v4105_v30  ;;  %4108 = vst [vmem:[#allocation10_spill] sm:$0xff] %v3310_v4  ;;  %2045 = vrcp.f32 %v3282_v35  ;;  %v553_v3 = vadd.f32 %v552_v61, %v2423_v1  ;;  %v3314_v58 = vpop.f32.mrf.mxu0  ;;  %vm3318_vm15 = vmor %vm848_vm13, %vm849_vm12  ;;  %v836_v63 = vsel %vm3306_vm14, %v2576_v50, %v832_v53  ;;  %v4113_v50 = vld [vmem:[#allocation19_spill] sm:$0xff] }
 0x13f   :  { %v826_v10 = vsel %vm3244_vm8, %v4111_v14, %v821_v42  ;;  %v2036_v45 = vpop.eup %2035  ;;  %v3328_v51 = vadd.f32 1.0, %v2030_v19  ;;  %v480_v52 = vpop.f32.mrf.mxu1  ;;  %2047 = vtanh.f32 %v389_v11  ;;  %v851_v59 = vsel %vm3318_vm15, %v2651_v2, %v847_v27  ;;  %v4115_v19 = vld [vmem:[#allocation33_spill] sm:$0xff]  ;;  %v4119_v61 = vld [vmem:[#allocation7_spill] sm:$0xff] }
 0x140   :  { %v1205_v32 = vsub.f32 1.0, %v1204_v8  ;;  %v2038_v48 = vpop.eup %2037  ;;  %2049 = vtanh.f32 %v314_v56  ;;  %v1794_v46 = vmul.f32 -1.442695, %v553_v3  ;;  %v481_v38 = vadd.f32 %v480_v52, %v2423_v1  ;;  %1579 = vmatpush.xpose.msrb.mxu3 %v4113_v50  ;;  %v4116_v56 = vld [vmem:[#allocation5_spill] sm:$0xff] }
 0x141   :  { %4112 = vst [vmem:[#allocation30_spill] sm:$0xff] %v3328_v51  ;;  %v855_v53 = vor.u32 1.1754944e-38, %v854_v60  ;;  %v2040_v21 = vpop.eup %2039  ;;  %2051 = vrcp.f32 %v3298_v57  ;;  %v392_v42 = vadd.f32 %v391_v31, %v2442_v13  ;;  %vm853_vm1 = vcmp.eq.f32.partialorder %v852_v9, 8.507059e+37 }
 0x142   :  { %v841_v33 = vsel %vm3267_vm11, %v840_v47, %v836_v63  ;;  %v2042_v12 = vpop.eup %2041  ;;  %v3339_v2 = vadd.f32 1.0, %v2036_v45  ;;  %2053 = vpow2.f32 %v1794_v46  ;;  %v1770_v8 = vmul.f32 -1.442695, %v481_v38  ;;  %v4118_v47 = vld [vmem:[#allocation14_spill] sm:$0xff]  ;;  %v4128_v38 = vld [vmem:[#allocation25_spill] sm:$0xff] }
 0x143   :  { %v856_v6 = vsel %vm853_vm1, %v855_v53, %v851_v59  ;;  %v3341_v11 = vpop.eup %2043  ;;  %2055 = vrcp.f32 %v3328_v51  ;;  %v3344_v27 = vadd.f32 1.0, %v2038_v48  ;;  %v3348_v37 = vmul.f32 %v4116_v56, %v4115_v19  ;;  %v4122_v63 = vld [vmem:[#allocation22_spill] sm:$0xff]  ;;  %v4125_v59 = vld [vmem:[#allocation8_spill] sm:$0xff]  ;;  %v4131_v53 = vld [vmem:[#allocation29_spill] sm:$0xff] }
 0x144   :  { %v1206_v60 = vmul.f32 %v2608_v15, %v1205_v32  ;;  %v3351_v16 = vpop.eup %2045  ;;  %v3353_v30 = vadd.f32 1.0, %v2040_v21  ;;  %2057 = vpow2.f32 %v1770_v8  ;;  %1580 = vmatpush.xpose.msrb.mxu3 %v4118_v47  ;;  %v3357_v9 = vmul.f32 %v4119_v61, %v841_v33  ;;  %v4127_v46 = vld [vmem:[#allocation18_spill] sm:$0xff]  ;;  %v4136_v56 = vld [vmem:[#allocation32_spill] sm:$0xff]  ;;  %v4137_v47 = vld [vmem:[#allocation37_spill] sm:$0xff] }
 0x145   :  { %4114 = vst [vmem:[#allocation19_spill] sm:$0xff] %v3344_v27  ;;  %v3360_v3 = vmul.f32 %v4120_v29, %v826_v10  ;;  %v3362_v31 = vpop.eup %2047  ;;  %v3366_v14 = vmul.f32 %v4122_v63, %v4121_v22  ;;  %v3368_v45 = vadd.f32 1.0, %v2042_v12  ;;  %v555_v52 = vpop.f32.mrf.mxu2  ;;  %2059 = vtanh.f32 %v392_v42  ;;  %v4130_v10 = vld [vmem:[#allocation23_spill] sm:$0xff]  ;;  %v4133_v42 = vld [vmem:[#allocation28_spill] sm:$0xff]  ;;  %v4139_v63 = vld [vmem:[#allocation13_spill] sm:$0xff] }
 0x146   :  { %4117 = vst [vmem:[#allocation33_spill] sm:$0xff] %v3351_v16  ;;  %v3371_v32 = vmul.f32 %v4125_v59, %v856_v6  ;;  %v3373_v48 = vpop.eup %2049  ;;  %v3377_v50 = vmul.f32 %v4128_v38, %v4127_v46  ;;  %v3381_v21 = vmul.f32 %v4131_v53, %v4130_v10  ;;  %2061 = vrcp.f32 %v3339_v2  ;;  %v322_v12 = vpop.f32.mrf.mxu0  ;;  %v4134_v6 = vld [vmem:[#allocation34_spill] sm:$0xff]  ;;  %v4142_v46 = vld [vmem:[#allocation41_spill] sm:$0xff] }
 0x147   :  { %4123 = vst [vmem:[#allocation5_spill] sm:$0xff] %v3366_v14  ;;  %v556_v33 = vadd.f32 %v555_v52, %v2423_v1  ;;  %v3385_v8 = vpop.eup %2051  ;;  %v3389_v19 = vmul.f32 %v4134_v6, %v4133_v42  ;;  %v3393_v61 = vmul.f32 %v4137_v47, %v4136_v56  ;;  %2063 = vrcp.f32 %v3344_v27  ;;  %v483_v29 = vpop.f32.mrf.mxu1 }
 0x148   :  { %4124 = vst [vmem:[#allocation14_spill] sm:$0xff] %v3368_v45  ;;  %v1207_v59 = vadd.f32 %v2608_v15, %v1206_v60  ;;  %v2054_v44 = vpop.eup %2053  ;;  %2065 = vrcp.f32 %v3353_v30  ;;  %v484_v24 = vadd.f32 %v483_v29, %v2423_v1  ;;  %1581 = vmatpush.xpose.msrb.mxu3 %v4139_v63  ;;  %v394_v22 = vpop.f32.mrf.mxu3  ;;  %vm1208_vm2 = vweird.f32 %v2537_v18 }
 0x149   :  { %4126 = vst [vmem:[#allocation7_spill] sm:$0xff] %v3373_v48  ;;  %v1795_v52 = vmul.f32 -1.442695, %v556_v33  ;;  %v3401_v14 = vpop.eup %2055  ;;  %v317_v4 = vadd.f32 %v3249_v39, %v2442_v13  ;;  %2067 = vrcp.f32 %v3368_v45  ;;  %v3406_v38 = vadd.f32 1.0, %v2054_v44  ;;  %v4141_v33 = vld [vmem:[#allocation36_spill] sm:$0xff] }
 0x14a   :  { %4129 = vst [vmem:[#allocation6_spill] sm:$0xff] %v3377_v50  ;;  %vm1209_vm3 = vweird.f32 %v2608_v15  ;;  %v2058_v60 = vpop.eup %2057  ;;  %v3411_v29 = vmul.f32 %v4142_v46, %v4141_v33  ;;  %v1771_v63 = vmul.f32 -1.442695, %v484_v24  ;;  %v1214_v50 = vand.u32 2147483648, %v2537_v18  ;;  %v4144_v24 = vld [vmem:[#allocation39_spill] sm:$0xff] }
 0x14b   :  { %4132 = vst [vmem:[#allocation8_spill] sm:$0xff] %v3381_v21  ;;  %2069 = vpow2.f32 %v1795_v52  ;;  %v3414_v48 = vpop.eup %2059  ;;  %v3417_v39 = vadd.f32 1.0, %v2058_v60  ;;  %v395_v44 = vadd.f32 %v394_v22, %v2442_v13  ;;  %v1212_v53 = vand.u32 2147483647, %v2537_v18  ;;  %v4146_v60 = vld [vmem:[#allocation12_spill] sm:$0xff]  ;;  %vm3438_vm4 = vmor %vm1208_vm2, %vm1209_vm3 }
 0x14c   :  { %4135 = vst [vmem:[#allocation50_spill] sm:$0xff] %v3389_v19  ;;  %2071 = vrcp.f32 %v3406_v38  ;;  %v3421_v10 = vpop.eup %2061  ;;  %v3425_v21 = vmul.f32 %v3158_v23, %v3039_v34  ;;  %v3429_v52 = vadd.f32 %v4144_v24, %v2442_v13  ;;  %v320_v6 = vadd.f32 %v3314_v58, %v2442_v13  ;;  %1582 = vmatpush.xpose.msrb.mxu3 %v4146_v60 }
 0x14d   :  { %4138 = vst [vmem:[#allocation51_spill] sm:$0xff] %v3393_v61  ;;  %2073 = vpow2.f32 %v1771_v63  ;;  %v3442_v42 = vpop.eup %2063  ;;  %v3446_v24 = vmul.f32 %v3198_v40, %v3110_v28  ;;  %v323_v58 = vadd.f32 %v322_v12, %v2442_v13  ;;  %v1211_v63 = vsel %vm3438_vm4, %v2608_v15, %v1207_v59 }
 0x14e   :  { %4140 = vst [vmem:[#allocation13_spill] sm:$0xff] %v3401_v14  ;;  %2075 = vtanh.f32 %v317_v4  ;;  %v3452_v60 = vpop.eup %2065  ;;  %v3456_v18 = vmul.f32 %v3209_v36, %v3130_v43  ;;  %v325_v19 = vpop.f32.mrf.mxu0  ;;  %v1215_v4 = vor.u32 1.1754944e-38, %v1214_v50  ;;  %v3467_v12 = vmul.f32 %v3275_v26, %v3175_v5  ;;  %v4153_v50 = vld [vmem:[#allocation11_spill] sm:$0xff] }
 0x14f   :  { %4143 = vst [vmem:[#allocation36_spill] sm:$0xff] %v3417_v39  ;;  %2077 = vrcp.f32 %v3417_v39  ;;  %v3463_v47 = vpop.eup %2067  ;;  %v326_v15 = vadd.f32 %v325_v19, %v2442_v13  ;;  %v486_v59 = vpop.f32.mrf.mxu1  ;;  %vm1213_vm5 = vcmp.eq.f32.partialorder %v1212_v53, 8.507059e+37  ;;  %v3480_v61 = vmul.f32 %v3341_v11, %v3279_v55 }
 0x150   :  { %4145 = vst [vmem:[#allocation41_spill] sm:$0xff] %v3429_v52  ;;  %v3460_v52 = vmul.f32 %v3224_v0, %v3135_v41  ;;  %2079 = vtanh.f32 %v395_v44  ;;  %v3472_v41 = vmul.f32 %v3285_v20, %v3200_v62  ;;  %v487_v0 = vadd.f32 %v486_v59, %v2423_v1  ;;  %1583 = vmatpush.xpose.msrb.mxu3 %v4153_v50 }
 0x151   :  { %4149 = vst [vmem:[#allocation39_spill] sm:$0xff] %v3442_v42  ;;  %v2070_v22 = vpop.eup %2069  ;;  %2081 = vtanh.f32 %v320_v6  ;;  %v3484_v53 = vmul.f32 %v3351_v16, %v3282_v35  ;;  %v3490_v6 = vmul.f32 %v3385_v8, %v3298_v57  ;;  %v3497_v50 = vmul.f32 %v3401_v14, %v3328_v51 }
 0x152   :  { %4150 = vst [vmem:[#allocation12_spill] sm:$0xff] %v3460_v52  ;;  %v3476_v52 = vsel %vm1213_vm5, %v1215_v4, %v1211_v63  ;;  %v2072_v56 = vpop.eup %2071  ;;  %v3486_v19 = vadd.f32 1.0, %v2070_v22  ;;  %2083 = vtanh.f32 %v323_v58  ;;  %v1772_v4 = vmul.f32 -1.442695, %v487_v0 }
 0x153   :  { %4151 = vst [vmem:[#allocation52_spill] sm:$0xff] %v3463_v47  ;;  %v2074_v44 = vpop.eup %2073  ;;  %v1489_v63 = vmul.f32 %v2072_v56, %v3406_v38  ;;  %2085 = vtanh.f32 %v326_v15  ;;  %v1474_v22 = vmul.f32 %v3452_v60, %v3353_v30  ;;  %v3508_v20 = vmul.f32 %v3421_v10, %v3339_v2  ;;  %v4159_v15 = vld [vmem:[#allocation9_spill] sm:$0xff] }
 0x154   :  { %4152 = vst [vmem:[#allocation53_spill] sm:$0xff] %v3472_v41  ;;  %v3493_v59 = vpop.eup %2075  ;;  %2087 = vrcp.f32 %v3486_v19  ;;  %v3502_v58 = vadd.f32 1.0, %v2074_v44  ;;  %v3512_v0 = vmul.f32 %v3442_v42, %v3344_v27  ;;  %1584 = vmatpush.xpose.msrb.mxu3 %v4159_v15  ;;  %v3519_v44 = vmul.f32 %v3463_v47, %v3368_v45 }
 0x155   :  { %4154 = vst [vmem:[#allocation11_spill] sm:$0xff] %v3484_v53  ;;  %v3504_v62 = vpop.eup %2077  ;;  %2089 = vpow2.f32 %v1772_v4  ;;  %v1490_v41 = vsub.f32 1.0, %v1489_v63  ;;  %v1512_v35 = vand.u32 2147483647, %v3486_v19  ;;  %vm1493_vm6 = vweird.f32 %v3406_v38 }
 0x156   :  { %4155 = vst [vmem:[#allocation54_spill] sm:$0xff] %v3493_v59  ;;  %v3515_v16 = vpop.eup %2079  ;;  %2091 = vrcp.f32 %v3502_v58  ;;  %v328_v14 = vpop.f32.mrf.mxu0  ;;  %vm1508_vm0 = vweird.f32 %v3486_v19  ;;  %vm1494_vm7 = vweird.f32 %v2072_v56  ;;  %v1497_v63 = vand.u32 2147483647, %v3406_v38 }
 0x157   :  { %4156 = vst [vmem:[#allocation55_spill] sm:$0xff] %v3497_v50  ;;  %v3524_v53 = vpop.eup %2081  ;;  %v1491_v4 = vmul.f32 %v2072_v56, %v1490_v41  ;;  %v1499_v15 = vand.u32 2147483648, %v3406_v38  ;;  %v3533_v50 = vmul.f32 %v3504_v62, %v3417_v39  ;;  %v329_v59 = vadd.f32 %v328_v14, %v2442_v13  ;;  %v489_v42 = vpop.f32.mrf.mxu1  ;;  %vm1495_vm10 = vmor %vm1493_vm6, %vm1494_vm7 }
 0x158   :  { %4157 = vst [vmem:[#allocation56_spill] sm:$0xff] %v3504_v62  ;;  %v3529_v51 = vpop.eup %2083  ;;  %v1514_v27 = vand.u32 2147483648, %v3486_v19  ;;  %v490_v41 = vadd.f32 %v489_v42, %v2423_v1  ;;  %1585 = vmatpush.xpose.msrb.mxu3 %v3371_v32  ;;  %vm1478_vm8 = vweird.f32 %v3353_v30  ;;  %vm1479_vm9 = vweird.f32 %v3452_v60 }
 0x159   :  { %4158 = vst [vmem:[#allocation57_spill] sm:$0xff] %v3512_v0  ;;  %v1475_v0 = vsub.f32 1.0, %v1474_v22  ;;  %v1492_v47 = vadd.f32 %v2072_v56, %v1491_v4  ;;  %vm1498_vm11 = vcmp.eq.f32.partialorder %v1497_v63, 8.507059e+37  ;;  %v1500_v14 = vor.u32 1.1754944e-38, %v1499_v15  ;;  %vm1480_vm14 = vmor %vm1478_vm8, %vm1479_vm9  ;;  %v4174_v4 = vld [vmem:[#allocation40_spill] sm:$0xff] }
 0x15a   :  { %4160 = vst [vmem:[#allocation9_spill] sm:$0xff] %v3519_v44  ;;  %v1484_v44 = vand.u32 2147483648, %v3353_v30  ;;  %v1773_v32 = vmul.f32 -1.442695, %v490_v41  ;;  %vm3549_vm12 = vcmp.eq.f32.partialorder %v1512_v35, 8.507059e+37  ;;  %2093 = vtanh.f32 %v329_v59 }
 0x15b   :  { %4161 = vst [vmem:[#allocation58_spill] sm:$0xff] %v3524_v53  ;;  %v3537_v53 = vpop.eup %2085  ;;  %v1476_v22 = vmul.f32 %v3452_v60, %v1475_v0  ;;  %v1496_v62 = vsel %vm1495_vm10, %v2072_v56, %v1492_v47  ;;  %v1482_v39 = vand.u32 2147483647, %v3353_v30  ;;  %v1515_v35 = vor.u32 1.1754944e-38, %v1514_v27 }
 0x15c   :  { %4162 = vst [vmem:[#allocation59_spill] sm:$0xff] %v3529_v51  ;;  %v2088_v45 = vpop.eup %2087  ;;  %v1501_v63 = vsel %vm1498_vm11, %v1500_v14, %v1496_v62  ;;  %2095 = vpow2.f32 %v1773_v32  ;;  %1586 = vmatpush.xpose.msrb.mxu3 %v3357_v9  ;;  %v1485_v56 = vor.u32 1.1754944e-38, %v1484_v44  ;;  %v1460_v62 = vsub.f32 1.0, %v3508_v20 }
 0x15d   :  { %4163 = vst [vmem:[#allocation60_spill] sm:$0xff] %v3533_v50  ;;  %v2090_v51 = vpop.eup %2089  ;;  %v1504_v42 = vmul.f32 %v2088_v45, %v3486_v19  ;;  %v1477_v0 = vadd.f32 %v3452_v60, %v1476_v22  ;;  %vm1509_vm13 = vweird.f32 %v2088_v45  ;;  %v1564_v27 = vmul.f32 %v3414_v48, %v1501_v63 }
 0x15e   :  { %v3554_v50 = vpop.eup %2091  ;;  %v3556_v38 = vadd.f32 1.0, %v2090_v51  ;;  %v331_v59 = vpop.f32.mrf.mxu0  ;;  %vm1483_vm15 = vcmp.eq.f32.partialorder %v1482_v39, 8.507059e+37  ;;  %v1461_v22 = vmul.f32 %v3421_v10, %v1460_v62  ;;  %vm1463_vm1 = vweird.f32 %v3339_v2  ;;  %vm1510_vm2 = vmor %vm1508_vm0, %vm1509_vm13 }
 0x15f   :  { %v1505_v15 = vsub.f32 1.0, %v1504_v42  ;;  %v1481_v51 = vsel %vm1480_vm14, %v3452_v60, %v1477_v0  ;;  %v3569_v47 = vmul.f32 %v3554_v50, %v3502_v58  ;;  %v332_v41 = vadd.f32 %v331_v59, %v2442_v13  ;;  %v492_v30 = vpop.f32.mrf.mxu1 }
 0x160   :  { %2097 = vrcp.f32 %v3556_v38  ;;  %v1486_v14 = vsel %vm1483_vm15, %v1485_v56, %v1481_v51  ;;  %v493_v60 = vadd.f32 %v492_v30, %v2423_v1  ;;  %1587 = vmatpush.xpose.msrb.mxu3 %v3360_v3  ;;  %v1467_v44 = vand.u32 2147483647, %v3339_v2  ;;  %v3579_v32 = vpop.eup %2093  ;;  %v4170_v56 = vld [vmem:[#allocation15_spill] sm:$0xff] }
 0x161   :  { %v1506_v9 = vmul.f32 %v2088_v45, %v1505_v15  ;;  %v1469_v42 = vand.u32 2147483648, %v3339_v2  ;;  %v3585_v48 = vmul.f32 %v3362_v31, %v1486_v14  ;;  %v1462_v39 = vadd.f32 %v3421_v10, %v1461_v22 }
 0x162   :  { %vm1464_vm3 = vweird.f32 %v3421_v10  ;;  %v1445_v1 = vsub.f32 1.0, %v3490_v6  ;;  %v2096_v3 = vpop.eup %2095  ;;  %2099 = vtanh.f32 %v332_v41  ;;  %v1774_v63 = vmul.f32 -1.442695, %v493_v60 }
 0x163   :  { %v1507_v20 = vadd.f32 %v2088_v45, %v1506_v9  ;;  %vm1448_vm4 = vweird.f32 %v3298_v57  ;;  %v3593_v51 = vadd.f32 1.0, %v2096_v3  ;;  %vm1449_vm5 = vweird.f32 %v3385_v8  ;;  %vm3605_vm6 = vmor %vm1463_vm1, %vm1464_vm3 }
 0x164   :  { %v1446_v19 = vmul.f32 %v3385_v8, %v1445_v1  ;;  %2101 = vpow2.f32 %v1774_v63  ;;  %1588 = vmatpush.xpose.msrb.mxu3 %v3348_v37  ;;  %vm3609_vm0 = vcmp.eq.f32.partialorder %v1467_v44, 8.507059e+37  ;;  %v1466_v37 = vsel %vm3605_vm6, %v3421_v10, %v1462_v39  ;;  %vm3628_vm7 = vmor %vm1448_vm4, %vm1449_vm5 }
 0x165   :  { %v1511_v0 = vsel %vm1510_vm2, %v2088_v45, %v1507_v20  ;;  %2103 = vrcp.f32 %v3593_v51  ;;  %v1452_v2 = vand.u32 2147483647, %v3298_v57  ;;  %v1454_v10 = vand.u32 2147483648, %v3298_v57 }
 0x166   :  { %v3591_v15 = vpop.eup %2097  ;;  %v1516_v31 = vsel %vm3549_vm12, %v1515_v35, %v1511_v0  ;;  %v1470_v35 = vor.u32 1.1754944e-38, %v1469_v42  ;;  %v334_v59 = vpop.f32.mrf.mxu0  ;;  %v1430_v41 = vsub.f32 1.0, %v3480_v61  ;;  %vm1433_vm8 = vweird.f32 %v3279_v55  ;;  %v4173_v42 = vld [vmem:[#allocation26_spill] sm:$0xff] }
 0x167   :  { %v1565_v6 = vmul.f32 %v3515_v16, %v1516_v31  ;;  %v1447_v16 = vadd.f32 %v3385_v8, %v1446_v19  ;;  %v3622_v62 = vmul.f32 %v3591_v15, %v3556_v38  ;;  %v335_v30 = vadd.f32 %v334_v59, %v2442_v13 }
 0x168   :  { %1593 = vmatpush.xpose.msra.mxu3 %v4170_v56  ;;  %vm1434_vm9 = vweird.f32 %v3341_v11  ;;  %v1437_v22 = vand.u32 2147483647, %v3279_v55  ;;  %v3641_v60 = vpop.eup %2099  ;;  %v1455_v20 = vor.u32 1.1754944e-38, %v1454_v10  ;;  %v1431_v44 = vmul.f32 %v3341_v11, %v1430_v41 }
 0x169   :  { %1613 = vmatpush.xpose.msra.mxu2 %v1565_v6  ;;  %v1451_v14 = vsel %vm3628_vm7, %v3385_v8, %v1447_v16  ;;  %v1439_v57 = vand.u32 2147483648, %v3279_v55  ;;  %v1415_v61 = vsub.f32 1.0, %v3467_v12  ;;  %2105 = vtanh.f32 %v335_v30  ;;  %vm1435_vm13 = vmor %vm1433_vm8, %vm1434_vm9 }
 0x16a   :  { %v1471_v13 = vsel %vm3609_vm0, %v1470_v35, %v1466_v37  ;;  %vm1453_vm10 = vcmp.eq.f32.partialorder %v1452_v2, 8.507059e+37  ;;  %vm1418_vm11 = vweird.f32 %v3175_v5  ;;  %v2102_v8 = vpop.eup %2101  ;;  %v1432_v1 = vadd.f32 %v3341_v11, %v1431_v44 }
 0x16b   :  { %v1456_v39 = vsel %vm1453_vm10, %v1455_v20, %v1451_v14  ;;  %v1416_v3 = vmul.f32 %v3275_v26, %v1415_v61  ;;  %vm1419_vm12 = vweird.f32 %v3275_v26  ;;  %v3653_v63 = vpop.eup %2103  ;;  %v3655_v12 = vadd.f32 1.0, %v2102_v8  ;;  %v4179_v8 = vld [vmem:[#allocation42_spill] sm:$0xff] }
 0x16c   :  { %1594 = vmatpush.xpose.msra.mxu3 %v4173_v42  ;;  %v1440_v0 = vor.u32 1.1754944e-38, %v1439_v57  ;;  %v1422_v31 = vand.u32 2147483647, %v3175_v5  ;;  %v1436_v19 = vsel %vm1435_vm13, %v3341_v11, %v1432_v1  ;;  %vm1438_vm14 = vcmp.eq.f32.partialorder %v1437_v22, 8.507059e+37  ;;  %vm1420_vm15 = vmor %vm1418_vm11, %vm1419_vm12 }
 0x16d   :  { %1614 = vmatpush.xpose.msra.mxu2 %v1564_v27  ;;  %v1424_v27 = vand.u32 2147483648, %v3175_v5  ;;  %v1417_v6 = vadd.f32 %v3275_v26, %v1416_v3  ;;  %v1400_v45 = vsub.f32 1.0, %v3456_v18  ;;  %2107 = vrcp.f32 %v3655_v12 }
 0x16e   :  { %v1562_v35 = vmul.f32 %v3295_v25, %v1471_v13  ;;  %v1441_v55 = vsel %vm1438_vm14, %v1440_v0, %v1436_v19  ;;  %v1174_v11 = vmul.f32 %v3653_v63, %v3593_v51  ;;  %v1561_v18 = vmul.f32 %v3235_v7, %v1456_v39 }
 0x16f   :  { %v1425_v56 = vor.u32 1.1754944e-38, %v1424_v27  ;;  %v1421_v37 = vsel %vm1420_vm15, %v3275_v26, %v1417_v6  ;;  %vm1423_vm1 = vcmp.eq.f32.partialorder %v1422_v31, 8.507059e+37  ;;  %v2106_v16 = vpop.eup %2105  ;;  %v1199_v25 = vand.u32 2147483648, %v3655_v12 }
 0x170   :  { %1595 = vmatpush.xpose.msra.mxu3 %v4174_v4  ;;  %v1401_v59 = vmul.f32 %v3209_v36, %v1400_v45  ;;  %vm1403_vm2 = vweird.f32 %v3130_v43  ;;  %v1560_v5 = vmul.f32 %v3205_v49, %v1441_v55  ;;  %vm1404_vm3 = vweird.f32 %v3209_v36 }
 0x171   :  { %1615 = vmatpush.xpose.msra.mxu2 %v3585_v48  ;;  %v1426_v2 = vsel %vm1423_vm1, %v1425_v56, %v1421_v37  ;;  %v1197_v48 = vand.u32 2147483647, %v3655_v12  ;;  %v1545_v7 = vmul.f32 %v2106_v16, %v3476_v52  ;;  %v1407_v10 = vand.u32 2147483647, %v3130_v43  ;;  %vm3693_vm5 = vmor %vm1403_vm2, %vm1404_vm3  ;;  %v4180_v16 = vld [vmem:[#allocation38_spill] sm:$0xff] }
 0x172   :  { %v3683_v9 = vmul.f32 %v3173_v17, %v1426_v2  ;;  %v1402_v26 = vadd.f32 %v3209_v36, %v1401_v59  ;;  %v1409_v41 = vand.u32 2147483648, %v3130_v43  ;;  %vm1193_vm4 = vweird.f32 %v3655_v12 }
 0x173   :  { %v1200_v49 = vor.u32 1.1754944e-38, %v1199_v25  ;;  %v1175_v30 = vsub.f32 1.0, %v1174_v11  ;;  %vm1178_vm6 = vweird.f32 %v3593_v51  ;;  %vm1179_vm0 = vweird.f32 %v3653_v63 }
 0x174   :  { %1596 = vmatpush.xpose.msra.mxu3 %v3102_v54  ;;  %v2108_v54 = vpop.eup %2107  ;;  %v1406_v52 = vsel %vm3693_vm5, %v3209_v36, %v1402_v26  ;;  %v1410_v14 = vor.u32 1.1754944e-38, %v1409_v41  ;;  %v1182_v43 = vand.u32 2147483647, %v3593_v51  ;;  %v1184_v22 = vand.u32 2147483648, %v3593_v51  ;;  %vm1180_vm12 = vmor %vm1178_vm6, %vm1179_vm0 }
 0x175   :  { %1616 = vmatpush.xpose.msra.mxu2 %v1562_v35  ;;  %v1189_v20 = vmul.f32 %v2108_v54, %v3655_v12  ;;  %vm1194_vm7 = vweird.f32 %v2108_v54  ;;  %vm3705_vm8 = vcmp.eq.f32.partialorder %v1197_v48, 8.507059e+37  ;;  %vm1408_vm9 = vcmp.eq.f32.partialorder %v1407_v10, 8.507059e+37 }
 0x176   :  { %v1176_v57 = vmul.f32 %v3653_v63, %v1175_v30  ;;  %v1411_v61 = vsel %vm1408_vm9, %v1410_v14, %v1406_v52  ;;  %v1185_v42 = vor.u32 1.1754944e-38, %v1184_v22  ;;  %v1385_v36 = vsub.f32 1.0, %v3446_v24  ;;  %vm1195_vm3 = vmor %vm1193_vm4, %vm1194_vm7  ;;  %v4184_v14 = vld [vmem:[#allocation60_spill] sm:$0xff] }
 0x177   :  { %vm1388_vm10 = vweird.f32 %v3110_v28  ;;  %v1190_v13 = vsub.f32 1.0, %v1189_v20  ;;  %v1558_v39 = vmul.f32 %v4179_v8, %v1411_v61  ;;  %vm1389_vm11 = vweird.f32 %v3198_v40 }
 0x178   :  { %1597 = vmatpush.xpose.msra.mxu3 %v1545_v7  ;;  %v1177_v1 = vadd.f32 %v3653_v63, %v1176_v57  ;;  %v1386_v3 = vmul.f32 %v3198_v40, %v1385_v36  ;;  %v1392_v0 = vand.u32 2147483647, %v3110_v28  ;;  %v1394_v24 = vand.u32 2147483648, %v3110_v28  ;;  %vm1390_vm2 = vmor %vm1388_vm10, %vm1389_vm11  ;;  %v4185_v57 = vld [vmem:[#allocation36_spill] sm:$0xff] }
 0x179   :  { %1617 = vmatpush.xpose.msra.mxu2 %v1561_v18  ;;  %v1160_v31 = vsub.f32 1.0, %v3622_v62  ;;  %v1191_v27 = vmul.f32 %v2108_v54, %v1190_v13  ;;  %vm1183_vm13 = vcmp.eq.f32.partialorder %v1182_v43, 8.507059e+37  ;;  %vm1163_vm14 = vweird.f32 %v3556_v38  ;;  %v4187_v13 = vld [vmem:[#allocation59_spill] sm:$0xff] }
 0x17a   :  { %v1181_v19 = vsel %vm1180_vm12, %v3653_v63, %v1177_v1  ;;  %v1387_v45 = vadd.f32 %v3198_v40, %v1386_v3  ;;  %vm1393_vm15 = vcmp.eq.f32.partialorder %v1392_v0, 8.507059e+37  ;;  %vm1164_vm1 = vweird.f32 %v3591_v15  ;;  %v4188_v1 = vld [vmem:[#allocation51_spill] sm:$0xff]  ;;  %v4189_v0 = vld [vmem:[#allocation32_spill] sm:$0xff] }
 0x17b   :  { %v1186_v6 = vsel %vm1183_vm13, %v1185_v42, %v1181_v19  ;;  %v1192_v51 = vadd.f32 %v2108_v54, %v1191_v27  ;;  %v1395_v62 = vor.u32 1.1754944e-38, %v1394_v24  ;;  %v1161_v4 = vmul.f32 %v3591_v15, %v1160_v31  ;;  %vm1165_vm4 = vmor %vm1163_vm14, %vm1164_vm1  ;;  %v4190_v27 = vld [vmem:[#allocation37_spill] sm:$0xff]  ;;  %v4191_v19 = vld [vmem:[#allocation31_spill] sm:$0xff] }
 0x17c   :  { %v1167_v63 = vand.u32 2147483647, %v3556_v38  ;;  %v1391_v35 = vsel %vm1390_vm2, %v3198_v40, %v1387_v45  ;;  %v1169_v55 = vand.u32 2147483648, %v3556_v38  ;;  %v1370_v56 = vsub.f32 1.0, %v3425_v21 }
 0x17d   :  { %1618 = vmatpush.xpose.msra.mxu2 %v1560_v5  ;;  %vm1373_vm5 = vweird.f32 %v3039_v34  ;;  %v1196_v11 = vsel %vm1195_vm3, %v2108_v54, %v1192_v51  ;;  %v1396_v28 = vsel %vm1393_vm15, %v1395_v62, %v1391_v35  ;;  %v1162_v18 = vadd.f32 %v3591_v15, %v1161_v4  ;;  %v4192_v4 = vld [vmem:[#allocation9_spill] sm:$0xff]  ;;  %v4193_v35 = vld [vmem:[#allocation14_spill] sm:$0xff] }
 0x17e   :  { %vm1168_vm6 = vcmp.eq.f32.partialorder %v1167_v63, 8.507059e+37  ;;  %v1201_v37 = vsel %vm3705_vm8, %v1200_v49, %v1196_v11  ;;  %v1557_v2 = vmul.f32 %v4180_v16, %v1396_v28  ;;  %v1170_v40 = vor.u32 1.1754944e-38, %v1169_v55  ;;  %v4181_v49 = vld [vmem:[#allocation35_spill] sm:$0xff]  ;;  %v4194_v11 = vld [vmem:[#allocation52_spill] sm:$0xff] }
 0x17f   :  { %v1371_v21 = vmul.f32 %v3158_v23, %v1370_v56  ;;  %v1544_v12 = vmul.f32 %v3641_v60, %v1201_v37  ;;  %v1166_v25 = vsel %vm1165_vm4, %v3591_v15, %v1162_v18  ;;  %vm1374_vm0 = vweird.f32 %v3158_v23 }
 0x180   :  { %v1377_v59 = vand.u32 2147483647, %v3039_v34  ;;  %v1171_v5 = vsel %vm1168_vm6, %v1170_v40, %v1166_v25  ;;  %v1379_v7 = vand.u32 2147483648, %v3039_v34  ;;  %v1145_v38 = vsub.f32 1.0, %v3569_v47  ;;  %vm1375_vm7 = vmor %vm1373_vm5, %vm1374_vm0 }
 0x181   :  { %1619 = vmatpush.xpose.msra.mxu2 %v3683_v9  ;;  %v1372_v48 = vadd.f32 %v3158_v23, %v1371_v21  ;;  %1598 = vmatpush.xpose.msra.mxu3 %v1544_v12  ;;  %v1543_v26 = vmul.f32 %v3579_v32, %v1186_v6  ;;  %v1542_v9 = vmul.f32 %v3537_v53, %v1171_v5  ;;  %vm1149_vm9 = vweird.f32 %v3554_v50  ;;  %v4196_v12 = vld [vmem:[#allocation50_spill] sm:$0xff] }
 0x182   :  { %vm1378_vm8 = vcmp.eq.f32.partialorder %v1377_v59, 8.507059e+37  ;;  %v1380_v60 = vor.u32 1.1754944e-38, %v1379_v7  ;;  %v1146_v10 = vmul.f32 %v3554_v50, %v1145_v38  ;;  %v1152_v41 = vand.u32 2147483647, %v3502_v58  ;;  %v4197_v59 = vld [vmem:[#allocation28_spill] sm:$0xff]  ;;  %v4198_v38 = vld [vmem:[#allocation34_spill] sm:$0xff] }
 0x183   :  { %v1376_v15 = vsel %vm1375_vm7, %v3158_v23, %v1372_v48  ;;  %vm1148_vm10 = vweird.f32 %v3502_v58  ;;  %v1154_v47 = vand.u32 2147483648, %v3502_v58  ;;  %v1355_v53 = vsub.f32 1.0, %v3411_v29 }
 0x184   :  { %vm1358_vm11 = vweird.f32 %v4141_v33  ;;  %v1381_v34 = vsel %vm1378_vm8, %v1380_v60, %v1376_v15  ;;  %v1147_v32 = vadd.f32 %v3554_v50, %v1146_v10  ;;  %vm1359_vm12 = vweird.f32 %v4142_v46  ;;  %vm1150_vm13 = vmor %vm1148_vm10, %vm1149_vm9 }
 0x185   :  { %1620 = vmatpush.xpose.msra.mxu2 %v1558_v39  ;;  %v1362_v23 = vand.u32 2147483647, %v4141_v33  ;;  %1599 = vmatpush.xpose.msra.mxu3 %v1543_v26  ;;  %v1556_v17 = vmul.f32 %v4181_v49, %v1381_v34  ;;  %v1155_v30 = vor.u32 1.1754944e-38, %v1154_v47  ;;  %v1356_v58 = vmul.f32 %v4142_v46, %v1355_v53  ;;  %vm1360_vm2 = vmor %vm1358_vm11, %vm1359_vm12  ;;  %v4199_v26 = vld [vmem:[#allocation27_spill] sm:$0xff]  ;;  %v4200_v47 = vld [vmem:[#allocation57_spill] sm:$0xff] }
 0x186   :  { %v1364_v29 = vand.u32 2147483648, %v4141_v33  ;;  %v1151_v54 = vsel %vm1150_vm13, %v3554_v50, %v1147_v32  ;;  %vm1153_vm14 = vcmp.eq.f32.partialorder %v1152_v41, 8.507059e+37  ;;  %v1130_v43 = vsub.f32 1.0, %v4184_v14  ;;  %v4186_v50 = vld [vmem:[#allocation56_spill] sm:$0xff]  ;;  %v4201_v34 = vld [vmem:[#allocation19_spill] sm:$0xff]  ;;  %v3839_v32 = vld [vmem:[%s3959_s3] sm:$0xff] }
 0x187   :  { %vm3778_vm15 = vcmp.eq.f32.partialorder %v1362_v23, 8.507059e+37  ;;  %v1156_v22 = vsel %vm1153_vm14, %v1155_v30, %v1151_v54  ;;  %v1357_v20 = vadd.f32 %v4142_v46, %v1356_v58  ;;  %vm1133_vm1 = vweird.f32 %v4185_v57  ;;  %v4202_v30 = vld [vmem:[#allocation39_spill] sm:$0xff]  ;;  %1589 = vmatmul.f32.vlgmr.msrb.gmra.mxu3 %v3839_v32  ;;  %v4203_v58 = vld [vmem:[#allocation54_spill] sm:$0xff] }
 0x188   :  { %v1365_v44 = vor.u32 1.1754944e-38, %v1364_v29  ;;  %v1131_v61 = vmul.f32 %v4186_v50, %v1130_v43  ;;  %vm1134_vm3 = vweird.f32 %v4186_v50  ;;  %v1137_v42 = vand.u32 2147483647, %v4185_v57 }
 0x189   :  { %1621 = vmatpush.xpose.msra.mxu2 %v1557_v2  ;;  %v1139_v36 = vand.u32 2147483648, %v4185_v57  ;;  %1600 = vmatpush.xpose.msra.mxu3 %v1542_v9  ;;  %v1541_v8 = vmul.f32 %v4187_v13, %v1156_v22  ;;  %v1361_v39 = vsel %vm1360_vm2, %v4142_v46, %v1357_v20  ;;  %v1340_v3 = vsub.f32 1.0, %v4188_v1  ;;  %vm1135_vm4 = vmor %vm1133_vm1, %vm1134_vm3  ;;  %v4195_v2 = vld [vmem:[#allocation58_spill] sm:$0xff]  ;;  %v4204_v22 = vld [vmem:[#allocation8_spill] sm:$0xff] }
 0x18a   :  { %vm1343_vm5 = vweird.f32 %v4189_v0  ;;  %v1366_v33 = vsel %vm3778_vm15, %v1365_v44, %v1361_v39  ;;  %v1132_v24 = vadd.f32 %v4186_v50, %v1131_v61  ;;  %vm1344_vm6 = vweird.f32 %v4190_v27  ;;  %v4205_v44 = vld [vmem:[#allocation23_spill] sm:$0xff] }
 0x18b   :  { %v1140_v31 = vor.u32 1.1754944e-38, %v1139_v36  ;;  %v1555_v6 = vmul.f32 %v4191_v19, %v1366_v33  ;;  %v1341_v46 = vmul.f32 %v4190_v27, %v1340_v3  ;;  %v1347_v45 = vand.u32 2147483647, %v4189_v0  ;;  %vm1345_vm10 = vmor %vm1343_vm5, %vm1344_vm6  ;;  %v4207_v36 = vld [vmem:[#allocation24_spill] sm:$0xff] }
 0x18c   :  { %v1349_v51 = vand.u32 2147483648, %v4189_v0  ;;  %v1136_v62 = vsel %vm1135_vm4, %v4186_v50, %v1132_v24  ;;  %vm1138_vm0 = vcmp.eq.f32.partialorder %v1137_v42, 8.507059e+37  ;;  %v1115_v63 = vsub.f32 1.0, %v4192_v4  ;;  %v4206_v42 = vld [vmem:[#allocation29_spill] sm:$0xff]  ;;  %v4208_v0 = vld [vmem:[#allocation55_spill] sm:$0xff]  ;;  %v4209_v24 = vld [vmem:[#allocation30_spill] sm:$0xff] }
 0x18d   :  { %1622 = vmatpush.xpose.msra.mxu2 %v1556_v17  ;;  %vm1118_vm7 = vweird.f32 %v4193_v35  ;;  %1601 = vmatpush.xpose.msra.mxu3 %v1541_v8  ;;  %v1141_v55 = vsel %vm1138_vm0, %v1140_v31, %v1136_v62  ;;  %v1342_v56 = vadd.f32 %v4190_v27, %v1341_v46  ;;  %vm1348_vm8 = vcmp.eq.f32.partialorder %v1347_v45, 8.507059e+37  ;;  %v4211_v46 = vld [vmem:[#allocation7_spill] sm:$0xff] }
 0x18e   :  { %vm1119_vm9 = vweird.f32 %v4194_v11  ;;  %v1350_v28 = vor.u32 1.1754944e-38, %v1349_v51  ;;  %v1116_v18 = vmul.f32 %v4194_v11, %v1115_v63  ;;  %v1122_v37 = vand.u32 2147483647, %v4193_v35 }
 0x18f   :  { %v1124_v16 = vand.u32 2147483648, %v4193_v35  ;;  %v1540_v40 = vmul.f32 %v4195_v2, %v1141_v55  ;;  %v1346_v21 = vsel %vm1345_vm10, %v4190_v27, %v1342_v56  ;;  %v1325_v25 = vsub.f32 1.0, %v4196_v12  ;;  %vm1120_vm13 = vmor %vm1118_vm7, %vm1119_vm9  ;;  %v4212_v35 = vld [vmem:[#allocation6_spill] sm:$0xff] }
 0x190   :  { %vm1328_vm11 = vweird.f32 %v4197_v59  ;;  %v1351_v5 = vsel %vm1348_vm8, %v1350_v28, %v1346_v21  ;;  %v1117_v48 = vadd.f32 %v4194_v11, %v1116_v18  ;;  %vm1329_vm12 = vweird.f32 %v4198_v38  ;;  %v4213_v56 = vld [vmem:[#allocation18_spill] sm:$0xff] }
 0x191   :  { %1623 = vmatpush.xpose.msra.mxu2 %v1555_v6  ;;  %v1125_v7 = vor.u32 1.1754944e-38, %v1124_v16  ;;  %1602 = vmatpush.xpose.msra.mxu3 %v1540_v40  ;;  %v1554_v9 = vmul.f32 %v4199_v26, %v1351_v5  ;;  %v1326_v15 = vmul.f32 %v4198_v38, %v1325_v25  ;;  %v1332_v60 = vand.u32 2147483647, %v4197_v59  ;;  %vm1330_vm2 = vmor %vm1328_vm11, %vm1329_vm12  ;;  %v4210_v6 = vld [vmem:[#allocation13_spill] sm:$0xff] }
 0x192   :  { %v1334_v10 = vand.u32 2147483648, %v4197_v59  ;;  %v1121_v41 = vsel %vm1120_vm13, %v4194_v11, %v1117_v48  ;;  %vm1123_vm14 = vcmp.eq.f32.partialorder %v1122_v37, 8.507059e+37  ;;  %v1100_v53 = vsub.f32 1.0, %v4200_v47  ;;  %v4214_v37 = vld [vmem:[#allocation25_spill] sm:$0xff]  ;;  %v4216_v59 = vld [vmem:[#allocation11_spill] sm:$0xff]  ;;  %v4217_v48 = vld [vmem:[#allocation48_spill] sm:$0xff] }
 0x193   :  { %vm1103_vm15 = vweird.f32 %v4201_v34  ;;  %v1126_v23 = vsel %vm1123_vm14, %v1125_v7, %v1121_v41  ;;  %v1327_v49 = vadd.f32 %v4198_v38, %v1326_v15  ;;  %vm1104_vm1 = vweird.f32 %v4202_v30  ;;  %v4215_v16 = vld [vmem:[#allocation21_spill] sm:$0xff]  ;;  %v4219_v15 = vld [vmem:[#allocation10_spill] sm:$0xff] }
 0x194   :  { %v1335_v17 = vor.u32 1.1754944e-38, %v1334_v10  ;;  %v1539_v29 = vmul.f32 %v4203_v58, %v1126_v23  ;;  %v1101_v54 = vmul.f32 %v4202_v30, %v1100_v53  ;;  %v1107_v52 = vand.u32 2147483647, %v4201_v34  ;;  %vm1105_vm4 = vmor %vm1103_vm15, %vm1104_vm1 }
 0x195   :  { %1624 = vmatpush.xpose.msra.mxu2 %v1554_v9  ;;  %v1109_v14 = vand.u32 2147483648, %v4201_v34  ;;  %v1331_v43 = vsel %vm1330_vm2, %v4198_v38, %v1327_v49  ;;  %vm1333_vm3 = vcmp.eq.f32.partialorder %v1332_v60, 8.507059e+37  ;;  %v1310_v20 = vsub.f32 1.0, %v4204_v22  ;;  %v4218_v9 = vld [vmem:[#allocation33_spill] sm:$0xff] }
 0x196   :  { %vm1313_vm5 = vweird.f32 %v4205_v44  ;;  %1603 = vmatpush.xpose.msra.mxu3 %v1539_v29  ;;  %v1336_v57 = vsel %vm1333_vm3, %v1335_v17, %v1331_v43  ;;  %v1102_v50 = vadd.f32 %v4202_v30, %v1101_v54  ;;  %vm1314_vm6 = vweird.f32 %v4206_v42  ;;  %v4220_v34 = vld [vmem:[#allocation5_spill] sm:$0xff]  ;;  %v4222_v29 = vld [vmem:[#allocation22_spill] sm:$0xff]  ;;  %v4223_v54 = vld [vmem:[#allocation20_spill] sm:$0xff] }
 0x197   :  { %v1110_v61 = vor.u32 1.1754944e-38, %v1109_v14  ;;  %v1553_v13 = vmul.f32 %v4207_v36, %v1336_v57  ;;  %v1311_v8 = vmul.f32 %v4206_v42, %v1310_v20  ;;  %v1317_v39 = vand.u32 2147483647, %v4205_v44  ;;  %vm1315_vm9 = vmor %vm1313_vm5, %vm1314_vm6  ;;  %v4221_v49 = vld [vmem:[#allocation17_spill] sm:$0xff] }
 0x198   :  { %v1319_v1 = vand.u32 2147483648, %v4205_v44  ;;  %v1106_v3 = vsel %vm1105_vm4, %v4202_v30, %v1102_v50  ;;  %vm1108_vm0 = vcmp.eq.f32.partialorder %v1107_v52, 8.507059e+37  ;;  %v1085_v33 = vsub.f32 1.0, %v4208_v0  ;;  %v4224_v20 = vld [vmem:[#allocation41_spill] sm:$0xff] }
 0x199   :  { %vm1088_vm7 = vweird.f32 %v4209_v24  ;;  %1625 = vmatpush.xpose.msra.mxu2 %v1553_v13  ;;  %v1111_v31 = vsel %vm1108_vm0, %v1110_v61, %v1106_v3  ;;  %v1312_v27 = vadd.f32 %v4206_v42, %v1311_v8  ;;  %vm1089_vm8 = vweird.f32 %v4210_v6  ;;  %v4225_v57 = vld [vmem:[#allocation53_spill] sm:$0xff]  ;;  %v4227_v8 = vld [vmem:[#allocation47_spill] sm:$0xff] }
 0x19a   :  { %v1320_v19 = vor.u32 1.1754944e-38, %v1319_v1  ;;  %v1538_v45 = vmul.f32 %v4211_v46, %v1111_v31  ;;  %v1086_v51 = vmul.f32 %v4210_v6, %v1085_v33  ;;  %v1092_v62 = vand.u32 2147483647, %v4209_v24  ;;  %vm1090_vm13 = vmor %vm1088_vm7, %vm1089_vm8  ;;  %v4226_v13 = vld [vmem:[#allocation49_spill] sm:$0xff]  ;;  %v4229_v31 = vld [vmem:[#allocation12_spill] sm:$0xff] }
 0x19b   :  { %v1094_v4 = vand.u32 2147483648, %v4209_v24  ;;  %v1316_v63 = vsel %vm1315_vm9, %v4206_v42, %v1312_v27  ;;  %vm1318_vm10 = vcmp.eq.f32.partialorder %v1317_v39, 8.507059e+37  ;;  %v1295_v55 = vsub.f32 1.0, %v4212_v35  ;;  %v4228_v3 = vld [vmem:[#allocation45_spill] sm:$0xff] }
 0x19c   :  { %vm1298_vm11 = vweird.f32 %v4213_v56  ;;  %1604 = vmatpush.xpose.msra.mxu3 %v1538_v45  ;;  %v1321_v11 = vsel %vm1318_vm10, %v1320_v19, %v1316_v63  ;;  %v1087_v28 = vadd.f32 %v4210_v6, %v1086_v51  ;;  %vm1299_vm12 = vweird.f32 %v4214_v37  ;;  %v4230_v45 = vld [vmem:[#allocation46_spill] sm:$0xff]  ;;  %v4231_v51 = vld [vmem:[#allocation16_spill] sm:$0xff]  ;;  %v4232_v63 = vld [vmem:[#allocation43_spill] sm:$0xff] }
 0x19d   :  { %v1095_v18 = vor.u32 1.1754944e-38, %v1094_v4  ;;  %v1552_v2 = vmul.f32 %v4215_v16, %v1321_v11  ;;  %v1296_v40 = vmul.f32 %v4214_v37, %v1295_v55  ;;  %v1302_v21 = vand.u32 2147483647, %v4213_v56  ;;  %vm1300_vm2 = vmor %vm1298_vm11, %vm1299_vm12 }
 0x19e   :  { %v1304_v12 = vand.u32 2147483648, %v4213_v56  ;;  %v1091_v25 = vsel %vm1090_vm13, %v4210_v6, %v1087_v28  ;;  %vm1093_vm14 = vcmp.eq.f32.partialorder %v1092_v62, 8.507059e+37  ;;  %v1070_v5 = vsub.f32 1.0, %v4216_v59  ;;  %v1567_v56 = vld [vmem:[%s3960_s4] sm:$0xff]  ;;  %s2138_s4 = smov [#allocation2]  }
 0x19f   :  { %vm1073_vm15 = vweird.f32 %v4217_v48  ;;  %1626 = vmatpush.xpose.msra.mxu2 %v1552_v2  ;;  %v1096_v7 = vsel %vm1093_vm14, %v1095_v18, %v1091_v25  ;;  %v1297_v38 = vadd.f32 %v4214_v37, %v1296_v40  ;;  %vm1074_vm1 = vweird.f32 %v4218_v9  ;;  %v4233_v25 = vld [vmem:[#allocation44_spill] sm:$0xff]  ;;  %s1641_s20 = sshll.u32 %s2138_s4, 4  ;;  %s1642_s20 = int_to_ptr.vmem [resolvable:$true] %s1641_s20 }
 0x1a0   :  { %v1305_v26 = vor.u32 1.1754944e-38, %v1304_v12  ;;  %v1537_v60 = vmul.f32 %v4219_v15, %v1096_v7  ;;  %v1071_v10 = vmul.f32 %v4218_v9, %v1070_v5  ;;  %v1077_v41 = vand.u32 2147483647, %v4217_v48  ;;  %vm1075_vm4 = vmor %vm1073_vm15, %vm1074_vm1 }
 0x1a1   :  { %v1079_v47 = vand.u32 2147483648, %v4217_v48  ;;  %v1301_v53 = vsel %vm1300_vm2, %v4214_v37, %v1297_v38  ;;  %vm1303_vm3 = vcmp.eq.f32.partialorder %v1302_v21, 8.507059e+37  ;;  %v1280_v23 = vsub.f32 1.0, %v4220_v34 }
 0x1a2   :  { %vm1283_vm5 = vweird.f32 %v4221_v49  ;;  %1605 = vmatpush.xpose.msra.mxu3 %v1537_v60  ;;  %v1306_v17 = vsel %vm1303_vm3, %v1305_v26, %v1301_v53  ;;  %v1072_v30 = vadd.f32 %v4218_v9, %v1071_v10  ;;  %vm1284_vm6 = vweird.f32 %v4222_v29 }
 0x1a3   :  { %v1080_v58 = vor.u32 1.1754944e-38, %v1079_v47  ;;  %v1551_v52 = vmul.f32 %v4223_v54, %v1306_v17  ;;  %v1281_v14 = vmul.f32 %v4222_v29, %v1280_v23  ;;  %v1287_v43 = vand.u32 2147483647, %v4221_v49  ;;  %vm1285_vm8 = vmor %vm1283_vm5, %vm1284_vm6 }
 0x1a4   :  { %v1289_v22 = vand.u32 2147483648, %v4221_v49  ;;  %2109 = vtanh.f32 %v4224_v20  ;;  %v1076_v44 = vsel %vm1075_vm4, %v4218_v9, %v1072_v30  ;;  %vm1078_vm0 = vcmp.eq.f32.partialorder %v1077_v41, 8.507059e+37 }
 0x1a5   :  { %v1055_v50 = vsub.f32 1.0, %v4225_v57  ;;  %1627 = vmatpush.xpose.msra.mxu2 %v1551_v52  ;;  %v1081_v61 = vsel %vm1078_vm0, %v1080_v58, %v1076_v44  ;;  %v1282_v42 = vadd.f32 %v4222_v29, %v1281_v14  ;;  %vm1059_vm7 = vweird.f32 %v4226_v13 }
 0x1a6   :  { %v1290_v36 = vor.u32 1.1754944e-38, %v1289_v22  ;;  %v1536_v39 = vmul.f32 %v4227_v8, %v1081_v61  ;;  %v1062_v0 = vand.u32 2147483647, %v4228_v3  ;;  %v1064_v33 = vand.u32 2147483648, %v4228_v3 }
 0x1a7   :  { %v1056_v1 = vmul.f32 %v4226_v13, %v1055_v50  ;;  %v1286_v24 = vsel %vm1285_vm8, %v4222_v29, %v1282_v42  ;;  %vm1288_vm9 = vcmp.eq.f32.partialorder %v1287_v43, 8.507059e+37  ;;  %vm1058_vm10 = vweird.f32 %v4228_v3 }
 0x1a8   :  { %v1040_v27 = vsub.f32 1.0, %v4229_v31  ;;  %1606 = vmatpush.xpose.msra.mxu3 %v1536_v39  ;;  %v1291_v19 = vsel %vm1288_vm9, %v1290_v36, %v1286_v24  ;;  %v1065_v46 = vor.u32 1.1754944e-38, %v1064_v33  ;;  %vm1044_vm11 = vweird.f32 %v4230_v45  ;;  %vm1060_vm12 = vmor %vm1058_vm10, %vm1059_vm7 }
 0x1a9   :  { %v1057_v6 = vadd.f32 %v4226_v13, %v1056_v1  ;;  %v1550_v62 = vmul.f32 %v4231_v51, %v1291_v19  ;;  %v1047_v35 = vand.u32 2147483647, %v4232_v63  ;;  %v1049_v55 = vand.u32 2147483648, %v4232_v63 }
 0x1aa   :  { %v1041_v4 = vmul.f32 %v4230_v45, %v1040_v27  ;;  %v2110_v11 = vpop.eup %2109  ;;  %vm1063_vm13 = vcmp.eq.f32.partialorder %v1062_v0, 8.507059e+37  ;;  %vm1043_vm14 = vweird.f32 %v4232_v63  ;;  %v2137_v16 = vmov 0  }
 0x1ab   :  { %v1061_v28 = vsel %vm1060_vm12, %v4226_v13, %v1057_v6  ;;  %1628 = vmatpush.xpose.msra.mxu2 %v1550_v62  ;;  %1822 = vset.pattern.permute.xlu0 %v2137_v16  ;;  %vm1045_vm15 = vmor %vm1043_vm14, %vm1044_vm11  ;;  %v1050_v40 = vor.u32 1.1754944e-38, %v1049_v55  ;;  %vm1048_vm1 = vcmp.eq.f32.partialorder %v1047_v35, 8.507059e+37 }
 0x1ac   :  { %v1066_v18 = vsel %vm1063_vm13, %v1065_v46, %v1061_v28  ;;  %v1042_v37 = vadd.f32 %v4230_v45, %v1041_v4  ;;  %1570 = vperm.xlu0 %1822, %v1567_v56  }
 0x1ad   :  { %v1535_v2 = vmul.f32 %v2110_v11, %v1066_v18 }
 0x1ae   :  { %v1046_v21 = vsel %vm1045_vm15, %v4230_v45, %v1042_v37  ;;  %1629 = vmatmul.f32.vlgmr.msra.gmra.mxu2 %v3839_v32 }
 0x1af   :  { %1607 = vmatpush.xpose.msra.mxu3 %v1535_v2  ;;  %v1051_v12 = vsel %vm1048_vm1, %v1050_v40, %v1046_v21 }
 0x1b0   :  { %v1534_v59 = vmul.f32 %v4233_v25, %v1051_v12 }
 0x1b3   :  { %1608 = vmatpush.xpose.msra.mxu3 %v1534_v59 }
 0x1b6   :  { %1609 = vmatmul.f32.vlgmr.msra.gmra.mxu3 %v3839_v32 }
 0x20a   :  { %v1590_v5 = vpop.f32.mrf.mxu3 }
 0x21e   :  { %v1571_v48 = vpop.permute.xlu0 %1570 }
 0x21f   :  { %v1591_v7 = vadd.f32 %v1590_v5, %v1571_v48 }
 0x221   :  { %1633 = vst [vmem:[#allocation2] sm:$0xff] %v1591_v7 }
 0x231   :  { %v1630_v38 = vpop.f32.mrf.mxu2 }
 0x232   :  { %v1631_v26 = vadd.f32 %v1630_v38, %v1571_v48 }
 0x234   :  { %1635 = vst [vmem:[#allocation2 + $0x10] sm:$0xff] %v1631_v26 }
 0x239   :  { %v1610_v9 = vpop.f32.mrf.mxu3 }
 0x23a   :  { %v1611_v15 = vadd.f32 %v1610_v9, %v1571_v48 }
 0x23c   :  { %1634 = vst [vmem:[#allocation2 + $0x8] sm:$0xff] %v1611_v15 }
 0x23d   :  { %1646 = dma.vmem_to_hbm [thread:$0]  %s1642_s20, 384, %s1644_s23, [#allocation3]  }
 0x23e   :  { %2135 = dma.done.wait [#allocation3], 384  }
 0x23f   :  { %2136 = vsyncadd [#allocation3], 4294966912 }
 0x240   :  { %1651 = vsyncpa [#allocation3], 1 }

// kernel: tpu_custom_call.1
= control target key start
LH: loop header
LB: loop body
LE: loop exit
PB: predicated region body
PF: predicated region fallthrough
CT: control target
= control target key end

     0   :  { %s3956_s0 = inlined_call_operand.vmem [shape: f32[384,64], index: 0, kind: input, shape index: {}]   ;;  %s3957_s1 = inlined_call_operand.vmem [shape: f32[64,256], index: 1, kind: input, shape index: {}]   ;;  %s3958_s2 = inlined_call_operand.vmem [shape: f32[1,256], index: 2, kind: input, shape index: {}]   ;;  %s3959_s3 = inlined_call_operand.vmem [shape: f32[8,128], index: 3, kind: input, shape index: {}]   ;;  %s3960_s4 = inlined_call_operand.vmem [shape: f32[8,1], index: 4, kind: input, shape index: {}]   ;;  %s3961_s5 = inlined_call_operand.hbm [shape: f32[8,384], index: 5, kind: output, shape index: {}]  }
   0x1   :  { %v83_v0 = vld [vmem:[%s3957_s1 + $0x70] sm:$0xff]  ;;  %v84_v1 = vld [vmem:[%s3957_s1 + $0x78] sm:$0xff]  ;;  %v81_v2 = vld [vmem:[%s3957_s1 + $0x60] sm:$0xff] }
   0x2   :  { %244 = vmatpush.msra.mxu0 %v83_v0  ;;  %1796 = vmatpush.msra.mxu2 %v83_v0  ;;  %v82_v3 = vld [vmem:[%s3957_s1 + $0x68] sm:$0xff]  ;;  %v79_v4 = vld [vmem:[%s3957_s1 + $0x50] sm:$0xff]  ;;  %v80_v5 = vld [vmem:[%s3957_s1 + $0x58] sm:$0xff] }
   0x3   :  { %405 = vmatpush.msra.mxu1 %v84_v1  ;;  %1797 = vmatpush.msra.mxu3 %v83_v0  ;;  %v77_v6 = vld [vmem:[%s3957_s1 + $0x40] sm:$0xff]  ;;  %v78_v7 = vld [vmem:[%s3957_s1 + $0x48] sm:$0xff]  ;;  %v75_v8 = vld [vmem:[%s3957_s1 + $0x30] sm:$0xff] }
   0x4   :  { %245 = vmatpush.msra.mxu0 %v81_v2  ;;  %1798 = vmatpush.msra.mxu2 %v81_v2  ;;  %v76_v9 = vld [vmem:[%s3957_s1 + $0x38] sm:$0xff] }
   0x5   :  { %406 = vmatpush.msra.mxu1 %v82_v3  ;;  %1799 = vmatpush.msra.mxu3 %v81_v2 }
   0x6   :  { %246 = vmatpush.msra.mxu0 %v79_v4  ;;  %1800 = vmatpush.msra.mxu2 %v79_v4 }
   0x7   :  { %407 = vmatpush.msra.mxu1 %v80_v5  ;;  %1801 = vmatpush.msra.mxu3 %v79_v4 }
   0x8   :  { %247 = vmatpush.msra.mxu0 %v77_v6  ;;  %1802 = vmatpush.msra.mxu2 %v77_v6 }
   0x9   :  { %10 = vsyncpa [#allocation3], 0  ;;  %408 = vmatpush.msra.mxu1 %v78_v7  ;;  %v73_v10 = vld [vmem:[%s3957_s1 + $0x20] sm:$0xff]  ;;  %1803 = vmatpush.msra.mxu3 %v77_v6  ;;  %v74_v11 = vld [vmem:[%s3957_s1 + $0x28] sm:$0xff]  ;;  %vm91_vm0 = vcmask 523264   ;;  %s1643_s23 = sshll.u32 %s3961_s5, 4  ;;  %s1644_s23 = int_to_ptr.hbm [resolvable:$true] %s1643_s23 }
   0xa   :  { %248 = vmatpush.msra.mxu0 %v75_v8  ;;  %1804 = vmatpush.msra.mxu2 %v75_v8  ;;  %v71_v12 = vld [vmem:[%s3957_s1 + $0x10] sm:$0xff]  ;;  %v72_v13 = vld [vmem:[%s3957_s1 + $0x18] sm:$0xff]  ;;  %v69_v14 = vld [vmem:[%s3957_s1] sm:$0xff] }
   0xb   :  { %409 = vmatpush.msra.mxu1 %v76_v9  ;;  %1805 = vmatpush.msra.mxu3 %v75_v8  ;;  %v70_v15 = vld [vmem:[%s3957_s1 + $0x8] sm:$0xff]  ;;  %v21_v16 = vld [vmem:[%s3956_s0] sm:$0xff]  ;;  %v51_v20 = vld [vmem:[%s3956_s0 + $0xf0] sm:$0xff] }
   0xc   :  { %249 = vmatpush.msra.mxu0 %v73_v10  ;;  %1806 = vmatpush.msra.mxu2 %v73_v10  ;;  %v49_v17 = vld [vmem:[%s3956_s0 + $0xe0] sm:$0xff]  ;;  %v22_v18 = vld [vmem:[%s3956_s0 + $0x8] sm:$0xff]  ;;  %v23_v21 = vld [vmem:[%s3956_s0 + $0x10] sm:$0xff] }
   0xd   :  { %410 = vmatpush.msra.mxu1 %v74_v11  ;;  %1807 = vmatpush.msra.mxu3 %v73_v10  ;;  %v50_v19 = vld [vmem:[%s3956_s0 + $0xe8] sm:$0xff]  ;;  %v2245_v22 = vld [vmem:[%s3956_s0 + $0xd8] sm:$0xff]  ;;  %v53_v25 = vld [vmem:[%s3956_s0 + $0x100] sm:$0xff] }
   0xe   :  { %250 = vmatpush.msra.mxu0 %v71_v12  ;;  %1808 = vmatpush.msra.mxu2 %v71_v12  ;;  %v52_v23 = vld [vmem:[%s3956_s0 + $0xf8] sm:$0xff]  ;;  %v25_v26 = vld [vmem:[%s3956_s0 + $0x20] sm:$0xff]  ;;  %v54_v27 = vld [vmem:[%s3956_s0 + $0x108] sm:$0xff] }
   0xf   :  { %411 = vmatpush.msra.mxu1 %v72_v13  ;;  %1809 = vmatpush.msra.mxu3 %v71_v12  ;;  %v24_v24 = vld [vmem:[%s3956_s0 + $0x18] sm:$0xff]  ;;  %v26_v28 = vld [vmem:[%s3956_s0 + $0x28] sm:$0xff]  ;;  %v55_v29 = vld [vmem:[%s3956_s0 + $0x110] sm:$0xff] }
  0x10   :  { %251 = vmatpush.msra.mxu0 %v69_v14  ;;  %1810 = vmatpush.msra.mxu2 %v69_v14  ;;  %v27_v30 = vld [vmem:[%s3956_s0 + $0x30] sm:$0xff]  ;;  %v56_v31 = vld [vmem:[%s3956_s0 + $0x118] sm:$0xff]  ;;  %v57_v33 = vld [vmem:[%s3956_s0 + $0x120] sm:$0xff] }
  0x11   :  { %412 = vmatpush.msra.mxu1 %v70_v15  ;;  %1652 = vmatmul.msk.f32.vlgmr.msra.gmra.mxu0 %vm91_vm0, %v21_v16  ;;  %v28_v32 = vld [vmem:[%s3956_s0 + $0x38] sm:$0xff]  ;;  %v29_v34 = vld [vmem:[%s3956_s0 + $0x40] sm:$0xff]  ;;  %v58_v35 = vld [vmem:[%s3956_s0 + $0x128] sm:$0xff] }
  0x12   :  { %1680 = vmatmul.msk.f32.vlgmr.msra.gmra.mxu2 %vm91_vm0, %v49_v17  ;;  %1700 = vmatmul.msk.f32.vlgmr.msra.gmra.mxu1 %vm91_vm0, %v21_v16  ;;  %v30_v36 = vld [vmem:[%s3956_s0 + $0x48] sm:$0xff]  ;;  %v59_v37 = vld [vmem:[%s3956_s0 + $0x130] sm:$0xff]  ;;  %v60_v39 = vld [vmem:[%s3956_s0 + $0x138] sm:$0xff] }
  0x13   :  { %1812 = vmatpush.msrb.mxu2 %v84_v1  ;;  %1811 = vmatpush.msra.mxu3 %v69_v14  ;;  %v31_v38 = vld [vmem:[%s3956_s0 + $0x50] sm:$0xff]  ;;  %v32_v40 = vld [vmem:[%s3956_s0 + $0x58] sm:$0xff]  ;;  %v61_v41 = vld [vmem:[%s3956_s0 + $0x140] sm:$0xff] }
  0x14   :  { %1682 = vmatmul.msk.f32.vlgmr.msra.gmra.mxu3 %vm91_vm0, %v51_v20  ;;  %v33_v42 = vld [vmem:[%s3956_s0 + $0x60] sm:$0xff]  ;;  %v62_v43 = vld [vmem:[%s3956_s0 + $0x148] sm:$0xff]  ;;  %v63_v45 = vld [vmem:[%s3956_s0 + $0x150] sm:$0xff] }
  0x15   :  { %1813 = vmatpush.msrb.mxu2 %v82_v3  ;;  %v34_v44 = vld [vmem:[%s3956_s0 + $0x68] sm:$0xff]  ;;  %v35_v46 = vld [vmem:[%s3956_s0 + $0x70] sm:$0xff]  ;;  %v64_v47 = vld [vmem:[%s3956_s0 + $0x158] sm:$0xff] }
  0x16   :  { %v36_v48 = vld [vmem:[%s3956_s0 + $0x78] sm:$0xff]  ;;  %v65_v49 = vld [vmem:[%s3956_s0 + $0x160] sm:$0xff]  ;;  %v66_v53 = vld [vmem:[%s3956_s0 + $0x168] sm:$0xff] }
  0x17   :  { %1814 = vmatpush.msrb.mxu2 %v80_v5  ;;  %v37_v51 = vld [vmem:[%s3956_s0 + $0x80] sm:$0xff]  ;;  %v38_v56 = vld [vmem:[%s3956_s0 + $0x88] sm:$0xff]  ;;  %v67_v58 = vld [vmem:[%s3956_s0 + $0x170] sm:$0xff] }
  0x18   :  { %v39_v61 = vld [vmem:[%s3956_s0 + $0x90] sm:$0xff]  ;;  %v85_v63 = vld [vmem:[%s3958_s2] sm:$0x3]  ;;  %v2419_v0 = vld [vmem:[%s3956_s0 + $0x178] sm:$0xff] }
  0x19   :  { %1815 = vmatpush.msrb.mxu2 %v78_v7  ;;  %1653 = vmatmul.msk.f32.gmra.mxu0 %vm91_vm0, %v22_v18  ;;  %v2423_v1 = vperm.slane %v85_v63, 1  ;;  %v40_v4 = vld [vmem:[%s3956_s0 + $0x98] sm:$0xff] }
  0x1a   :  { %1681 = vmatmul.msk.f32.gmra.mxu2 %vm91_vm0, %v50_v19  ;;  %1701 = vmatmul.msk.f32.gmra.mxu1 %vm91_vm0, %v22_v18 }
  0x1b   :  { %1816 = vmatpush.msrb.mxu2 %v76_v9 }
  0x1c   :  { %1683 = vmatmul.msk.f32.gmra.mxu3 %vm91_vm0, %v52_v23 }
  0x1d   :  { %1817 = vmatpush.msrb.mxu2 %v74_v11  ;;  %v41_v11 = vld [vmem:[%s3956_s0 + $0xa0] sm:$0xff] }
  0x1f   :  { %1818 = vmatpush.msrb.mxu2 %v72_v13  ;;  %v2442_v13 = vperm.slane %v85_v63, 0 }
  0x21   :  { %1819 = vmatpush.msrb.mxu2 %v70_v15  ;;  %1654 = vmatmul.msk.f32.gmra.mxu0 %vm91_vm0, %v23_v21 }
  0x22   :  { %1702 = vmatmul.msk.f32.gmra.mxu1 %vm91_vm0, %v23_v21  ;;  %1727 = vmatmul.msk.f32.vlgmr.msrb.gmra.mxu2 %vm91_vm0, %v2245_v22 }
  0x24   :  { %1684 = vmatmul.msk.f32.gmra.mxu3 %vm91_vm0, %v53_v25 }
  0x29   :  { %1655 = vmatmul.msk.f32.gmra.mxu0 %vm91_vm0, %v24_v24 }
  0x2a   :  { %1703 = vmatmul.msk.f32.gmra.mxu1 %vm91_vm0, %v24_v24  ;;  %1728 = vmatmul.msk.f32.gmra.mxu2 %vm91_vm0, %v49_v17 }
  0x2c   :  { %1685 = vmatmul.msk.f32.gmra.mxu3 %vm91_vm0, %v54_v27 }
  0x31   :  { %1656 = vmatmul.msk.f32.gmra.mxu0 %vm91_vm0, %v25_v26 }
  0x32   :  { %1704 = vmatmul.msk.f32.gmra.mxu1 %vm91_vm0, %v25_v26  ;;  %1729 = vmatmul.msk.f32.gmra.mxu2 %vm91_vm0, %v50_v19 }
  0x34   :  { %1686 = vmatmul.msk.f32.gmra.mxu3 %vm91_vm0, %v55_v29 }
  0x39   :  { %1657 = vmatmul.msk.f32.gmra.mxu0 %vm91_vm0, %v26_v28 }
  0x3a   :  { %1705 = vmatmul.msk.f32.gmra.mxu1 %vm91_vm0, %v26_v28  ;;  %1730 = vmatmul.msk.f32.gmra.mxu2 %vm91_vm0, %v51_v20 }
  0x3c   :  { %1687 = vmatmul.msk.f32.gmra.mxu3 %vm91_vm0, %v56_v31 }
  0x41   :  { %1658 = vmatmul.msk.f32.gmra.mxu0 %vm91_vm0, %v27_v30 }
  0x42   :  { %1706 = vmatmul.msk.f32.gmra.mxu1 %vm91_vm0, %v27_v30  ;;  %1731 = vmatmul.msk.f32.gmra.mxu2 %vm91_vm0, %v52_v23 }
  0x44   :  { %1688 = vmatmul.msk.f32.gmra.mxu3 %vm91_vm0, %v57_v33 }
  0x49   :  { %1659 = vmatmul.msk.f32.gmra.mxu0 %vm91_vm0, %v28_v32 }
  0x4a   :  { %1707 = vmatmul.msk.f32.gmra.mxu1 %vm91_vm0, %v28_v32  ;;  %1732 = vmatmul.msk.f32.gmra.mxu2 %vm91_vm0, %v53_v25  ;;  %v42_v25 = vld [vmem:[%s3956_s0 + $0xa8] sm:$0xff] }
  0x4c   :  { %1689 = vmatmul.msk.f32.gmra.mxu3 %vm91_vm0, %v58_v35 }
  0x51   :  { %1660 = vmatmul.msk.f32.gmra.mxu0 %vm91_vm0, %v29_v34 }
  0x52   :  { %1708 = vmatmul.msk.f32.gmra.mxu1 %vm91_vm0, %v29_v34  ;;  %1733 = vmatmul.msk.f32.gmra.mxu2 %vm91_vm0, %v54_v27 }
  0x54   :  { %1690 = vmatmul.msk.f32.gmra.mxu3 %vm91_vm0, %v59_v37 }
  0x59   :  { %1661 = vmatmul.msk.f32.gmra.mxu0 %vm91_vm0, %v30_v36 }
  0x5a   :  { %1709 = vmatmul.msk.f32.gmra.mxu1 %vm91_vm0, %v30_v36  ;;  %1734 = vmatmul.msk.f32.gmra.mxu2 %vm91_vm0, %v55_v29 }
  0x5c   :  { %1691 = vmatmul.msk.f32.gmra.mxu3 %vm91_vm0, %v60_v39 }
  0x61   :  { %1662 = vmatmul.msk.f32.gmra.mxu0 %vm91_vm0, %v31_v38 }
  0x62   :  { %1710 = vmatmul.msk.f32.gmra.mxu1 %vm91_vm0, %v31_v38  ;;  %1735 = vmatmul.msk.f32.gmra.mxu2 %vm91_vm0, %v56_v31 }
  0x64   :  { %1692 = vmatmul.msk.f32.gmra.mxu3 %vm91_vm0, %v61_v41 }
  0x69   :  { %1663 = vmatmul.msk.f32.gmra.mxu0 %vm91_vm0, %v32_v40 }
  0x6a   :  { %1711 = vmatmul.msk.f32.gmra.mxu1 %vm91_vm0, %v32_v40  ;;  %1736 = vmatmul.msk.f32.gmra.mxu2 %vm91_vm0, %v57_v33 }
  0x6c   :  { %1693 = vmatmul.msk.f32.gmra.mxu3 %vm91_vm0, %v62_v43 }
  0x71   :  { %1664 = vmatmul.msk.f32.gmra.mxu0 %vm91_vm0, %v33_v42 }
  0x72   :  { %1712 = vmatmul.msk.f32.gmra.mxu1 %vm91_vm0, %v33_v42  ;;  %1737 = vmatmul.msk.f32.gmra.mxu2 %vm91_vm0, %v58_v35 }
  0x74   :  { %1694 = vmatmul.msk.f32.gmra.mxu3 %vm91_vm0, %v63_v45 }
  0x79   :  { %1665 = vmatmul.msk.f32.gmra.mxu0 %vm91_vm0, %v34_v44 }
  0x7a   :  { %1713 = vmatmul.msk.f32.gmra.mxu1 %vm91_vm0, %v34_v44  ;;  %1738 = vmatmul.msk.f32.gmra.mxu2 %vm91_vm0, %v59_v37 }
  0x7c   :  { %1695 = vmatmul.msk.f32.gmra.mxu3 %vm91_vm0, %v64_v47 }
  0x81   :  { %1666 = vmatmul.msk.f32.gmra.mxu0 %vm91_vm0, %v35_v46 }
  0x82   :  { %1714 = vmatmul.msk.f32.gmra.mxu1 %vm91_vm0, %v35_v46  ;;  %1739 = vmatmul.msk.f32.gmra.mxu2 %vm91_vm0, %v60_v39 }
  0x84   :  { %1696 = vmatmul.msk.f32.gmra.mxu3 %vm91_vm0, %v65_v49 }
  0x89   :  { %1667 = vmatmul.msk.f32.gmra.mxu0 %vm91_vm0, %v36_v48 }
  0x8a   :  { %1715 = vmatmul.msk.f32.gmra.mxu1 %vm91_vm0, %v36_v48  ;;  %1740 = vmatmul.msk.f32.gmra.mxu2 %vm91_vm0, %v61_v41 }
  0x8c   :  { %1697 = vmatmul.msk.f32.gmra.mxu3 %vm91_vm0, %v66_v53 }
  0x8e   :  { %v253_v50 = vpop.f32.mrf.mxu0 }
  0x8f   :  { %v414_v52 = vpop.f32.mrf.mxu1  ;;  %v254_v19 = vadd.f32 %v253_v50, %v2442_v13 }
  0x90   :  { %v415_v6 = vadd.f32 %v414_v52, %v2423_v1 }
  0x91   :  { %1668 = vmatmul.msk.f32.gmra.mxu0 %vm91_vm0, %v37_v51 }
  0x92   :  { %1716 = vmatmul.msk.f32.gmra.mxu1 %vm91_vm0, %v37_v51  ;;  %1741 = vmatmul.msk.f32.gmra.mxu2 %vm91_vm0, %v62_v43  ;;  %v1748_v7 = vmul.f32 -1.442695, %v415_v6 }
  0x94   :  { %1698 = vmatmul.msk.f32.gmra.mxu3 %vm91_vm0, %v67_v58  ;;  %1823 = vpow2.f32 %v1748_v7 }
  0x95   :  { %v337_v54 = vpop.f32.mrf.mxu2 }
  0x96   :  { %v256_v55 = vpop.f32.mrf.mxu0  ;;  %v338_v20 = vadd.f32 %v337_v54, %v2442_v13 }
  0x97   :  { %v417_v57 = vpop.f32.mrf.mxu1  ;;  %v2448_v17 = vpop.f32.mrf.mxu3  ;;  %v257_v23 = vadd.f32 %v256_v55, %v2442_v13 }
  0x98   :  { %v418_v8 = vadd.f32 %v417_v57, %v2423_v1 }
  0x99   :  { %1669 = vmatmul.msk.f32.gmra.mxu0 %vm91_vm0, %v38_v56 }
  0x9a   :  { %1717 = vmatmul.msk.f32.gmra.mxu1 %vm91_vm0, %v38_v56  ;;  %1742 = vmatmul.msk.f32.gmra.mxu2 %vm91_vm0, %v63_v45  ;;  %v1749_v15 = vmul.f32 -1.442695, %v418_v8  ;;  %v1824_v26 = vpop.eup %1823  ;;  %v43_v45 = vld [vmem:[%s3956_s0 + $0xb0] sm:$0xff] }
  0x9b   :  { %v2464_v32 = vadd.f32 1.0, %v1824_v26 }
  0x9c   :  { %1699 = vmatmul.msk.f32.gmra.mxu3 %vm91_vm0, %v2419_v0 }
  0x9d   :  { %v340_v59 = vpop.f32.mrf.mxu2 }
  0x9e   :  { %v2405_v60 = vpop.f32.mrf.mxu0  ;;  %v341_v36 = vadd.f32 %v340_v59, %v2442_v13 }
  0x9f   :  { %v420_v62 = vpop.f32.mrf.mxu1  ;;  %v2468_v34 = vpop.f32.mrf.mxu3  ;;  %v260_v39 = vadd.f32 %v2405_v60, %v2442_v13 }
  0xa0   :  { %v421_v18 = vadd.f32 %v420_v62, %v2423_v1 }
  0xa1   :  { %1670 = vmatmul.msk.f32.gmra.mxu0 %vm91_vm0, %v39_v61 }
  0xa2   :  { %1718 = vmatmul.msk.f32.gmra.mxu1 %vm91_vm0, %v39_v61  ;;  %1743 = vmatmul.msk.f32.gmra.mxu2 %vm91_vm0, %v64_v47  ;;  %v1750_v27 = vmul.f32 -1.442695, %v421_v18 }
  0xa5   :  { %v495_v2 = vpop.f32.mrf.mxu2 }
  0xa6   :  { %v2425_v3 = vpop.f32.mrf.mxu0  ;;  %v496_v29 = vadd.f32 %v495_v2, %v2423_v1 }
  0xa7   :  { %v423_v5 = vpop.f32.mrf.mxu1  ;;  %v263_v47 = vadd.f32 %v2425_v3, %v2442_v13  ;;  %v2501_v55 = vpop.f32.mrf.mxu3 }
  0xa8   :  { %v1775_v38 = vmul.f32 -1.442695, %v496_v29  ;;  %v424_v43 = vadd.f32 %v423_v5, %v2423_v1  ;;  %v44_v5 = vld [vmem:[%s3956_s0 + $0xb8] sm:$0xff] }
  0xa9   :  { %1671 = vmatmul.msk.f32.gmra.mxu0 %vm91_vm0, %v40_v4 }
  0xaa   :  { %1719 = vmatmul.msk.f32.gmra.mxu1 %vm91_vm0, %v40_v4  ;;  %1744 = vmatmul.msk.f32.gmra.mxu2 %vm91_vm0, %v65_v49 }
  0xad   :  { %v2435_v9 = vpop.f32.mrf.mxu2 }
  0xae   :  { %v2437_v10 = vpop.f32.mrf.mxu0  ;;  %v499_v57 = vadd.f32 %v2435_v9, %v2423_v1 }
  0xaf   :  { %v426_v12 = vpop.f32.mrf.mxu1  ;;  %v2544_v26 = vpop.f32.mrf.mxu3 }
  0xb0   :  { %v427_v14 = vadd.f32 %v426_v12, %v2423_v1  ;;  %v1776_v8 = vmul.f32 -1.442695, %v499_v57 }
  0xb1   :  { %1672 = vmatmul.msk.f32.gmra.mxu0 %vm91_vm0, %v41_v11 }
  0xb2   :  { %v1752_v16 = vmul.f32 -1.442695, %v427_v14  ;;  %1720 = vmatmul.msk.f32.gmra.mxu1 %vm91_vm0, %v41_v11  ;;  %1745 = vmatmul.msk.f32.gmra.mxu2 %vm91_vm0, %v66_v53  ;;  %v1751_v53 = vmul.f32 -1.442695, %v424_v43 }
  0xb4   :  { %1825 = vpow2.f32 %v1752_v16 }
  0xb5   :  { %1827 = vpow2.f32 %v1749_v15  ;;  %v2453_v21 = vpop.f32.mrf.mxu2 }
  0xb6   :  { %v2456_v24 = vpop.f32.mrf.mxu0  ;;  %1829 = vtanh.f32 %v254_v19  ;;  %v502_v19 = vadd.f32 %v2453_v21, %v2423_v1 }
  0xb7   :  { %v429_v28 = vpop.f32.mrf.mxu1  ;;  %1831 = vtanh.f32 %v338_v20  ;;  %v269_v21 = vadd.f32 %v2456_v24, %v2442_v13 }
  0xb8   :  { %v430_v30 = vadd.f32 %v429_v28, %v2423_v1  ;;  %1833 = vtanh.f32 %v257_v23  ;;  %v1777_v24 = vmul.f32 -1.442695, %v502_v19 }
  0xb9   :  { %1673 = vmatmul.msk.f32.gmra.mxu0 %vm91_vm0, %v42_v25  ;;  %1835 = vpow2.f32 %v1750_v27 }
  0xba   :  { %v1826_v31 = vpop.eup %1825  ;;  %v1753_v33 = vmul.f32 -1.442695, %v430_v30  ;;  %1721 = vmatmul.msk.f32.gmra.mxu1 %vm91_vm0, %v42_v25  ;;  %1746 = vmatmul.msk.f32.gmra.mxu2 %vm91_vm0, %v67_v58  ;;  %v266_v58 = vadd.f32 %v2437_v10, %v2442_v13 }
  0xbb   :  { %v1828_v35 = vpop.eup %1827  ;;  %v2471_v37 = vadd.f32 1.0, %v1826_v31 }
  0xbc   :  { %1837 = vpow2.f32 %v1753_v33  ;;  %v2478_v41 = vpop.eup %1829  ;;  %v2481_v42 = vadd.f32 1.0, %v1828_v35 }
  0xbd   :  { %1839 = vrcp.f32 %v2471_v37  ;;  %v2476_v40 = vpop.f32.mrf.mxu2  ;;  %4010 = vst [vmem:[#allocation5_spill] sm:$0xff] %v2478_v41  ;;  %v2489_v46 = vpop.eup %1831  ;;  %v869_v10 = vand.u32 2147483648, %v2471_v37  ;;  %v867_v20 = vand.u32 2147483647, %v2471_v37  ;;  %vm863_vm2 = vweird.f32 %v2471_v37 }
  0xbe   :  { %1841 = vrcp.f32 %v2464_v32  ;;  %v2484_v44 = vpop.f32.mrf.mxu0  ;;  %v2493_v49 = vpop.eup %1833 }
  0xbf   :  { %1843 = vtanh.f32 %v341_v36  ;;  %v432_v48 = vpop.f32.mrf.mxu1  ;;  %4011 = vst [vmem:[#allocation6_spill] sm:$0xff] %v2493_v49  ;;  %v1836_v51 = vpop.eup %1835  ;;  %v870_v36 = vor.u32 1.1754944e-38, %v869_v10  ;;  %vm868_vm4 = vcmp.eq.f32.partialorder %v867_v20, 8.507059e+37 }
  0xc0   :  { %1845 = vpow2.f32 %v1775_v38  ;;  %v433_v50 = vadd.f32 %v432_v48, %v2423_v1  ;;  %v2517_v63 = vadd.f32 1.0, %v1836_v51 }
  0xc1   :  { %1847 = vtanh.f32 %v260_v39  ;;  %1674 = vmatmul.msk.f32.gmra.mxu0 %vm91_vm0, %v43_v45  ;;  %v505_v39 = vadd.f32 %v2476_v40, %v2423_v1 }
  0xc2   :  { %v1838_v52 = vpop.eup %1837  ;;  %1849 = vrcp.f32 %v2481_v42  ;;  %v1754_v54 = vmul.f32 -1.442695, %v433_v50  ;;  %1722 = vmatmul.msk.f32.gmra.mxu1 %vm91_vm0, %v43_v45  ;;  %1747 = vmatmul.msk.f32.gmra.mxu2 %vm91_vm0, %v2419_v0  ;;  %v45_v45 = vld [vmem:[%s3956_s0 + $0xc0] sm:$0xff] }
  0xc3   :  { %v2503_v56 = vpop.eup %1839  ;;  %1851 = vtanh.f32 %v263_v47  ;;  %v2509_v59 = vadd.f32 1.0, %v1838_v52 }
  0xc4   :  { %v2511_v60 = vpop.eup %1841  ;;  %1853 = vpow2.f32 %v1754_v54  ;;  %v859_v61 = vmul.f32 %v2503_v56, %v2471_v37  ;;  %vm864_vm1 = vweird.f32 %v2503_v56 }
  0xc5   :  { %v2515_v62 = vpop.eup %1843  ;;  %1855 = vrcp.f32 %v2509_v59  ;;  %v507_v0 = vpop.f32.mrf.mxu2  ;;  %vm2556_vm3 = vmor %vm863_vm2, %vm864_vm1  ;;  %v884_v40 = vand.u32 2147483648, %v2509_v59  ;;  %vm878_vm6 = vweird.f32 %v2509_v59 }
  0xc6   :  { %v1846_v2 = vpop.eup %1845  ;;  %1857 = vpow2.f32 %v1751_v53  ;;  %v508_v3 = vadd.f32 %v507_v0, %v2423_v1  ;;  %v2521_v4 = vpop.f32.mrf.mxu0  ;;  %v860_v6 = vsub.f32 1.0, %v859_v61  ;;  %v882_v61 = vand.u32 2147483647, %v2509_v59 }
  0xc7   :  { %v2526_v7 = vpop.eup %1847  ;;  %1859 = vtanh.f32 %v266_v58  ;;  %v435_v9 = vpop.f32.mrf.mxu1  ;;  %v2537_v18 = vadd.f32 1.0, %v1846_v2  ;;  %v1778_v2 = vmul.f32 -1.442695, %v505_v39  ;;  %v885_v20 = vor.u32 1.1754944e-38, %v884_v40 }
  0xc8   :  { %4012 = vst [vmem:[#allocation7_spill] sm:$0xff] %v2526_v7  ;;  %v2529_v11 = vpop.eup %1849  ;;  %v1779_v12 = vmul.f32 -1.442695, %v508_v3  ;;  %v436_v14 = vadd.f32 %v435_v9, %v2423_v1  ;;  %v861_v15 = vmul.f32 %v2503_v56, %v860_v6  ;;  %1861 = vrcp.f32 %v2517_v63 }
  0xc9   :  { %v2534_v16 = vpop.eup %1851  ;;  %1675 = vmatmul.msk.f32.gmra.mxu0 %vm91_vm0, %v44_v5  ;;  %vm883_vm8 = vcmp.eq.f32.partialorder %v882_v61, 8.507059e+37  ;;  %v275_v40 = vadd.f32 %v2521_v4, %v2442_v13 }
  0xca   :  { %4013 = vst [vmem:[#allocation8_spill] sm:$0xff] %v2534_v16  ;;  %v1854_v23 = vpop.eup %1853  ;;  %1863 = vpow2.f32 %v1779_v12  ;;  %v1755_v25 = vmul.f32 -1.442695, %v436_v14  ;;  %1723 = vmatmul.msk.f32.gmra.mxu1 %vm91_vm0, %v44_v5  ;;  %v862_v27 = vadd.f32 %v2503_v56, %v861_v15  ;;  %v2589_v5 = vpop.f32.mrf.mxu3  ;;  %v344_v12 = vadd.f32 %v2448_v17, %v2442_v13 }
  0xcb   :  { %v2548_v28 = vpop.eup %1855  ;;  %1865 = vpow2.f32 %v1776_v8  ;;  %v2552_v29 = vadd.f32 1.0, %v1854_v23  ;;  %v272_v17 = vadd.f32 %v2484_v44, %v2442_v13 }
  0xcc   :  { %v1858_v31 = vpop.eup %1857  ;;  %1867 = vpow2.f32 %v1755_v25  ;;  %v874_v33 = vmul.f32 %v2548_v28, %v2509_v59  ;;  %v866_v35 = vsel %vm2556_vm3, %v2503_v56, %v862_v27  ;;  %vm879_vm5 = vweird.f32 %v2548_v28 }
  0xcd   :  { %v1860_v37 = vpop.eup %1859  ;;  %1869 = vrcp.f32 %v2552_v29  ;;  %v2566_v38 = vpop.f32.mrf.mxu2  ;;  %v871_v48 = vsel %vm868_vm4, %v870_v36, %v866_v35  ;;  %v2595_v9 = vadd.f32 1.0, %v1858_v31  ;;  %vm2604_vm7 = vmor %vm878_vm6, %vm879_vm5  ;;  %v897_v39 = vand.u32 2147483647, %v2552_v29 }
  0xce   :  { %1871 = vrcp.f32 %v2537_v18  ;;  %v2571_v43 = vpop.f32.mrf.mxu0  ;;  %v875_v47 = vsub.f32 1.0, %v874_v33  ;;  %v2576_v50 = vpop.eup %1861  ;;  %v2578_v52 = vmul.f32 %v1860_v37, %v871_v48  ;;  %vm893_vm10 = vweird.f32 %v2552_v29 }
  0xcf   :  { %1873 = vtanh.f32 %v269_v21  ;;  %v438_v51 = vpop.f32.mrf.mxu1  ;;  %4017 = vst [vmem:[#allocation10_spill] sm:$0xff] %v2595_v9  ;;  %v46_v21 = vld [vmem:[%s3956_s0 + $0xc8] sm:$0xff]  ;;  %vm898_vm12 = vcmp.eq.f32.partialorder %v897_v39, 8.507059e+37 }
  0xd0   :  { %4016 = vst [vmem:[#allocation9_spill] sm:$0xff] %v2578_v52  ;;  %v1864_v53 = vpop.eup %1863  ;;  %v439_v54 = vadd.f32 %v438_v51, %v2423_v1  ;;  %v876_v56 = vmul.f32 %v2548_v28, %v875_v47  ;;  %1875 = vpow2.f32 %v1777_v24 }
  0xd1   :  { %v1866_v57 = vpop.eup %1865  ;;  %v2584_v58 = vadd.f32 1.0, %v1864_v53  ;;  %1676 = vmatmul.msk.f32.gmra.mxu0 %vm91_vm0, %v45_v45 }
  0xd2   :  { %v1868_v0 = vpop.eup %1867  ;;  %v1756_v3 = vmul.f32 -1.442695, %v439_v54  ;;  %1724 = vmatmul.msk.f32.gmra.mxu1 %vm91_vm0, %v45_v45  ;;  %v877_v6 = vadd.f32 %v2548_v28, %v876_v56  ;;  %v2626_v33 = vadd.f32 1.0, %v1866_v57  ;;  %v899_v45 = vand.u32 2147483648, %v2552_v29  ;;  %v2640_v53 = vpop.f32.mrf.mxu3 }
  0xd3   :  { %v2593_v8 = vpop.eup %1869  ;;  %1877 = vrcp.f32 %v2584_v58  ;;  %v2598_v10 = vadd.f32 1.0, %v1868_v0  ;;  %vm1268_vm2 = vweird.f32 %v2584_v58 }
  0xd4   :  { %v2608_v15 = vpop.eup %1871  ;;  %1879 = vpow2.f32 %v1756_v3  ;;  %v889_v59 = vmul.f32 %v2593_v8, %v2552_v29  ;;  %v881_v19 = vsel %vm2604_vm7, %v2548_v28, %v877_v6  ;;  %vm894_vm9 = vweird.f32 %v2593_v8  ;;  %v47_v29 = vld [vmem:[%s3956_s0 + $0xd0] sm:$0xff] }
  0xd5   :  { %v1874_v23 = vpop.eup %1873  ;;  %1881 = vrcp.f32 %v2598_v10  ;;  %v2618_v25 = vpop.f32.mrf.mxu2  ;;  %v886_v31 = vsel %vm883_vm8, %v885_v20, %v881_v19  ;;  %v347_v6 = vadd.f32 %v2468_v34, %v2442_v13  ;;  %vm895_vm11 = vmor %vm893_vm10, %vm894_vm9  ;;  %v900_v4 = vor.u32 1.1754944e-38, %v899_v45 }
  0xd6   :  { %1883 = vpow2.f32 %v1778_v2  ;;  %v2620_v27 = vpop.f32.mrf.mxu0  ;;  %v890_v30 = vsub.f32 1.0, %v889_v59  ;;  %v1876_v28 = vpop.eup %1875  ;;  %v2628_v35 = vmul.f32 %v1874_v23, %v886_v31  ;;  %v511_v34 = vadd.f32 %v2566_v38, %v2423_v1 }
  0xd7   :  { %1885 = vrcp.f32 %v2595_v9  ;;  %v441_v44 = vpop.f32.mrf.mxu1  ;;  %v2653_v3 = vadd.f32 1.0, %v1876_v28  ;;  %vm908_vm14 = vweird.f32 %v2598_v10 }
  0xd8   :  { %4020 = vst [vmem:[#allocation11_spill] sm:$0xff] %v2628_v35  ;;  %1887 = vtanh.f32 %v344_v12  ;;  %v442_v36 = vadd.f32 %v441_v44, %v2423_v1  ;;  %v891_v37 = vmul.f32 %v2593_v8, %v890_v30  ;;  %v914_v44 = vand.u32 2147483648, %v2598_v10 }
  0xd9   :  { %v2632_v24 = vpop.eup %1877  ;;  %1889 = vtanh.f32 %v272_v17  ;;  %1677 = vmatmul.msk.f32.gmra.mxu0 %vm91_vm0, %v46_v21  ;;  %v1242_v16 = vand.u32 2147483647, %v2653_v3 }
  0xda   :  { %v1880_v47 = vpop.eup %1879  ;;  %v1264_v48 = vmul.f32 %v2632_v24, %v2584_v58  ;;  %v1757_v51 = vmul.f32 -1.442695, %v442_v36  ;;  %1725 = vmatmul.msk.f32.gmra.mxu1 %vm91_vm0, %v46_v21  ;;  %v892_v54 = vadd.f32 %v2593_v8, %v891_v37  ;;  %1891 = vrcp.f32 %v2626_v33  ;;  %v2681_v38 = vpop.f32.mrf.mxu3 }
  0xdb   :  { %v1882_v56 = vpop.eup %1881  ;;  %v2647_v57 = vadd.f32 1.0, %v1880_v47  ;;  %vm1269_vm3 = vweird.f32 %v2632_v24 }
  0xdc   :  { %v1884_v61 = vpop.eup %1883  ;;  %1893 = vpow2.f32 %v1757_v51  ;;  %v904_v0 = vmul.f32 %v1882_v56, %v2598_v10  ;;  %v1265_v59 = vsub.f32 1.0, %v1264_v48  ;;  %v896_v23 = vsel %vm895_vm11, %v2593_v8, %v892_v54  ;;  %vm2726_vm5 = vmor %vm1268_vm2, %vm1269_vm3 }
  0xdd   :  { %v2651_v2 = vpop.eup %1885  ;;  %1895 = vrcp.f32 %v2647_v57  ;;  %v2658_v12 = vpop.f32.mrf.mxu2  ;;  %v2668_v21 = vadd.f32 1.0, %v1884_v61  ;;  %v901_v31 = vsel %vm898_vm12, %v900_v4, %v896_v23  ;;  %vm909_vm13 = vweird.f32 %v1882_v56 }
  0xde   :  { %v2660_v14 = vpop.eup %1887  ;;  %v2662_v19 = vpop.f32.mrf.mxu0  ;;  %v905_v20 = vsub.f32 1.0, %v904_v0  ;;  %1897 = vtanh.f32 %v275_v40  ;;  %v912_v8 = vand.u32 2147483647, %v2598_v10  ;;  %v1266_v47 = vmul.f32 %v2632_v24, %v1265_v59  ;;  %vm910_vm15 = vmor %vm908_vm14, %vm909_vm13 }
  0xdf   :  { %v1890_v17 = vpop.eup %1889  ;;  %v444_v30 = vpop.f32.mrf.mxu1  ;;  %1899 = vtanh.f32 %v347_v6  ;;  %v278_v51 = vadd.f32 %v2571_v43, %v2442_v13  ;;  %v1780_v40 = vmul.f32 -1.442695, %v511_v34  ;;  %v915_v6 = vor.u32 1.1754944e-38, %v914_v44 }
  0xe0   :  { %v906_v28 = vmul.f32 %v1882_v56, %v905_v20  ;;  %v2673_v36 = vmul.f32 %v1890_v17, %v901_v31  ;;  %v2675_v37 = vpop.eup %1891  ;;  %1901 = vrcp.f32 %v2653_v3  ;;  %v514_v4 = vadd.f32 %v2618_v25, %v2423_v1 }
  0xe1   :  { %1678 = vmatmul.msk.f32.gmra.mxu0 %vm91_vm0, %v47_v29  ;;  %1903 = vrcp.f32 %v2668_v21  ;;  %vm913_vm1 = vcmp.eq.f32.partialorder %v912_v8, 8.507059e+37  ;;  %v1267_v23 = vadd.f32 %v2632_v24, %v1266_v47  ;;  %v350_v25 = vadd.f32 %v2501_v55, %v2442_v13 }
  0xe2   :  { %4021 = vst [vmem:[#allocation12_spill] sm:$0xff] %v2673_v36  ;;  %v1894_v39 = vpop.eup %1893  ;;  %1726 = vmatmul.msk.f32.gmra.mxu1 %vm91_vm0, %v47_v29  ;;  %v907_v45 = vadd.f32 %v1882_v56, %v906_v28  ;;  %v1274_v31 = vand.u32 2147483648, %v2584_v58  ;;  %v929_v8 = vand.u32 2147483648, %v2647_v57  ;;  %v445_v55 = vadd.f32 %v444_v30, %v2423_v1 }
  0xe3   :  { %v2685_v48 = vpop.eup %1895  ;;  %v2690_v54 = vadd.f32 1.0, %v1894_v39  ;;  %v1272_v39 = vand.u32 2147483647, %v2584_v58  ;;  %v927_v47 = vand.u32 2147483647, %v2647_v57  ;;  %vm923_vm6 = vweird.f32 %v2647_v57 }
  0xe4   :  { %v919_v61 = vmul.f32 %v2685_v48, %v2647_v57  ;;  %v911_v0 = vsel %vm910_vm15, %v1882_v56, %v907_v45  ;;  %v1898_v10 = vpop.eup %1897  ;;  %vm924_vm4 = vweird.f32 %v2685_v48  ;;  %v517_v58 = vadd.f32 %v2658_v12, %v2423_v1 }
  0xe5   :  { %1905 = vrcp.f32 %v2690_v54  ;;  %v2698_v59 = vpop.f32.mrf.mxu2  ;;  %v916_v20 = vsel %vm913_vm1, %v915_v6, %v911_v0  ;;  %v1900_v56 = vpop.eup %1899  ;;  %v281_v6 = vadd.f32 %v2620_v27, %v2442_v13  ;;  %vm1273_vm7 = vcmp.eq.f32.partialorder %v1272_v39, 8.507059e+37 }
  0xe6   :  { %v2701_v43 = vpop.f32.mrf.mxu0  ;;  %v920_v29 = vsub.f32 1.0, %v919_v61  ;;  %1907 = vtanh.f32 %v278_v51  ;;  %v2707_v34 = vmul.f32 %v1898_v10, %v916_v20  ;;  %v2710_v28 = vpop.eup %1901  ;;  %v1781_v61 = vmul.f32 -1.442695, %v514_v4 }
  0xe7   :  { %v447_v17 = vpop.f32.mrf.mxu1  ;;  %v2716_v45 = vpop.eup %1903  ;;  %1909 = vpow2.f32 %v1780_v40  ;;  %v1275_v4 = vor.u32 1.1754944e-38, %v1274_v31  ;;  %v1758_v20 = vmul.f32 -1.442695, %v445_v55  ;;  %vm928_vm8 = vcmp.eq.f32.partialorder %v927_v47, 8.507059e+37 }
  0xe8   :  { %4022 = vst [vmem:[#allocation13_spill] sm:$0xff] %v2707_v34  ;;  %v921_v44 = vmul.f32 %v2685_v48, %v920_v29  ;;  %v2730_v0 = vpop.f32.mrf.mxu3  ;;  %1911 = vtanh.f32 %v350_v25  ;;  %v930_v29 = vor.u32 1.1754944e-38, %v929_v8  ;;  %v1249_v12 = vmul.f32 %v2716_v45, %v2668_v21 }
  0xe9   :  { %1679 = vmatmul.msk.f32.gmra.mxu0 %vm91_vm0, %v2245_v22  ;;  %v1271_v22 = vsel %vm2726_vm5, %v2632_v24, %v1267_v23  ;;  %vm2743_vm0 = vmor %vm923_vm6, %vm924_vm4  ;;  %1913 = vpow2.f32 %v1781_v61  ;;  %v448_v31 = vadd.f32 %v447_v17, %v2423_v1  ;;  %v353_v8 = vadd.f32 %v2544_v26, %v2442_v13 }
  0xea   :  { %v922_v40 = vadd.f32 %v2685_v48, %v921_v44  ;;  %v1276_v25 = vsel %vm1273_vm7, %v1275_v4, %v1271_v22  ;;  %1915 = vtanh.f32 %v281_v6  ;;  %v944_v47 = vand.u32 2147483648, %v2690_v54 }
  0xeb   :  { %v1906_v30 = vpop.eup %1905  ;;  %v2763_v61 = vmul.f32 %v1900_v56, %v1276_v25  ;;  %1917 = vpow2.f32 %v1758_v20  ;;  %v356_v22 = vadd.f32 %v2589_v5, %v2442_v13  ;;  %v942_v6 = vand.u32 2147483647, %v2690_v54 }
  0xec   :  { %v934_v57 = vmul.f32 %v1906_v30, %v2690_v54  ;;  %v926_v24 = vsel %vm2743_vm0, %v2685_v48, %v922_v40  ;;  %v1908_v27 = vpop.eup %1907  ;;  %v1782_v48 = vmul.f32 -1.442695, %v517_v58  ;;  %vm939_vm9 = vweird.f32 %v1906_v30 }
  0xed   :  { %v2753_v23 = vpop.f32.mrf.mxu2  ;;  %v931_v52 = vsel %vm928_vm8, %v930_v29, %v926_v24  ;;  %v1910_v10 = vpop.eup %1909  ;;  %4028 = vst [vmem:[#allocation15_spill] sm:$0xff] %v2763_v61  ;;  %v1250_v58 = vsub.f32 1.0, %v1249_v12  ;;  %v520_v26 = vadd.f32 %v2698_v59, %v2423_v1  ;;  %vm938_vm10 = vweird.f32 %v2690_v54 }
  0xee   :  { %v2756_v44 = vpop.f32.mrf.mxu0  ;;  %v935_v51 = vsub.f32 1.0, %v934_v57  ;;  %v2760_v40 = vmul.f32 %v1908_v27, %v931_v52  ;;  %v2765_v17 = vpop.eup %1911  ;;  %v1759_v52 = vmul.f32 -1.442695, %v448_v31  ;;  %v2775_v56 = vadd.f32 1.0, %v1910_v10  ;;  %vm2780_vm11 = vmor %vm938_vm10, %vm939_vm9 }
  0xef   :  { %v450_v39 = vpop.f32.mrf.mxu1  ;;  %4029 = vst [vmem:[#allocation16_spill] sm:$0xff] %v2765_v17  ;;  %1919 = vtanh.f32 %v353_v8  ;;  %v359_v24 = vadd.f32 %v2640_v53, %v2442_v13  ;;  %v1914_v29 = vpop.eup %1913  ;;  %v945_v12 = vor.u32 1.1754944e-38, %v944_v47  ;;  %v284_v20 = vadd.f32 %v2662_v19, %v2442_v13 }
  0xf0   :  { %4027 = vst [vmem:[#allocation14_spill] sm:$0xff] %v2760_v40  ;;  %v936_v55 = vmul.f32 %v1906_v30, %v935_v51  ;;  %v2772_v4 = vpop.f32.mrf.mxu3  ;;  %1921 = vpow2.f32 %v1782_v48  ;;  %v451_v59 = vadd.f32 %v450_v39, %v2423_v1  ;;  %v1916_v54 = vpop.eup %1915  ;;  %vm943_vm12 = vcmp.eq.f32.partialorder %v942_v6, 8.507059e+37 }
  0xf1   :  { %4030 = vst [vmem:[#allocation17_spill] sm:$0xff] %v2775_v56  ;;  %1923 = vtanh.f32 %v356_v22  ;;  %v1251_v53 = vmul.f32 %v2716_v45, %v1250_v58  ;;  %v1783_v31 = vmul.f32 -1.442695, %v520_v26  ;;  %v1918_v48 = vpop.eup %1917  ;;  %v799_v19 = vmul.f32 %v2511_v60, %v2464_v32 }
  0xf2   :  { %v937_v57 = vadd.f32 %v1906_v30, %v936_v55  ;;  %1925 = vpow2.f32 %v1759_v52  ;;  %v1760_v55 = vmul.f32 -1.442695, %v451_v59  ;;  %vm1253_vm13 = vweird.f32 %v2668_v21 }
  0xf3   :  { %1927 = vrcp.f32 %v2775_v56  ;;  %v362_v6 = vadd.f32 %v2681_v38, %v2442_v13  ;;  %v1252_v58 = vadd.f32 %v2716_v45, %v1251_v53  ;;  %vm1254_vm14 = vweird.f32 %v2716_v45 }
  0xf4   :  { %v941_v27 = vsel %vm2780_vm11, %v1906_v30, %v937_v57  ;;  %v2795_v30 = vadd.f32 1.0, %v1914_v29  ;;  %1929 = vtanh.f32 %v359_v24  ;;  %v523_v52 = vadd.f32 %v2753_v23, %v2423_v1  ;;  %vm2826_vm15 = vmor %vm1253_vm13, %vm1254_vm14 }
  0xf5   :  { %v2789_v25 = vpop.f32.mrf.mxu2  ;;  %v946_v10 = vsel %vm943_vm12, %v945_v12, %v941_v27  ;;  %v2803_v22 = vpop.eup %1919  ;;  %1931 = vtanh.f32 %v284_v20  ;;  %v1259_v24 = vand.u32 2147483648, %v2668_v21  ;;  %v2817_v59 = vadd.f32 1.0, %v1918_v48 }
  0xf6   :  { %v2792_v51 = vpop.f32.mrf.mxu0  ;;  %4033 = vst [vmem:[#allocation18_spill] sm:$0xff] %v2795_v30  ;;  %v2797_v39 = vmul.f32 %v1916_v54, %v946_v10  ;;  %v1922_v26 = vpop.eup %1921  ;;  %1933 = vpow2.f32 %v1783_v31  ;;  %v800_v38 = vsub.f32 1.0, %v799_v19  ;;  %v1257_v27 = vand.u32 2147483647, %v2668_v21 }
  0xf7   :  { %v453_v8 = vpop.f32.mrf.mxu1  ;;  %4035 = vst [vmem:[#allocation20_spill] sm:$0xff] %v2803_v22  ;;  %v2814_v29 = vpop.eup %1923  ;;  %1935 = vrcp.f32 %v2795_v30  ;;  %v287_v54 = vadd.f32 %v2701_v43, %v2442_v13  ;;  %v2832_v53 = vadd.f32 1.0, %v1922_v26  ;;  %v807_v10 = vand.u32 2147483647, %v2464_v32 }
  0xf8   :  { %4034 = vst [vmem:[#allocation19_spill] sm:$0xff] %v2797_v39  ;;  %v454_v47 = vadd.f32 %v453_v8, %v2423_v1  ;;  %v2811_v5 = vpop.f32.mrf.mxu3  ;;  %v1926_v12 = vpop.eup %1925  ;;  %1937 = vpow2.f32 %v1760_v55  ;;  %v1256_v43 = vsel %vm2826_vm15, %v2716_v45, %v1252_v58  ;;  %v1784_v21 = vmul.f32 -1.442695, %v523_v52 }
  0xf9   :  { %4036 = vst [vmem:[#allocation21_spill] sm:$0xff] %v2814_v29  ;;  %v2830_v20 = vpop.eup %1927  ;;  %1939 = vtanh.f32 %v362_v6  ;;  %v809_v19 = vand.u32 2147483648, %v2464_v32  ;;  %v1260_v55 = vor.u32 1.1754944e-38, %v1259_v24  ;;  %v2848_v6 = vadd.f32 1.0, %v1926_v12 }
  0xfa   :  { %v1761_v57 = vmul.f32 -1.442695, %v454_v47  ;;  %4039 = vst [vmem:[#allocation22_spill] sm:$0xff] %v2830_v20  ;;  %v2840_v48 = vpop.eup %1929  ;;  %v801_v17 = vmul.f32 %v2511_v60, %v800_v38  ;;  %vm1258_vm1 = vcmp.eq.f32.partialorder %v1257_v27, 8.507059e+37  ;;  %vm804_vm2 = vweird.f32 %v2511_v60 }
  0xfb   :  { %4040 = vst [vmem:[#allocation23_spill] sm:$0xff] %v2832_v53  ;;  %v2845_v47 = vpop.eup %1931  ;;  %v1261_v52 = vsel %vm1258_vm1, %v1260_v55, %v1256_v43  ;;  %v365_v24 = vadd.f32 %v2730_v0, %v2442_v13  ;;  %v814_v12 = vmul.f32 %v2529_v11, %v2481_v42  ;;  %v526_v23 = vadd.f32 %v2789_v25, %v2423_v1 }
  0xfc   :  { %4041 = vst [vmem:[#allocation24_spill] sm:$0xff] %v2840_v48  ;;  %1941 = vpow2.f32 %v1761_v57  ;;  %v1934_v45 = vpop.eup %1933  ;;  %v2861_v38 = vmul.f32 %v2660_v14, %v1261_v52  ;;  %v824_v14 = vand.u32 2147483648, %v2481_v42  ;;  %v802_v52 = vadd.f32 %v2511_v60, %v801_v17 }
  0xfd   :  { %v2834_v31 = vpop.f32.mrf.mxu2  ;;  %1943 = vrcp.f32 %v2817_v59  ;;  %v2853_v57 = vpop.eup %1935  ;;  %v2871_v0 = vadd.f32 1.0, %v1934_v45  ;;  %vm803_vm3 = vweird.f32 %v2464_v32  ;;  %vm2879_vm4 = vcmp.eq.f32.partialorder %v807_v10, 8.507059e+37 }
  0xfe   :  { %v2842_v8 = vpop.f32.mrf.mxu0  ;;  %1945 = vtanh.f32 %v287_v54  ;;  %4042 = vst [vmem:[#allocation25_spill] sm:$0xff] %v2853_v57  ;;  %v1938_v27 = vpop.eup %1937  ;;  %v290_v54 = vadd.f32 %v2756_v44, %v2442_v13  ;;  %v368_v44 = vadd.f32 %v2772_v4, %v2442_v13  ;;  %v815_v29 = vsub.f32 1.0, %v814_v12  ;;  %vm2898_vm5 = vmor %vm803_vm3, %vm804_vm2 }
  0xff   :  { %v456_v26 = vpop.f32.mrf.mxu1  ;;  %1947 = vrcp.f32 %v2832_v53  ;;  %4043 = vst [vmem:[#allocation26_spill] sm:$0xff] %v2861_v38  ;;  %v2885_v45 = vadd.f32 1.0, %v1938_v27  ;;  %v810_v17 = vor.u32 1.1754944e-38, %v809_v19  ;;  %v1234_v4 = vmul.f32 %v2710_v28, %v2653_v3 }
 0x100   :  { %v457_v58 = vadd.f32 %v456_v26, %v2423_v1  ;;  %1949 = vpow2.f32 %v1784_v21  ;;  %v2867_v55 = vpop.f32.mrf.mxu3  ;;  %v2869_v26 = vpop.eup %1939  ;;  %4045 = vst [vmem:[#allocation28_spill] sm:$0xff] %v2871_v0  ;;  %v1785_v32 = vmul.f32 -1.442695, %v526_v23  ;;  %v2960_v25 = vmul.f32 %v2651_v2, %v2595_v9 }
 0x101   :  { %4044 = vst [vmem:[#allocation27_spill] sm:$0xff] %v2869_v26  ;;  %1951 = vrcp.f32 %v2848_v6  ;;  %v2907_v26 = vor.u32 1.1754944e-38, %v824_v14  ;;  %v529_v14 = vadd.f32 %v2834_v31, %v2423_v1  ;;  %vm1238_vm6 = vweird.f32 %v2653_v3 }
 0x102   :  { %v1762_v43 = vmul.f32 -1.442695, %v457_v58  ;;  %v1942_v21 = vpop.eup %1941  ;;  %vm1239_vm0 = vweird.f32 %v2710_v28  ;;  %vm1243_vm8 = vcmp.eq.f32.partialorder %v1242_v16, 8.507059e+37  ;;  %vm1223_vm10 = vweird.f32 %v2626_v33 }
 0x103   :  { %v2883_v58 = vpop.eup %1943  ;;  %v2905_v19 = vadd.f32 1.0, %v1942_v21  ;;  %4051 = vst [vmem:[#allocation30_spill] sm:$0xff] %v2907_v26  ;;  %v2923_v21 = vmul.f32 %v2576_v50, %v2517_v63  ;;  %vm3013_vm7 = vmor %vm1238_vm6, %vm1239_vm0  ;;  %vm1224_vm11 = vweird.f32 %v2675_v37 }
 0x104   :  { %1953 = vpow2.f32 %v1762_v43  ;;  %v2889_v48 = vpop.eup %1945  ;;  %v949_v38 = vmul.f32 %v2883_v58, %v2817_v59  ;;  %vm3070_vm14 = vmor %vm1223_vm10, %vm1224_vm11  ;;  %vm968_vm10 = vweird.f32 %v2848_v6 }
 0x105   :  { %v2887_v22 = vpop.f32.mrf.mxu2  ;;  %1955 = vtanh.f32 %v365_v24  ;;  %v2902_v24 = vpop.eup %1947  ;;  %vm998_vm13 = vweird.f32 %v2905_v19 }
 0x106   :  { %1957 = vtanh.f32 %v290_v54  ;;  %v2893_v10 = vpop.f32.mrf.mxu0  ;;  %4050 = vst [vmem:[#allocation29_spill] sm:$0xff] %v2902_v24  ;;  %v806_v54 = vsel %vm2898_vm5, %v2511_v60, %v802_v52  ;;  %v1950_v23 = vpop.eup %1949  ;;  %v816_v60 = vmul.f32 %v2529_v11, %v815_v29  ;;  %v371_v29 = vadd.f32 %v2811_v5, %v2442_v13 }
 0x107   :  { %1959 = vrcp.f32 %v2871_v0  ;;  %v459_v12 = vpop.f32.mrf.mxu1  ;;  %v2916_v35 = vpop.eup %1951  ;;  %v2930_v36 = vadd.f32 1.0, %v1950_v23  ;;  %v1786_v23 = vmul.f32 -1.442695, %v529_v14 }
 0x108   :  { %v460_v43 = vadd.f32 %v459_v12, %v2423_v1  ;;  %1961 = vtanh.f32 %v368_v44  ;;  %v293_v44 = vadd.f32 %v2792_v51, %v2442_v13  ;;  %v1235_v12 = vsub.f32 1.0, %v1234_v4 }
 0x109   :  { %1963 = vrcp.f32 %v2885_v45  ;;  %4053 = vst [vmem:[#allocation32_spill] sm:$0xff] %v2930_v36  ;;  %v950_v51 = vsub.f32 1.0, %v949_v38  ;;  %v2944_v4 = vsel %vm2879_vm4, %v810_v17, %v806_v54  ;;  %v964_v34 = vmul.f32 %v2916_v35, %v2848_v6 }
 0x10a   :  { %v1954_v52 = vpop.eup %1953  ;;  %1965 = vpow2.f32 %v1785_v32  ;;  %v1763_v27 = vmul.f32 -1.442695, %v460_v43  ;;  %v2940_v32 = vpop.f32.mrf.mxu3  ;;  %4054 = vst [vmem:[#allocation33_spill] sm:$0xff] %v2944_v4  ;;  %v1236_v54 = vmul.f32 %v2710_v28, %v1235_v12  ;;  %vm983_vm4 = vweird.f32 %v2885_v45 }
 0x10b   :  { %v2928_v61 = vpop.eup %1955  ;;  %1967 = vrcp.f32 %v2905_v19  ;;  %v2933_v31 = vadd.f32 1.0, %v1954_v52  ;;  %v2974_v12 = vmul.f32 %v2883_v58, %v950_v51 }
 0x10c   :  { %4052 = vst [vmem:[#allocation31_spill] sm:$0xff] %v2928_v61  ;;  %v2936_v0 = vpop.eup %1957  ;;  %1969 = vpow2.f32 %v1763_v27  ;;  %v2952_v27 = vadd.f32 %v2529_v11, %v816_v60  ;;  %v1219_v61 = vmul.f32 %v2675_v37, %v2626_v33 }
 0x10d   :  { %v2946_v43 = vpop.eup %1959  ;;  %1971 = vrcp.f32 %v2933_v31  ;;  %v534_v52 = vpop.f32.mrf.mxu2  ;;  %vm1013_vm9 = vweird.f32 %v2933_v31 }
 0x10e   :  { %4055 = vst [vmem:[#allocation34_spill] sm:$0xff] %v2946_v43  ;;  %v2954_v5 = vpop.eup %1961  ;;  %1973 = vtanh.f32 %v293_v44  ;;  %v2956_v38 = vpop.f32.mrf.mxu0  ;;  %v965_v44 = vsub.f32 1.0, %v964_v34  ;;  %v1244_v34 = vand.u32 2147483648, %v2653_v3  ;;  %v1220_v20 = vsub.f32 1.0, %v1219_v61 }
 0x10f   :  { %4056 = vst [vmem:[#allocation35_spill] sm:$0xff] %v2954_v5  ;;  %v2964_v14 = vpop.eup %1963  ;;  %1975 = vrcp.f32 %v2930_v36  ;;  %v462_v60 = vpop.f32.mrf.mxu1  ;;  %v296_v36 = vadd.f32 %v2842_v8, %v2442_v13  ;;  %v1237_v5 = vadd.f32 %v2710_v28, %v1236_v54  ;;  %v532_v8 = vadd.f32 %v2887_v22, %v2423_v1 }
 0x110   :  { %v1966_v43 = vpop.eup %1965  ;;  %1977 = vtanh.f32 %v371_v29  ;;  %v979_v29 = vmul.f32 %v2964_v14, %v2885_v45  ;;  %v374_v54 = vadd.f32 %v2867_v55, %v2442_v13  ;;  %vm984_vm1 = vweird.f32 %v2964_v14 }
 0x111   :  { %v2976_v53 = vpop.eup %1967  ;;  %1979 = vpow2.f32 %v1786_v23  ;;  %v2988_v17 = vadd.f32 1.0, %v1966_v43  ;;  %v1241_v49 = vsel %vm3013_vm7, %v2710_v28, %v1237_v5  ;;  %v1787_v41 = vmul.f32 -1.442695, %v532_v8 }
 0x112   :  { %v1970_v30 = vpop.eup %1969  ;;  %v994_v56 = vmul.f32 %v2976_v53, %v2905_v19  ;;  %v3023_v7 = vpop.f32.mrf.mxu3  ;;  %v980_v40 = vsub.f32 1.0, %v979_v29  ;;  %v463_v29 = vadd.f32 %v462_v60, %v2423_v1  ;;  %vm999_vm0 = vweird.f32 %v2976_v53 }
 0x113   :  { %v2986_v51 = vpop.eup %1971  ;;  %4057 = vst [vmem:[#allocation36_spill] sm:$0xff] %v2988_v17  ;;  %v2992_v23 = vadd.f32 1.0, %v1970_v30  ;;  %v535_v30 = vadd.f32 %v534_v52, %v2423_v1  ;;  %v299_v52 = vadd.f32 %v2893_v10, %v2442_v13  ;;  %vm3116_vm11 = vmor %vm998_vm13, %vm999_vm0  ;;  %vm833_vm0 = vweird.f32 %v2517_v63 }
 0x114   :  { %v2995_v24 = vpop.eup %1973  ;;  %v1009_v57 = vmul.f32 %v2986_v51, %v2933_v31  ;;  %v995_v26 = vsub.f32 1.0, %v994_v56  ;;  %v3037_v8 = vmul.f32 %v2964_v14, %v980_v40  ;;  %v1764_v60 = vmul.f32 -1.442695, %v463_v29 }
 0x115   :  { %v3002_v43 = vpop.eup %1975  ;;  %1981 = vrcp.f32 %v2992_v23  ;;  %v537_v22 = vpop.f32.mrf.mxu2  ;;  %v1788_v39 = vmul.f32 -1.442695, %v535_v30  ;;  %vm1014_vm12 = vweird.f32 %v2986_v51  ;;  %v1229_v29 = vand.u32 2147483648, %v2626_v33 }
 0x116   :  { %4058 = vst [vmem:[#allocation37_spill] sm:$0xff] %v3002_v43  ;;  %v3017_v61 = vpop.eup %1977  ;;  %1983 = vtanh.f32 %v296_v36  ;;  %v3021_v43 = vpop.f32.mrf.mxu0  ;;  %v1245_v36 = vor.u32 1.1754944e-38, %v1244_v34  ;;  %v1010_v10 = vsub.f32 1.0, %v1009_v57  ;;  %v538_v30 = vadd.f32 %v537_v22, %v2423_v1  ;;  %vm3087_vm3 = vmor %vm1013_vm9, %vm1014_vm12 }
 0x117   :  { %4061 = vst [vmem:[#allocation38_spill] sm:$0xff] %v3017_v61  ;;  %v1980_v3 = vpop.eup %1979  ;;  %1985 = vrcp.f32 %v2988_v17  ;;  %v465_v4 = vpop.f32.mrf.mxu1  ;;  %v3030_v61 = vmul.f32 %v2916_v35, %v965_v44  ;;  %v1230_v17 = vor.u32 1.1754944e-38, %v1229_v29  ;;  %vm1028_vm2 = vweird.f32 %v2992_v23 }
 0x118   :  { %4062 = vst [vmem:[#allocation39_spill] sm:$0xff] %v3021_v43  ;;  %1987 = vtanh.f32 %v374_v54  ;;  %v1221_v43 = vmul.f32 %v2675_v37, %v1220_v20  ;;  %v1246_v55 = vsel %vm1243_vm8, %v1245_v36, %v1241_v49  ;;  %v3039_v34 = vadd.f32 1.0, %v1980_v3 }
 0x119   :  { %1989 = vtanh.f32 %v299_v52  ;;  %v3043_v16 = vmul.f32 %v2515_v62, %v1246_v55  ;;  %v1011_v56 = vmul.f32 %v2986_v51, %v1010_v10  ;;  %v996_v54 = vmul.f32 %v2976_v53, %v995_v26 }
 0x11a   :  { %1991 = vpow2.f32 %v1787_v41  ;;  %v1222_v57 = vadd.f32 %v2675_v37, %v1221_v43  ;;  %v466_v43 = vadd.f32 %v465_v4, %v2423_v1  ;;  %v1032_v26 = vand.u32 2147483647, %v2992_v23  ;;  %v382_v4 = vpop.f32.mrf.mxu3 }
 0x11b   :  { %v1982_v44 = vpop.eup %1981  ;;  %4063 = vst [vmem:[#allocation40_spill] sm:$0xff] %v3043_v16  ;;  %1993 = vpow2.f32 %v1788_v39  ;;  %v1227_v39 = vand.u32 2147483647, %v2626_v33  ;;  %v1034_v10 = vand.u32 2147483648, %v2992_v23  ;;  %v1012_v28 = vadd.f32 %v2986_v51, %v1011_v56 }
 0x11c   :  { %v3045_v20 = vpop.eup %1983  ;;  %v1024_v49 = vmul.f32 %v1982_v44, %v2992_v23  ;;  %vm1029_vm15 = vweird.f32 %v1982_v44  ;;  %v1226_v5 = vsel %vm3070_vm14, %v2675_v37, %v1222_v57  ;;  %1995 = vpow2.f32 %v1764_v60 }
 0x11d   :  { %v3051_v40 = vpop.eup %1985  ;;  %v3053_v41 = vpop.f32.mrf.mxu2  ;;  %v1017_v16 = vand.u32 2147483647, %v2933_v31  ;;  %v1789_v33 = vmul.f32 -1.442695, %v538_v30  ;;  %vm1228_vm5 = vcmp.eq.f32.partialorder %v1227_v39, 8.507059e+37  ;;  %vm1030_vm6 = vmor %vm1028_vm2, %vm1029_vm15  ;;  %v1035_v57 = vor.u32 1.1754944e-38, %v1034_v10 }
 0x11e   :  { %4064 = vst [vmem:[#allocation41_spill] sm:$0xff] %v3051_v40  ;;  %v3057_v62 = vpop.eup %1987  ;;  %v3060_v52 = vpop.f32.mrf.mxu0  ;;  %v1025_v3 = vsub.f32 1.0, %v1024_v49  ;;  %v1019_v40 = vand.u32 2147483648, %v2933_v31  ;;  %v997_v60 = vadd.f32 %v2976_v53, %v996_v54  ;;  %v1231_v23 = vsel %vm1228_vm5, %v1230_v17, %v1226_v5  ;;  %vm3146_vm15 = vmor %vm983_vm4, %vm984_vm1 }
 0x11f   :  { %4065 = vst [vmem:[#allocation42_spill] sm:$0xff] %v3057_v62  ;;  %v468_v36 = vpop.f32.mrf.mxu1  ;;  %v1990_v55 = vpop.eup %1989  ;;  %v1765_v30 = vmul.f32 -1.442695, %v466_v43  ;;  %vm1033_vm7 = vcmp.eq.f32.partialorder %v1032_v26, 8.507059e+37  ;;  %v1016_v31 = vsel %vm3087_vm3, %v2986_v51, %v1012_v28  ;;  %vm969_vm8 = vweird.f32 %v2916_v35 }
 0x120   :  { %v1026_v49 = vmul.f32 %v1982_v44, %v1025_v3  ;;  %v1992_v62 = vpop.eup %1991  ;;  %v377_v29 = vadd.f32 %v2940_v32, %v2442_v13  ;;  %v1020_v10 = vor.u32 1.1754944e-38, %v1019_v40  ;;  %v3102_v54 = vmul.f32 %v2489_v46, %v1231_v23  ;;  %vm3181_vm4 = vmor %vm968_vm10, %vm969_vm8 }
 0x121   :  { %v1994_v37 = vpop.eup %1993  ;;  %v302_v17 = vadd.f32 %v2956_v38, %v2442_v13  ;;  %1997 = vpow2.f32 %v1789_v33  ;;  %vm1018_vm9 = vcmp.eq.f32.partialorder %v1017_v16, 8.507059e+37  ;;  %v3110_v28 = vadd.f32 1.0, %v1992_v62 }
 0x122   :  { %v1027_v9 = vadd.f32 %v1982_v44, %v1026_v49  ;;  %v1996_v51 = vpop.eup %1995  ;;  %1999 = vrcp.f32 %v3039_v34  ;;  %v982_v38 = vadd.f32 %v2964_v14, %v3037_v8  ;;  %v541_v16 = vadd.f32 %v3053_v41, %v2423_v1 }
 0x123   :  { %2001 = vpow2.f32 %v1765_v30  ;;  %v1001_v40 = vsel %vm3116_vm11, %v2976_v53, %v997_v60  ;;  %v380_v62 = vadd.f32 %v3023_v7, %v2442_v13  ;;  %vm954_vm12 = vweird.f32 %v2883_v58  ;;  %v385_v7 = vpop.f32.mrf.mxu3 }
 0x124   :  { %v1031_v3 = vsel %vm1030_vm6, %v1982_v44, %v1027_v9  ;;  %v1021_v44 = vsel %vm1018_vm9, %v1020_v10, %v1016_v31  ;;  %v3130_v43 = vadd.f32 1.0, %v1994_v37  ;;  %v469_v26 = vadd.f32 %v468_v36, %v2423_v1 }
 0x125   :  { %v543_v22 = vpop.f32.mrf.mxu2  ;;  %v1036_v39 = vsel %vm1033_vm7, %v1035_v57, %v1031_v3  ;;  %2003 = vtanh.f32 %v377_v29  ;;  %v4072_v8 = vand.u32 2147483648, %v2905_v19  ;;  %v3135_v41 = vadd.f32 1.0, %v1996_v51 }
 0x126   :  { %v3106_v9 = vpop.f32.mrf.mxu0  ;;  %v1533_v5 = vmul.f32 %v1990_v55, %v1036_v39  ;;  %2005 = vtanh.f32 %v302_v17  ;;  %v1532_v49 = vmul.f32 %v3045_v20, %v1021_v44  ;;  %v4074_v53 = vand.u32 2147483647, %v2905_v19 }
 0x127   :  { %v471_v32 = vpop.f32.mrf.mxu1  ;;  %v1005_v55 = vor.u32 1.1754944e-38, %v4072_v8  ;;  %4073 = vst [vmem:[#allocation43_spill] sm:$0xff] %v3135_v41  ;;  %vm953_vm14 = vweird.f32 %v2817_v59  ;;  %2007 = vrcp.f32 %v3110_v28  ;;  %v967_v20 = vadd.f32 %v2916_v35, %v3030_v61  ;;  %v1998_v56 = vpop.eup %1997 }
 0x128   :  { %1573 = vmatpush.xpose.msrb.mxu3 %v1533_v5  ;;  %vm1003_vm13 = vcmp.eq.f32.partialorder %v4074_v53, 8.507059e+37  ;;  %v383_v19 = vadd.f32 %v382_v4, %v2442_v13  ;;  %v1790_v37 = vmul.f32 -1.442695, %v541_v16  ;;  %v544_v57 = vadd.f32 %v543_v22, %v2423_v1  ;;  %v3158_v23 = vpop.eup %1999  ;;  %vm3218_vm6 = vmor %vm953_vm14, %vm954_vm12 }
 0x129   :  { %v1006_v33 = vsel %vm1003_vm13, %v1005_v55, %v1001_v40  ;;  %2009 = vtanh.f32 %v380_v62  ;;  %v986_v60 = vsel %vm3146_vm15, %v2964_v14, %v982_v38  ;;  %vm819_vm1 = vweird.f32 %v2529_v11  ;;  %v2002_v22 = vpop.eup %2001 }
 0x12a   :  { %2011 = vrcp.f32 %v3130_v43  ;;  %v1766_v30 = vmul.f32 -1.442695, %v469_v26  ;;  %v4077_v4 = vand.u32 2147483647, %v2885_v45  ;;  %v4078_v3 = vand.u32 2147483648, %v2885_v45 }
 0x12b   :  { %2013 = vrcp.f32 %v3135_v41  ;;  %v308_v14 = vadd.f32 %v3060_v52, %v2442_v13  ;;  %v472_v39 = vadd.f32 %v471_v32, %v2423_v1  ;;  %v1531_v10 = vmul.f32 %v2995_v24, %v1006_v33  ;;  %v3173_v17 = vpop.eup %2003 }
 0x12c   :  { %1574 = vmatpush.xpose.msrb.mxu3 %v1532_v49  ;;  %vm988_vm2 = vcmp.eq.f32.partialorder %v4077_v4, 8.507059e+37  ;;  %v990_v31 = vor.u32 1.1754944e-38, %v4078_v3  ;;  %vm818_vm3 = vweird.f32 %v2481_v42  ;;  %v3175_v5 = vadd.f32 1.0, %v1998_v56  ;;  %v3191_v44 = vpop.eup %2005 }
 0x12d   :  { %v546_v61 = vpop.f32.mrf.mxu2  ;;  %v4081_v32 = vand.u32 2147483647, %v2848_v6  ;;  %2015 = vtanh.f32 %v383_v19  ;;  %4084 = vst [vmem:[#allocation44_spill] sm:$0xff] %v3191_v44  ;;  %v1791_v46 = vmul.f32 -1.442695, %v544_v57  ;;  %v971_v38 = vsel %vm3181_vm4, %v2916_v35, %v967_v20  ;;  %v3198_v40 = vpop.eup %2007  ;;  %vm3258_vm10 = vmor %vm818_vm3, %vm819_vm1 }
 0x12e   :  { %v3169_v29 = vpop.f32.mrf.mxu0  ;;  %v991_v51 = vsel %vm988_vm2, %v990_v31, %v986_v60  ;;  %2017 = vpow2.f32 %v1790_v37  ;;  %v952_v16 = vadd.f32 %v2883_v58, %v2974_v12  ;;  %v3200_v62 = vadd.f32 1.0, %v2002_v22  ;;  %v388_v57 = vpop.f32.mrf.mxu3 }
 0x12f   :  { %v474_v45 = vpop.f32.mrf.mxu1  ;;  %vm3187_vm5 = vcmp.eq.f32.partialorder %v4081_v32, 8.507059e+37  ;;  %2019 = vpow2.f32 %v1766_v30  ;;  %v547_v26 = vadd.f32 %v546_v61, %v2423_v1  ;;  %v4086_v8 = vand.u32 2147483648, %v2848_v6  ;;  %v3205_v49 = vpop.eup %2009 }
 0x130   :  { %1575 = vmatpush.xpose.msrb.mxu3 %v1531_v10  ;;  %4085 = vst [vmem:[#allocation45_spill] sm:$0xff] %v3200_v62  ;;  %2021 = vtanh.f32 %v308_v14  ;;  %v1767_v53 = vmul.f32 -1.442695, %v472_v39  ;;  %v475_v33 = vadd.f32 %v474_v45, %v2423_v1  ;;  %v1530_v35 = vmul.f32 %v2936_v0, %v991_v51  ;;  %v3209_v36 = vpop.eup %2011 }
 0x131   :  { %v975_v55 = vor.u32 1.1754944e-38, %v4086_v8  ;;  %2023 = vrcp.f32 %v3175_v5  ;;  %v386_v20 = vadd.f32 %v385_v7, %v2442_v13  ;;  %v845_v19 = vsub.f32 1.0, %v2960_v25  ;;  %v3224_v0 = vpop.eup %2013 }
 0x132   :  { %4089 = vst [vmem:[#allocation46_spill] sm:$0xff] %v3224_v0  ;;  %2025 = vpow2.f32 %v1791_v46  ;;  %v311_v56 = vadd.f32 %v3106_v9, %v2442_v13  ;;  %v956_v37 = vsel %vm3218_vm6, %v2883_v58, %v952_v16  ;;  %v4090_v60 = vsub.f32 1.0, %v2923_v21 }
 0x133   :  { %v976_v12 = vsel %vm3187_vm5, %v975_v55, %v971_v38  ;;  %v3235_v7 = vpop.eup %2015  ;;  %2027 = vrcp.f32 %v3200_v62  ;;  %v1792_v25 = vmul.f32 -1.442695, %v547_v26  ;;  %v4091_v9 = vand.u32 2147483647, %v2817_v59 }
 0x134   :  { %1576 = vmatpush.xpose.msrb.mxu3 %v1530_v35  ;;  %v831_v30 = vmul.f32 %v2576_v50, %v4090_v60  ;;  %v4092_v4 = vand.u32 2147483648, %v2817_v59  ;;  %v4093_v58 = vand.u32 2147483647, %v2481_v42  ;;  %v2018_v31 = vpop.eup %2017  ;;  %2029 = vpow2.f32 %v1767_v53 }
 0x135   :  { %v549_v61 = vpop.f32.mrf.mxu2  ;;  %vm958_vm7 = vcmp.eq.f32.partialorder %v4091_v9, 8.507059e+37  ;;  %v1768_v22 = vmul.f32 -1.442695, %v475_v33  ;;  %v1529_v10 = vmul.f32 %v2889_v48, %v976_v12  ;;  %v2020_v45 = vpop.eup %2019  ;;  %2031 = vtanh.f32 %v386_v20 }
 0x136   :  { %v960_v3 = vor.u32 1.1754944e-38, %v4092_v4  ;;  %vm3244_vm8 = vcmp.eq.f32.partialorder %v4093_v58, 8.507059e+37  ;;  %v550_v14 = vadd.f32 %v549_v61, %v2423_v1  ;;  %v3249_v39 = vpop.f32.mrf.mxu0  ;;  %v846_v59 = vmul.f32 %v2651_v2, %v845_v19  ;;  %v3262_v24 = vpop.eup %2021 }
 0x137   :  { %v477_v51 = vpop.f32.mrf.mxu1  ;;  %vm834_vm9 = vweird.f32 %v2576_v50  ;;  %4098 = vst [vmem:[#allocation47_spill] sm:$0xff] %v3262_v24  ;;  %2033 = vtanh.f32 %v311_v56  ;;  %v4099_v38 = vand.u32 2147483647, %v2517_v63  ;;  %v821_v42 = vsel %vm3258_vm10, %v2529_v11, %v2952_v27  ;;  %v3275_v26 = vpop.eup %2023 }
 0x138   :  { %v961_v52 = vsel %vm958_vm7, %v960_v3, %v956_v37  ;;  %v1793_v48 = vmul.f32 -1.442695, %v550_v14  ;;  %v478_v46 = vadd.f32 %v477_v51, %v2423_v1  ;;  %1577 = vmatpush.xpose.msrb.mxu3 %v1529_v10  ;;  %v1204_v8 = vmul.f32 %v2608_v15, %v2537_v18  ;;  %v2026_v33 = vpop.eup %2025  ;;  %v4104_v37 = vld [vmem:[#allocation10_spill] sm:$0xff]  ;;  %vm3306_vm14 = vmor %vm833_vm0, %vm834_vm9 }
 0x139   :  { %vm3267_vm11 = vcmp.eq.f32.partialorder %v4099_v38, 8.507059e+37  ;;  %v3279_v55 = vadd.f32 1.0, %v2018_v31  ;;  %2035 = vpow2.f32 %v1792_v25  ;;  %v832_v53 = vadd.f32 %v2576_v50, %v831_v30  ;;  %v3285_v20 = vpop.eup %2027  ;;  %v391_v31 = vpop.f32.mrf.mxu3  ;;  %v4111_v14 = vld [vmem:[#allocation30_spill] sm:$0xff] }
 0x13a   :  { %v3282_v35 = vadd.f32 1.0, %v2020_v45  ;;  %2037 = vpow2.f32 %v1768_v22  ;;  %v1769_v12 = vmul.f32 -1.442695, %v478_v46  ;;  %v1528_v6 = vmul.f32 %v2845_v47, %v961_v52  ;;  %4103 = vst [vmem:[#allocation49_spill] sm:$0xff] %v3285_v20  ;;  %v2030_v19 = vpop.eup %2029  ;;  %v4121_v22 = vld [vmem:[#allocation17_spill] sm:$0xff] }
 0x13b   :  { %2039 = vpow2.f32 %v1793_v48  ;;  %v389_v11 = vadd.f32 %v388_v57, %v2442_v13  ;;  %v847_v27 = vadd.f32 %v2651_v2, %v846_v59  ;;  %vm849_vm12 = vweird.f32 %v2651_v2  ;;  %v3295_v25 = vpop.eup %2031 }
 0x13c   :  { %4102 = vst [vmem:[#allocation48_spill] sm:$0xff] %v3282_v35  ;;  %v314_v56 = vadd.f32 %v3169_v29, %v2442_v13  ;;  %2041 = vpow2.f32 %v1769_v12  ;;  %1578 = vmatpush.xpose.msrb.mxu3 %v1528_v6  ;;  %v854_v60 = vand.u32 2147483648, %v4104_v37  ;;  %v4105_v30 = vand.u32 2147483648, %v2517_v63  ;;  %v4120_v29 = vld [vmem:[#allocation6_spill] sm:$0xff] }
 0x13d   :  { %2043 = vrcp.f32 %v3279_v55  ;;  %v3298_v57 = vadd.f32 1.0, %v2026_v33  ;;  %v552_v61 = vpop.f32.mrf.mxu2  ;;  %vm848_vm13 = vweird.f32 %v4104_v37  ;;  %v852_v9 = vand.u32 2147483647, %v4104_v37  ;;  %v3310_v4 = vpop.eup %2033 }
 0x13e   :  { %v840_v47 = vor.u32 1.1754944e-38, %v4105_v30  ;;  %4108 = vst [vmem:[#allocation10_spill] sm:$0xff] %v3310_v4  ;;  %2045 = vrcp.f32 %v3282_v35  ;;  %v553_v3 = vadd.f32 %v552_v61, %v2423_v1  ;;  %v3314_v58 = vpop.f32.mrf.mxu0  ;;  %vm3318_vm15 = vmor %vm848_vm13, %vm849_vm12  ;;  %v836_v63 = vsel %vm3306_vm14, %v2576_v50, %v832_v53  ;;  %v4113_v50 = vld [vmem:[#allocation19_spill] sm:$0xff] }
 0x13f   :  { %v826_v10 = vsel %vm3244_vm8, %v4111_v14, %v821_v42  ;;  %v2036_v45 = vpop.eup %2035  ;;  %v3328_v51 = vadd.f32 1.0, %v2030_v19  ;;  %v480_v52 = vpop.f32.mrf.mxu1  ;;  %2047 = vtanh.f32 %v389_v11  ;;  %v851_v59 = vsel %vm3318_vm15, %v2651_v2, %v847_v27  ;;  %v4115_v19 = vld [vmem:[#allocation33_spill] sm:$0xff]  ;;  %v4119_v61 = vld [vmem:[#allocation7_spill] sm:$0xff] }
 0x140   :  { %v1205_v32 = vsub.f32 1.0, %v1204_v8  ;;  %v2038_v48 = vpop.eup %2037  ;;  %2049 = vtanh.f32 %v314_v56  ;;  %v1794_v46 = vmul.f32 -1.442695, %v553_v3  ;;  %v481_v38 = vadd.f32 %v480_v52, %v2423_v1  ;;  %1579 = vmatpush.xpose.msrb.mxu3 %v4113_v50  ;;  %v4116_v56 = vld [vmem:[#allocation5_spill] sm:$0xff] }
 0x141   :  { %4112 = vst [vmem:[#allocation30_spill] sm:$0xff] %v3328_v51  ;;  %v855_v53 = vor.u32 1.1754944e-38, %v854_v60  ;;  %v2040_v21 = vpop.eup %2039  ;;  %2051 = vrcp.f32 %v3298_v57  ;;  %v392_v42 = vadd.f32 %v391_v31, %v2442_v13  ;;  %vm853_vm1 = vcmp.eq.f32.partialorder %v852_v9, 8.507059e+37 }
 0x142   :  { %v841_v33 = vsel %vm3267_vm11, %v840_v47, %v836_v63  ;;  %v2042_v12 = vpop.eup %2041  ;;  %v3339_v2 = vadd.f32 1.0, %v2036_v45  ;;  %2053 = vpow2.f32 %v1794_v46  ;;  %v1770_v8 = vmul.f32 -1.442695, %v481_v38  ;;  %v4118_v47 = vld [vmem:[#allocation14_spill] sm:$0xff]  ;;  %v4128_v38 = vld [vmem:[#allocation25_spill] sm:$0xff] }
 0x143   :  { %v856_v6 = vsel %vm853_vm1, %v855_v53, %v851_v59  ;;  %v3341_v11 = vpop.eup %2043  ;;  %2055 = vrcp.f32 %v3328_v51  ;;  %v3344_v27 = vadd.f32 1.0, %v2038_v48  ;;  %v3348_v37 = vmul.f32 %v4116_v56, %v4115_v19  ;;  %v4122_v63 = vld [vmem:[#allocation22_spill] sm:$0xff]  ;;  %v4125_v59 = vld [vmem:[#allocation8_spill] sm:$0xff]  ;;  %v4131_v53 = vld [vmem:[#allocation29_spill] sm:$0xff] }
 0x144   :  { %v1206_v60 = vmul.f32 %v2608_v15, %v1205_v32  ;;  %v3351_v16 = vpop.eup %2045  ;;  %v3353_v30 = vadd.f32 1.0, %v2040_v21  ;;  %2057 = vpow2.f32 %v1770_v8  ;;  %1580 = vmatpush.xpose.msrb.mxu3 %v4118_v47  ;;  %v3357_v9 = vmul.f32 %v4119_v61, %v841_v33  ;;  %v4127_v46 = vld [vmem:[#allocation18_spill] sm:$0xff]  ;;  %v4136_v56 = vld [vmem:[#allocation32_spill] sm:$0xff]  ;;  %v4137_v47 = vld [vmem:[#allocation37_spill] sm:$0xff] }
 0x145   :  { %4114 = vst [vmem:[#allocation19_spill] sm:$0xff] %v3344_v27  ;;  %v3360_v3 = vmul.f32 %v4120_v29, %v826_v10  ;;  %v3362_v31 = vpop.eup %2047  ;;  %v3366_v14 = vmul.f32 %v4122_v63, %v4121_v22  ;;  %v3368_v45 = vadd.f32 1.0, %v2042_v12  ;;  %v555_v52 = vpop.f32.mrf.mxu2  ;;  %2059 = vtanh.f32 %v392_v42  ;;  %v4130_v10 = vld [vmem:[#allocation23_spill] sm:$0xff]  ;;  %v4133_v42 = vld [vmem:[#allocation28_spill] sm:$0xff]  ;;  %v4139_v63 = vld [vmem:[#allocation13_spill] sm:$0xff] }
 0x146   :  { %4117 = vst [vmem:[#allocation33_spill] sm:$0xff] %v3351_v16  ;;  %v3371_v32 = vmul.f32 %v4125_v59, %v856_v6  ;;  %v3373_v48 = vpop.eup %2049  ;;  %v3377_v50 = vmul.f32 %v4128_v38, %v4127_v46  ;;  %v3381_v21 = vmul.f32 %v4131_v53, %v4130_v10  ;;  %2061 = vrcp.f32 %v3339_v2  ;;  %v322_v12 = vpop.f32.mrf.mxu0  ;;  %v4134_v6 = vld [vmem:[#allocation34_spill] sm:$0xff]  ;;  %v4142_v46 = vld [vmem:[#allocation41_spill] sm:$0xff] }
 0x147   :  { %4123 = vst [vmem:[#allocation5_spill] sm:$0xff] %v3366_v14  ;;  %v556_v33 = vadd.f32 %v555_v52, %v2423_v1  ;;  %v3385_v8 = vpop.eup %2051  ;;  %v3389_v19 = vmul.f32 %v4134_v6, %v4133_v42  ;;  %v3393_v61 = vmul.f32 %v4137_v47, %v4136_v56  ;;  %2063 = vrcp.f32 %v3344_v27  ;;  %v483_v29 = vpop.f32.mrf.mxu1 }
 0x148   :  { %4124 = vst [vmem:[#allocation14_spill] sm:$0xff] %v3368_v45  ;;  %v1207_v59 = vadd.f32 %v2608_v15, %v1206_v60  ;;  %v2054_v44 = vpop.eup %2053  ;;  %2065 = vrcp.f32 %v3353_v30  ;;  %v484_v24 = vadd.f32 %v483_v29, %v2423_v1  ;;  %1581 = vmatpush.xpose.msrb.mxu3 %v4139_v63  ;;  %v394_v22 = vpop.f32.mrf.mxu3  ;;  %vm1208_vm2 = vweird.f32 %v2537_v18 }
 0x149   :  { %4126 = vst [vmem:[#allocation7_spill] sm:$0xff] %v3373_v48  ;;  %v1795_v52 = vmul.f32 -1.442695, %v556_v33  ;;  %v3401_v14 = vpop.eup %2055  ;;  %v317_v4 = vadd.f32 %v3249_v39, %v2442_v13  ;;  %2067 = vrcp.f32 %v3368_v45  ;;  %v3406_v38 = vadd.f32 1.0, %v2054_v44  ;;  %v4141_v33 = vld [vmem:[#allocation36_spill] sm:$0xff] }
 0x14a   :  { %4129 = vst [vmem:[#allocation6_spill] sm:$0xff] %v3377_v50  ;;  %vm1209_vm3 = vweird.f32 %v2608_v15  ;;  %v2058_v60 = vpop.eup %2057  ;;  %v3411_v29 = vmul.f32 %v4142_v46, %v4141_v33  ;;  %v1771_v63 = vmul.f32 -1.442695, %v484_v24  ;;  %v1214_v50 = vand.u32 2147483648, %v2537_v18  ;;  %v4144_v24 = vld [vmem:[#allocation39_spill] sm:$0xff] }
 0x14b   :  { %4132 = vst [vmem:[#allocation8_spill] sm:$0xff] %v3381_v21  ;;  %2069 = vpow2.f32 %v1795_v52  ;;  %v3414_v48 = vpop.eup %2059  ;;  %v3417_v39 = vadd.f32 1.0, %v2058_v60  ;;  %v395_v44 = vadd.f32 %v394_v22, %v2442_v13  ;;  %v1212_v53 = vand.u32 2147483647, %v2537_v18  ;;  %v4146_v60 = vld [vmem:[#allocation12_spill] sm:$0xff]  ;;  %vm3438_vm4 = vmor %vm1208_vm2, %vm1209_vm3 }
 0x14c   :  { %4135 = vst [vmem:[#allocation50_spill] sm:$0xff] %v3389_v19  ;;  %2071 = vrcp.f32 %v3406_v38  ;;  %v3421_v10 = vpop.eup %2061  ;;  %v3425_v21 = vmul.f32 %v3158_v23, %v3039_v34  ;;  %v3429_v52 = vadd.f32 %v4144_v24, %v2442_v13  ;;  %v320_v6 = vadd.f32 %v3314_v58, %v2442_v13  ;;  %1582 = vmatpush.xpose.msrb.mxu3 %v4146_v60 }
 0x14d   :  { %4138 = vst [vmem:[#allocation51_spill] sm:$0xff] %v3393_v61  ;;  %2073 = vpow2.f32 %v1771_v63  ;;  %v3442_v42 = vpop.eup %2063  ;;  %v3446_v24 = vmul.f32 %v3198_v40, %v3110_v28  ;;  %v323_v58 = vadd.f32 %v322_v12, %v2442_v13  ;;  %v1211_v63 = vsel %vm3438_vm4, %v2608_v15, %v1207_v59 }
 0x14e   :  { %4140 = vst [vmem:[#allocation13_spill] sm:$0xff] %v3401_v14  ;;  %2075 = vtanh.f32 %v317_v4  ;;  %v3452_v60 = vpop.eup %2065  ;;  %v3456_v18 = vmul.f32 %v3209_v36, %v3130_v43  ;;  %v325_v19 = vpop.f32.mrf.mxu0  ;;  %v1215_v4 = vor.u32 1.1754944e-38, %v1214_v50  ;;  %v3467_v12 = vmul.f32 %v3275_v26, %v3175_v5  ;;  %v4153_v50 = vld [vmem:[#allocation11_spill] sm:$0xff] }
 0x14f   :  { %4143 = vst [vmem:[#allocation36_spill] sm:$0xff] %v3417_v39  ;;  %2077 = vrcp.f32 %v3417_v39  ;;  %v3463_v47 = vpop.eup %2067  ;;  %v326_v15 = vadd.f32 %v325_v19, %v2442_v13  ;;  %v486_v59 = vpop.f32.mrf.mxu1  ;;  %vm1213_vm5 = vcmp.eq.f32.partialorder %v1212_v53, 8.507059e+37  ;;  %v3480_v61 = vmul.f32 %v3341_v11, %v3279_v55 }
 0x150   :  { %4145 = vst [vmem:[#allocation41_spill] sm:$0xff] %v3429_v52  ;;  %v3460_v52 = vmul.f32 %v3224_v0, %v3135_v41  ;;  %2079 = vtanh.f32 %v395_v44  ;;  %v3472_v41 = vmul.f32 %v3285_v20, %v3200_v62  ;;  %v487_v0 = vadd.f32 %v486_v59, %v2423_v1  ;;  %1583 = vmatpush.xpose.msrb.mxu3 %v4153_v50 }
 0x151   :  { %4149 = vst [vmem:[#allocation39_spill] sm:$0xff] %v3442_v42  ;;  %v2070_v22 = vpop.eup %2069  ;;  %2081 = vtanh.f32 %v320_v6  ;;  %v3484_v53 = vmul.f32 %v3351_v16, %v3282_v35  ;;  %v3490_v6 = vmul.f32 %v3385_v8, %v3298_v57  ;;  %v3497_v50 = vmul.f32 %v3401_v14, %v3328_v51 }
 0x152   :  { %4150 = vst [vmem:[#allocation12_spill] sm:$0xff] %v3460_v52  ;;  %v3476_v52 = vsel %vm1213_vm5, %v1215_v4, %v1211_v63  ;;  %v2072_v56 = vpop.eup %2071  ;;  %v3486_v19 = vadd.f32 1.0, %v2070_v22  ;;  %2083 = vtanh.f32 %v323_v58  ;;  %v1772_v4 = vmul.f32 -1.442695, %v487_v0 }
 0x153   :  { %4151 = vst [vmem:[#allocation52_spill] sm:$0xff] %v3463_v47  ;;  %v2074_v44 = vpop.eup %2073  ;;  %v1489_v63 = vmul.f32 %v2072_v56, %v3406_v38  ;;  %2085 = vtanh.f32 %v326_v15  ;;  %v1474_v22 = vmul.f32 %v3452_v60, %v3353_v30  ;;  %v3508_v20 = vmul.f32 %v3421_v10, %v3339_v2  ;;  %v4159_v15 = vld [vmem:[#allocation9_spill] sm:$0xff] }
 0x154   :  { %4152 = vst [vmem:[#allocation53_spill] sm:$0xff] %v3472_v41  ;;  %v3493_v59 = vpop.eup %2075  ;;  %2087 = vrcp.f32 %v3486_v19  ;;  %v3502_v58 = vadd.f32 1.0, %v2074_v44  ;;  %v3512_v0 = vmul.f32 %v3442_v42, %v3344_v27  ;;  %1584 = vmatpush.xpose.msrb.mxu3 %v4159_v15  ;;  %v3519_v44 = vmul.f32 %v3463_v47, %v3368_v45 }
 0x155   :  { %4154 = vst [vmem:[#allocation11_spill] sm:$0xff] %v3484_v53  ;;  %v3504_v62 = vpop.eup %2077  ;;  %2089 = vpow2.f32 %v1772_v4  ;;  %v1490_v41 = vsub.f32 1.0, %v1489_v63  ;;  %v1512_v35 = vand.u32 2147483647, %v3486_v19  ;;  %vm1493_vm6 = vweird.f32 %v3406_v38 }
 0x156   :  { %4155 = vst [vmem:[#allocation54_spill] sm:$0xff] %v3493_v59  ;;  %v3515_v16 = vpop.eup %2079  ;;  %2091 = vrcp.f32 %v3502_v58  ;;  %v328_v14 = vpop.f32.mrf.mxu0  ;;  %vm1508_vm0 = vweird.f32 %v3486_v19  ;;  %vm1494_vm7 = vweird.f32 %v2072_v56  ;;  %v1497_v63 = vand.u32 2147483647, %v3406_v38 }
 0x157   :  { %4156 = vst [vmem:[#allocation55_spill] sm:$0xff] %v3497_v50  ;;  %v3524_v53 = vpop.eup %2081  ;;  %v1491_v4 = vmul.f32 %v2072_v56, %v1490_v41  ;;  %v1499_v15 = vand.u32 2147483648, %v3406_v38  ;;  %v3533_v50 = vmul.f32 %v3504_v62, %v3417_v39  ;;  %v329_v59 = vadd.f32 %v328_v14, %v2442_v13  ;;  %v489_v42 = vpop.f32.mrf.mxu1  ;;  %vm1495_vm10 = vmor %vm1493_vm6, %vm1494_vm7 }
 0x158   :  { %4157 = vst [vmem:[#allocation56_spill] sm:$0xff] %v3504_v62  ;;  %v3529_v51 = vpop.eup %2083  ;;  %v1514_v27 = vand.u32 2147483648, %v3486_v19  ;;  %v490_v41 = vadd.f32 %v489_v42, %v2423_v1  ;;  %1585 = vmatpush.xpose.msrb.mxu3 %v3371_v32  ;;  %vm1478_vm8 = vweird.f32 %v3353_v30  ;;  %vm1479_vm9 = vweird.f32 %v3452_v60 }
 0x159   :  { %4158 = vst [vmem:[#allocation57_spill] sm:$0xff] %v3512_v0  ;;  %v1475_v0 = vsub.f32 1.0, %v1474_v22  ;;  %v1492_v47 = vadd.f32 %v2072_v56, %v1491_v4  ;;  %vm1498_vm11 = vcmp.eq.f32.partialorder %v1497_v63, 8.507059e+37  ;;  %v1500_v14 = vor.u32 1.1754944e-38, %v1499_v15  ;;  %vm1480_vm14 = vmor %vm1478_vm8, %vm1479_vm9  ;;  %v4174_v4 = vld [vmem:[#allocation40_spill] sm:$0xff] }
 0x15a   :  { %4160 = vst [vmem:[#allocation9_spill] sm:$0xff] %v3519_v44  ;;  %v1484_v44 = vand.u32 2147483648, %v3353_v30  ;;  %v1773_v32 = vmul.f32 -1.442695, %v490_v41  ;;  %vm3549_vm12 = vcmp.eq.f32.partialorder %v1512_v35, 8.507059e+37  ;;  %2093 = vtanh.f32 %v329_v59 }
 0x15b   :  { %4161 = vst [vmem:[#allocation58_spill] sm:$0xff] %v3524_v53  ;;  %v3537_v53 = vpop.eup %2085  ;;  %v1476_v22 = vmul.f32 %v3452_v60, %v1475_v0  ;;  %v1496_v62 = vsel %vm1495_vm10, %v2072_v56, %v1492_v47  ;;  %v1482_v39 = vand.u32 2147483647, %v3353_v30  ;;  %v1515_v35 = vor.u32 1.1754944e-38, %v1514_v27 }
 0x15c   :  { %4162 = vst [vmem:[#allocation59_spill] sm:$0xff] %v3529_v51  ;;  %v2088_v45 = vpop.eup %2087  ;;  %v1501_v63 = vsel %vm1498_vm11, %v1500_v14, %v1496_v62  ;;  %2095 = vpow2.f32 %v1773_v32  ;;  %1586 = vmatpush.xpose.msrb.mxu3 %v3357_v9  ;;  %v1485_v56 = vor.u32 1.1754944e-38, %v1484_v44  ;;  %v1460_v62 = vsub.f32 1.0, %v3508_v20 }
 0x15d   :  { %4163 = vst [vmem:[#allocation60_spill] sm:$0xff] %v3533_v50  ;;  %v2090_v51 = vpop.eup %2089  ;;  %v1504_v42 = vmul.f32 %v2088_v45, %v3486_v19  ;;  %v1477_v0 = vadd.f32 %v3452_v60, %v1476_v22  ;;  %vm1509_vm13 = vweird.f32 %v2088_v45  ;;  %v1564_v27 = vmul.f32 %v3414_v48, %v1501_v63 }
 0x15e   :  { %v3554_v50 = vpop.eup %2091  ;;  %v3556_v38 = vadd.f32 1.0, %v2090_v51  ;;  %v331_v59 = vpop.f32.mrf.mxu0  ;;  %vm1483_vm15 = vcmp.eq.f32.partialorder %v1482_v39, 8.507059e+37  ;;  %v1461_v22 = vmul.f32 %v3421_v10, %v1460_v62  ;;  %vm1463_vm1 = vweird.f32 %v3339_v2  ;;  %vm1510_vm2 = vmor %vm1508_vm0, %vm1509_vm13 }
 0x15f   :  { %v1505_v15 = vsub.f32 1.0, %v1504_v42  ;;  %v1481_v51 = vsel %vm1480_vm14, %v3452_v60, %v1477_v0  ;;  %v3569_v47 = vmul.f32 %v3554_v50, %v3502_v58  ;;  %v332_v41 = vadd.f32 %v331_v59, %v2442_v13  ;;  %v492_v30 = vpop.f32.mrf.mxu1 }
 0x160   :  { %2097 = vrcp.f32 %v3556_v38  ;;  %v1486_v14 = vsel %vm1483_vm15, %v1485_v56, %v1481_v51  ;;  %v493_v60 = vadd.f32 %v492_v30, %v2423_v1  ;;  %1587 = vmatpush.xpose.msrb.mxu3 %v3360_v3  ;;  %v1467_v44 = vand.u32 2147483647, %v3339_v2  ;;  %v3579_v32 = vpop.eup %2093  ;;  %v4170_v56 = vld [vmem:[#allocation15_spill] sm:$0xff] }
 0x161   :  { %v1506_v9 = vmul.f32 %v2088_v45, %v1505_v15  ;;  %v1469_v42 = vand.u32 2147483648, %v3339_v2  ;;  %v3585_v48 = vmul.f32 %v3362_v31, %v1486_v14  ;;  %v1462_v39 = vadd.f32 %v3421_v10, %v1461_v22 }
 0x162   :  { %vm1464_vm3 = vweird.f32 %v3421_v10  ;;  %v1445_v1 = vsub.f32 1.0, %v3490_v6  ;;  %v2096_v3 = vpop.eup %2095  ;;  %2099 = vtanh.f32 %v332_v41  ;;  %v1774_v63 = vmul.f32 -1.442695, %v493_v60 }
 0x163   :  { %v1507_v20 = vadd.f32 %v2088_v45, %v1506_v9  ;;  %vm1448_vm4 = vweird.f32 %v3298_v57  ;;  %v3593_v51 = vadd.f32 1.0, %v2096_v3  ;;  %vm1449_vm5 = vweird.f32 %v3385_v8  ;;  %vm3605_vm6 = vmor %vm1463_vm1, %vm1464_vm3 }
 0x164   :  { %v1446_v19 = vmul.f32 %v3385_v8, %v1445_v1  ;;  %2101 = vpow2.f32 %v1774_v63  ;;  %1588 = vmatpush.xpose.msrb.mxu3 %v3348_v37  ;;  %vm3609_vm0 = vcmp.eq.f32.partialorder %v1467_v44, 8.507059e+37  ;;  %v1466_v37 = vsel %vm3605_vm6, %v3421_v10, %v1462_v39  ;;  %vm3628_vm7 = vmor %vm1448_vm4, %vm1449_vm5 }
 0x165   :  { %v1511_v0 = vsel %vm1510_vm2, %v2088_v45, %v1507_v20  ;;  %2103 = vrcp.f32 %v3593_v51  ;;  %v1452_v2 = vand.u32 2147483647, %v3298_v57  ;;  %v1454_v10 = vand.u32 2147483648, %v3298_v57 }
 0x166   :  { %v3591_v15 = vpop.eup %2097  ;;  %v1516_v31 = vsel %vm3549_vm12, %v1515_v35, %v1511_v0  ;;  %v1470_v35 = vor.u32 1.1754944e-38, %v1469_v42  ;;  %v334_v59 = vpop.f32.mrf.mxu0  ;;  %v1430_v41 = vsub.f32 1.0, %v3480_v61  ;;  %vm1433_vm8 = vweird.f32 %v3279_v55  ;;  %v4173_v42 = vld [vmem:[#allocation26_spill] sm:$0xff] }
 0x167   :  { %v1565_v6 = vmul.f32 %v3515_v16, %v1516_v31  ;;  %v1447_v16 = vadd.f32 %v3385_v8, %v1446_v19  ;;  %v3622_v62 = vmul.f32 %v3591_v15, %v3556_v38  ;;  %v335_v30 = vadd.f32 %v334_v59, %v2442_v13 }
 0x168   :  { %1593 = vmatpush.xpose.msra.mxu3 %v4170_v56  ;;  %vm1434_vm9 = vweird.f32 %v3341_v11  ;;  %v1437_v22 = vand.u32 2147483647, %v3279_v55  ;;  %v3641_v60 = vpop.eup %2099  ;;  %v1455_v20 = vor.u32 1.1754944e-38, %v1454_v10  ;;  %v1431_v44 = vmul.f32 %v3341_v11, %v1430_v41 }
 0x169   :  { %1613 = vmatpush.xpose.msra.mxu2 %v1565_v6  ;;  %v1451_v14 = vsel %vm3628_vm7, %v3385_v8, %v1447_v16  ;;  %v1439_v57 = vand.u32 2147483648, %v3279_v55  ;;  %v1415_v61 = vsub.f32 1.0, %v3467_v12  ;;  %2105 = vtanh.f32 %v335_v30  ;;  %vm1435_vm13 = vmor %vm1433_vm8, %vm1434_vm9 }
 0x16a   :  { %v1471_v13 = vsel %vm3609_vm0, %v1470_v35, %v1466_v37  ;;  %vm1453_vm10 = vcmp.eq.f32.partialorder %v1452_v2, 8.507059e+37  ;;  %vm1418_vm11 = vweird.f32 %v3175_v5  ;;  %v2102_v8 = vpop.eup %2101  ;;  %v1432_v1 = vadd.f32 %v3341_v11, %v1431_v44 }
 0x16b   :  { %v1456_v39 = vsel %vm1453_vm10, %v1455_v20, %v1451_v14  ;;  %v1416_v3 = vmul.f32 %v3275_v26, %v1415_v61  ;;  %vm1419_vm12 = vweird.f32 %v3275_v26  ;;  %v3653_v63 = vpop.eup %2103  ;;  %v3655_v12 = vadd.f32 1.0, %v2102_v8  ;;  %v4179_v8 = vld [vmem:[#allocation42_spill] sm:$0xff] }
 0x16c   :  { %1594 = vmatpush.xpose.msra.mxu3 %v4173_v42  ;;  %v1440_v0 = vor.u32 1.1754944e-38, %v1439_v57  ;;  %v1422_v31 = vand.u32 2147483647, %v3175_v5  ;;  %v1436_v19 = vsel %vm1435_vm13, %v3341_v11, %v1432_v1  ;;  %vm1438_vm14 = vcmp.eq.f32.partialorder %v1437_v22, 8.507059e+37  ;;  %vm1420_vm15 = vmor %vm1418_vm11, %vm1419_vm12 }
 0x16d   :  { %1614 = vmatpush.xpose.msra.mxu2 %v1564_v27  ;;  %v1424_v27 = vand.u32 2147483648, %v3175_v5  ;;  %v1417_v6 = vadd.f32 %v3275_v26, %v1416_v3  ;;  %v1400_v45 = vsub.f32 1.0, %v3456_v18  ;;  %2107 = vrcp.f32 %v3655_v12 }
 0x16e   :  { %v1562_v35 = vmul.f32 %v3295_v25, %v1471_v13  ;;  %v1441_v55 = vsel %vm1438_vm14, %v1440_v0, %v1436_v19  ;;  %v1174_v11 = vmul.f32 %v3653_v63, %v3593_v51  ;;  %v1561_v18 = vmul.f32 %v3235_v7, %v1456_v39 }
 0x16f   :  { %v1425_v56 = vor.u32 1.1754944e-38, %v1424_v27  ;;  %v1421_v37 = vsel %vm1420_vm15, %v3275_v26, %v1417_v6  ;;  %vm1423_vm1 = vcmp.eq.f32.partialorder %v1422_v31, 8.507059e+37  ;;  %v2106_v16 = vpop.eup %2105  ;;  %v1199_v25 = vand.u32 2147483648, %v3655_v12 }
 0x170   :  { %1595 = vmatpush.xpose.msra.mxu3 %v4174_v4  ;;  %v1401_v59 = vmul.f32 %v3209_v36, %v1400_v45  ;;  %vm1403_vm2 = vweird.f32 %v3130_v43  ;;  %v1560_v5 = vmul.f32 %v3205_v49, %v1441_v55  ;;  %vm1404_vm3 = vweird.f32 %v3209_v36 }
 0x171   :  { %1615 = vmatpush.xpose.msra.mxu2 %v3585_v48  ;;  %v1426_v2 = vsel %vm1423_vm1, %v1425_v56, %v1421_v37  ;;  %v1197_v48 = vand.u32 2147483647, %v3655_v12  ;;  %v1545_v7 = vmul.f32 %v2106_v16, %v3476_v52  ;;  %v1407_v10 = vand.u32 2147483647, %v3130_v43  ;;  %vm3693_vm5 = vmor %vm1403_vm2, %vm1404_vm3  ;;  %v4180_v16 = vld [vmem:[#allocation38_spill] sm:$0xff] }
 0x172   :  { %v3683_v9 = vmul.f32 %v3173_v17, %v1426_v2  ;;  %v1402_v26 = vadd.f32 %v3209_v36, %v1401_v59  ;;  %v1409_v41 = vand.u32 2147483648, %v3130_v43  ;;  %vm1193_vm4 = vweird.f32 %v3655_v12 }
 0x173   :  { %v1200_v49 = vor.u32 1.1754944e-38, %v1199_v25  ;;  %v1175_v30 = vsub.f32 1.0, %v1174_v11  ;;  %vm1178_vm6 = vweird.f32 %v3593_v51  ;;  %vm1179_vm0 = vweird.f32 %v3653_v63 }
 0x174   :  { %1596 = vmatpush.xpose.msra.mxu3 %v3102_v54  ;;  %v2108_v54 = vpop.eup %2107  ;;  %v1406_v52 = vsel %vm3693_vm5, %v3209_v36, %v1402_v26  ;;  %v1410_v14 = vor.u32 1.1754944e-38, %v1409_v41  ;;  %v1182_v43 = vand.u32 2147483647, %v3593_v51  ;;  %v1184_v22 = vand.u32 2147483648, %v3593_v51  ;;  %vm1180_vm12 = vmor %vm1178_vm6, %vm1179_vm0 }
 0x175   :  { %1616 = vmatpush.xpose.msra.mxu2 %v1562_v35  ;;  %v1189_v20 = vmul.f32 %v2108_v54, %v3655_v12  ;;  %vm1194_vm7 = vweird.f32 %v2108_v54  ;;  %vm3705_vm8 = vcmp.eq.f32.partialorder %v1197_v48, 8.507059e+37  ;;  %vm1408_vm9 = vcmp.eq.f32.partialorder %v1407_v10, 8.507059e+37 }
 0x176   :  { %v1176_v57 = vmul.f32 %v3653_v63, %v1175_v30  ;;  %v1411_v61 = vsel %vm1408_vm9, %v1410_v14, %v1406_v52  ;;  %v1185_v42 = vor.u32 1.1754944e-38, %v1184_v22  ;;  %v1385_v36 = vsub.f32 1.0, %v3446_v24  ;;  %vm1195_vm3 = vmor %vm1193_vm4, %vm1194_vm7  ;;  %v4184_v14 = vld [vmem:[#allocation60_spill] sm:$0xff] }
 0x177   :  { %vm1388_vm10 = vweird.f32 %v3110_v28  ;;  %v1190_v13 = vsub.f32 1.0, %v1189_v20  ;;  %v1558_v39 = vmul.f32 %v4179_v8, %v1411_v61  ;;  %vm1389_vm11 = vweird.f32 %v3198_v40 }
 0x178   :  { %1597 = vmatpush.xpose.msra.mxu3 %v1545_v7  ;;  %v1177_v1 = vadd.f32 %v3653_v63, %v1176_v57  ;;  %v1386_v3 = vmul.f32 %v3198_v40, %v1385_v36  ;;  %v1392_v0 = vand.u32 2147483647, %v3110_v28  ;;  %v1394_v24 = vand.u32 2147483648, %v3110_v28  ;;  %vm1390_vm2 = vmor %vm1388_vm10, %vm1389_vm11  ;;  %v4185_v57 = vld [vmem:[#allocation36_spill] sm:$0xff] }
 0x179   :  { %1617 = vmatpush.xpose.msra.mxu2 %v1561_v18  ;;  %v1160_v31 = vsub.f32 1.0, %v3622_v62  ;;  %v1191_v27 = vmul.f32 %v2108_v54, %v1190_v13  ;;  %vm1183_vm13 = vcmp.eq.f32.partialorder %v1182_v43, 8.507059e+37  ;;  %vm1163_vm14 = vweird.f32 %v3556_v38  ;;  %v4187_v13 = vld [vmem:[#allocation59_spill] sm:$0xff] }
 0x17a   :  { %v1181_v19 = vsel %vm1180_vm12, %v3653_v63, %v1177_v1  ;;  %v1387_v45 = vadd.f32 %v3198_v40, %v1386_v3  ;;  %vm1393_vm15 = vcmp.eq.f32.partialorder %v1392_v0, 8.507059e+37  ;;  %vm1164_vm1 = vweird.f32 %v3591_v15  ;;  %v4188_v1 = vld [vmem:[#allocation51_spill] sm:$0xff]  ;;  %v4189_v0 = vld [vmem:[#allocation32_spill] sm:$0xff] }
 0x17b   :  { %v1186_v6 = vsel %vm1183_vm13, %v1185_v42, %v1181_v19  ;;  %v1192_v51 = vadd.f32 %v2108_v54, %v1191_v27  ;;  %v1395_v62 = vor.u32 1.1754944e-38, %v1394_v24  ;;  %v1161_v4 = vmul.f32 %v3591_v15, %v1160_v31  ;;  %vm1165_vm4 = vmor %vm1163_vm14, %vm1164_vm1  ;;  %v4190_v27 = vld [vmem:[#allocation37_spill] sm:$0xff]  ;;  %v4191_v19 = vld [vmem:[#allocation31_spill] sm:$0xff] }
 0x17c   :  { %v1167_v63 = vand.u32 2147483647, %v3556_v38  ;;  %v1391_v35 = vsel %vm1390_vm2, %v3198_v40, %v1387_v45  ;;  %v1169_v55 = vand.u32 2147483648, %v3556_v38  ;;  %v1370_v56 = vsub.f32 1.0, %v3425_v21 }
 0x17d   :  { %1618 = vmatpush.xpose.msra.mxu2 %v1560_v5  ;;  %vm1373_vm5 = vweird.f32 %v3039_v34  ;;  %v1196_v11 = vsel %vm1195_vm3, %v2108_v54, %v1192_v51  ;;  %v1396_v28 = vsel %vm1393_vm15, %v1395_v62, %v1391_v35  ;;  %v1162_v18 = vadd.f32 %v3591_v15, %v1161_v4  ;;  %v4192_v4 = vld [vmem:[#allocation9_spill] sm:$0xff]  ;;  %v4193_v35 = vld [vmem:[#allocation14_spill] sm:$0xff] }
 0x17e   :  { %vm1168_vm6 = vcmp.eq.f32.partialorder %v1167_v63, 8.507059e+37  ;;  %v1201_v37 = vsel %vm3705_vm8, %v1200_v49, %v1196_v11  ;;  %v1557_v2 = vmul.f32 %v4180_v16, %v1396_v28  ;;  %v1170_v40 = vor.u32 1.1754944e-38, %v1169_v55  ;;  %v4181_v49 = vld [vmem:[#allocation35_spill] sm:$0xff]  ;;  %v4194_v11 = vld [vmem:[#allocation52_spill] sm:$0xff] }
 0x17f   :  { %v1371_v21 = vmul.f32 %v3158_v23, %v1370_v56  ;;  %v1544_v12 = vmul.f32 %v3641_v60, %v1201_v37  ;;  %v1166_v25 = vsel %vm1165_vm4, %v3591_v15, %v1162_v18  ;;  %vm1374_vm0 = vweird.f32 %v3158_v23 }
 0x180   :  { %v1377_v59 = vand.u32 2147483647, %v3039_v34  ;;  %v1171_v5 = vsel %vm1168_vm6, %v1170_v40, %v1166_v25  ;;  %v1379_v7 = vand.u32 2147483648, %v3039_v34  ;;  %v1145_v38 = vsub.f32 1.0, %v3569_v47  ;;  %vm1375_vm7 = vmor %vm1373_vm5, %vm1374_vm0 }
 0x181   :  { %1619 = vmatpush.xpose.msra.mxu2 %v3683_v9  ;;  %v1372_v48 = vadd.f32 %v3158_v23, %v1371_v21  ;;  %1598 = vmatpush.xpose.msra.mxu3 %v1544_v12  ;;  %v1543_v26 = vmul.f32 %v3579_v32, %v1186_v6  ;;  %v1542_v9 = vmul.f32 %v3537_v53, %v1171_v5  ;;  %vm1149_vm9 = vweird.f32 %v3554_v50  ;;  %v4196_v12 = vld [vmem:[#allocation50_spill] sm:$0xff] }
 0x182   :  { %vm1378_vm8 = vcmp.eq.f32.partialorder %v1377_v59, 8.507059e+37  ;;  %v1380_v60 = vor.u32 1.1754944e-38, %v1379_v7  ;;  %v1146_v10 = vmul.f32 %v3554_v50, %v1145_v38  ;;  %v1152_v41 = vand.u32 2147483647, %v3502_v58  ;;  %v4197_v59 = vld [vmem:[#allocation28_spill] sm:$0xff]  ;;  %v4198_v38 = vld [vmem:[#allocation34_spill] sm:$0xff] }
 0x183   :  { %v1376_v15 = vsel %vm1375_vm7, %v3158_v23, %v1372_v48  ;;  %vm1148_vm10 = vweird.f32 %v3502_v58  ;;  %v1154_v47 = vand.u32 2147483648, %v3502_v58  ;;  %v1355_v53 = vsub.f32 1.0, %v3411_v29 }
 0x184   :  { %vm1358_vm11 = vweird.f32 %v4141_v33  ;;  %v1381_v34 = vsel %vm1378_vm8, %v1380_v60, %v1376_v15  ;;  %v1147_v32 = vadd.f32 %v3554_v50, %v1146_v10  ;;  %vm1359_vm12 = vweird.f32 %v4142_v46  ;;  %vm1150_vm13 = vmor %vm1148_vm10, %vm1149_vm9 }
 0x185   :  { %1620 = vmatpush.xpose.msra.mxu2 %v1558_v39  ;;  %v1362_v23 = vand.u32 2147483647, %v4141_v33  ;;  %1599 = vmatpush.xpose.msra.mxu3 %v1543_v26  ;;  %v1556_v17 = vmul.f32 %v4181_v49, %v1381_v34  ;;  %v1155_v30 = vor.u32 1.1754944e-38, %v1154_v47  ;;  %v1356_v58 = vmul.f32 %v4142_v46, %v1355_v53  ;;  %vm1360_vm2 = vmor %vm1358_vm11, %vm1359_vm12  ;;  %v4199_v26 = vld [vmem:[#allocation27_spill] sm:$0xff]  ;;  %v4200_v47 = vld [vmem:[#allocation57_spill] sm:$0xff] }
 0x186   :  { %v1364_v29 = vand.u32 2147483648, %v4141_v33  ;;  %v1151_v54 = vsel %vm1150_vm13, %v3554_v50, %v1147_v32  ;;  %vm1153_vm14 = vcmp.eq.f32.partialorder %v1152_v41, 8.507059e+37  ;;  %v1130_v43 = vsub.f32 1.0, %v4184_v14  ;;  %v4186_v50 = vld [vmem:[#allocation56_spill] sm:$0xff]  ;;  %v4201_v34 = vld [vmem:[#allocation19_spill] sm:$0xff]  ;;  %v3839_v32 = vld [vmem:[%s3959_s3] sm:$0xff] }
 0x187   :  { %vm3778_vm15 = vcmp.eq.f32.partialorder %v1362_v23, 8.507059e+37  ;;  %v1156_v22 = vsel %vm1153_vm14, %v1155_v30, %v1151_v54  ;;  %v1357_v20 = vadd.f32 %v4142_v46, %v1356_v58  ;;  %vm1133_vm1 = vweird.f32 %v4185_v57  ;;  %v4202_v30 = vld [vmem:[#allocation39_spill] sm:$0xff]  ;;  %1589 = vmatmul.f32.vlgmr.msrb.gmra.mxu3 %v3839_v32  ;;  %v4203_v58 = vld [vmem:[#allocation54_spill] sm:$0xff] }
 0x188   :  { %v1365_v44 = vor.u32 1.1754944e-38, %v1364_v29  ;;  %v1131_v61 = vmul.f32 %v4186_v50, %v1130_v43  ;;  %vm1134_vm3 = vweird.f32 %v4186_v50  ;;  %v1137_v42 = vand.u32 2147483647, %v4185_v57 }
 0x189   :  { %1621 = vmatpush.xpose.msra.mxu2 %v1557_v2  ;;  %v1139_v36 = vand.u32 2147483648, %v4185_v57  ;;  %1600 = vmatpush.xpose.msra.mxu3 %v1542_v9  ;;  %v1541_v8 = vmul.f32 %v4187_v13, %v1156_v22  ;;  %v1361_v39 = vsel %vm1360_vm2, %v4142_v46, %v1357_v20  ;;  %v1340_v3 = vsub.f32 1.0, %v4188_v1  ;;  %vm1135_vm4 = vmor %vm1133_vm1, %vm1134_vm3  ;;  %v4195_v2 = vld [vmem:[#allocation58_spill] sm:$0xff]  ;;  %v4204_v22 = vld [vmem:[#allocation8_spill] sm:$0xff] }
 0x18a   :  { %vm1343_vm5 = vweird.f32 %v4189_v0  ;;  %v1366_v33 = vsel %vm3778_vm15, %v1365_v44, %v1361_v39  ;;  %v1132_v24 = vadd.f32 %v4186_v50, %v1131_v61  ;;  %vm1344_vm6 = vweird.f32 %v4190_v27  ;;  %v4205_v44 = vld [vmem:[#allocation23_spill] sm:$0xff] }
 0x18b   :  { %v1140_v31 = vor.u32 1.1754944e-38, %v1139_v36  ;;  %v1555_v6 = vmul.f32 %v4191_v19, %v1366_v33  ;;  %v1341_v46 = vmul.f32 %v4190_v27, %v1340_v3  ;;  %v1347_v45 = vand.u32 2147483647, %v4189_v0  ;;  %vm1345_vm10 = vmor %vm1343_vm5, %vm1344_vm6  ;;  %v4207_v36 = vld [vmem:[#allocation24_spill] sm:$0xff] }
 0x18c   :  { %v1349_v51 = vand.u32 2147483648, %v4189_v0  ;;  %v1136_v62 = vsel %vm1135_vm4, %v4186_v50, %v1132_v24  ;;  %vm1138_vm0 = vcmp.eq.f32.partialorder %v1137_v42, 8.507059e+37  ;;  %v1115_v63 = vsub.f32 1.0, %v4192_v4  ;;  %v4206_v42 = vld [vmem:[#allocation29_spill] sm:$0xff]  ;;  %v4208_v0 = vld [vmem:[#allocation55_spill] sm:$0xff]  ;;  %v4209_v24 = vld [vmem:[#allocation30_spill] sm:$0xff] }
 0x18d   :  { %1622 = vmatpush.xpose.msra.mxu2 %v1556_v17  ;;  %vm1118_vm7 = vweird.f32 %v4193_v35  ;;  %1601 = vmatpush.xpose.msra.mxu3 %v1541_v8  ;;  %v1141_v55 = vsel %vm1138_vm0, %v1140_v31, %v1136_v62  ;;  %v1342_v56 = vadd.f32 %v4190_v27, %v1341_v46  ;;  %vm1348_vm8 = vcmp.eq.f32.partialorder %v1347_v45, 8.507059e+37  ;;  %v4211_v46 = vld [vmem:[#allocation7_spill] sm:$0xff] }
 0x18e   :  { %vm1119_vm9 = vweird.f32 %v4194_v11  ;;  %v1350_v28 = vor.u32 1.1754944e-38, %v1349_v51  ;;  %v1116_v18 = vmul.f32 %v4194_v11, %v1115_v63  ;;  %v1122_v37 = vand.u32 2147483647, %v4193_v35 }
 0x18f   :  { %v1124_v16 = vand.u32 2147483648, %v4193_v35  ;;  %v1540_v40 = vmul.f32 %v4195_v2, %v1141_v55  ;;  %v1346_v21 = vsel %vm1345_vm10, %v4190_v27, %v1342_v56  ;;  %v1325_v25 = vsub.f32 1.0, %v4196_v12  ;;  %vm1120_vm13 = vmor %vm1118_vm7, %vm1119_vm9  ;;  %v4212_v35 = vld [vmem:[#allocation6_spill] sm:$0xff] }
 0x190   :  { %vm1328_vm11 = vweird.f32 %v4197_v59  ;;  %v1351_v5 = vsel %vm1348_vm8, %v1350_v28, %v1346_v21  ;;  %v1117_v48 = vadd.f32 %v4194_v11, %v1116_v18  ;;  %vm1329_vm12 = vweird.f32 %v4198_v38  ;;  %v4213_v56 = vld [vmem:[#allocation18_spill] sm:$0xff] }
 0x191   :  { %1623 = vmatpush.xpose.msra.mxu2 %v1555_v6  ;;  %v1125_v7 = vor.u32 1.1754944e-38, %v1124_v16  ;;  %1602 = vmatpush.xpose.msra.mxu3 %v1540_v40  ;;  %v1554_v9 = vmul.f32 %v4199_v26, %v1351_v5  ;;  %v1326_v15 = vmul.f32 %v4198_v38, %v1325_v25  ;;  %v1332_v60 = vand.u32 2147483647, %v4197_v59  ;;  %vm1330_vm2 = vmor %vm1328_vm11, %vm1329_vm12  ;;  %v4210_v6 = vld [vmem:[#allocation13_spill] sm:$0xff] }
 0x192   :  { %v1334_v10 = vand.u32 2147483648, %v4197_v59  ;;  %v1121_v41 = vsel %vm1120_vm13, %v4194_v11, %v1117_v48  ;;  %vm1123_vm14 = vcmp.eq.f32.partialorder %v1122_v37, 8.507059e+37  ;;  %v1100_v53 = vsub.f32 1.0, %v4200_v47  ;;  %v4214_v37 = vld [vmem:[#allocation25_spill] sm:$0xff]  ;;  %v4216_v59 = vld [vmem:[#allocation11_spill] sm:$0xff]  ;;  %v4217_v48 = vld [vmem:[#allocation48_spill] sm:$0xff] }
 0x193   :  { %vm1103_vm15 = vweird.f32 %v4201_v34  ;;  %v1126_v23 = vsel %vm1123_vm14, %v1125_v7, %v1121_v41  ;;  %v1327_v49 = vadd.f32 %v4198_v38, %v1326_v15  ;;  %vm1104_vm1 = vweird.f32 %v4202_v30  ;;  %v4215_v16 = vld [vmem:[#allocation21_spill] sm:$0xff]  ;;  %v4219_v15 = vld [vmem:[#allocation10_spill] sm:$0xff] }
 0x194   :  { %v1335_v17 = vor.u32 1.1754944e-38, %v1334_v10  ;;  %v1539_v29 = vmul.f32 %v4203_v58, %v1126_v23  ;;  %v1101_v54 = vmul.f32 %v4202_v30, %v1100_v53  ;;  %v1107_v52 = vand.u32 2147483647, %v4201_v34  ;;  %vm1105_vm4 = vmor %vm1103_vm15, %vm1104_vm1 }
 0x195   :  { %1624 = vmatpush.xpose.msra.mxu2 %v1554_v9  ;;  %v1109_v14 = vand.u32 2147483648, %v4201_v34  ;;  %v1331_v43 = vsel %vm1330_vm2, %v4198_v38, %v1327_v49  ;;  %vm1333_vm3 = vcmp.eq.f32.partialorder %v1332_v60, 8.507059e+37  ;;  %v1310_v20 = vsub.f32 1.0, %v4204_v22  ;;  %v4218_v9 = vld [vmem:[#allocation33_spill] sm:$0xff] }
 0x196   :  { %vm1313_vm5 = vweird.f32 %v4205_v44  ;;  %1603 = vmatpush.xpose.msra.mxu3 %v1539_v29  ;;  %v1336_v57 = vsel %vm1333_vm3, %v1335_v17, %v1331_v43  ;;  %v1102_v50 = vadd.f32 %v4202_v30, %v1101_v54  ;;  %vm1314_vm6 = vweird.f32 %v4206_v42  ;;  %v4220_v34 = vld [vmem:[#allocation5_spill] sm:$0xff]  ;;  %v4222_v29 = vld [vmem:[#allocation22_spill] sm:$0xff]  ;;  %v4223_v54 = vld [vmem:[#allocation20_spill] sm:$0xff] }
 0x197   :  { %v1110_v61 = vor.u32 1.1754944e-38, %v1109_v14  ;;  %v1553_v13 = vmul.f32 %v4207_v36, %v1336_v57  ;;  %v1311_v8 = vmul.f32 %v4206_v42, %v1310_v20  ;;  %v1317_v39 = vand.u32 2147483647, %v4205_v44  ;;  %vm1315_vm9 = vmor %vm1313_vm5, %vm1314_vm6  ;;  %v4221_v49 = vld [vmem:[#allocation17_spill] sm:$0xff] }
 0x198   :  { %v1319_v1 = vand.u32 2147483648, %v4205_v44  ;;  %v1106_v3 = vsel %vm1105_vm4, %v4202_v30, %v1102_v50  ;;  %vm1108_vm0 = vcmp.eq.f32.partialorder %v1107_v52, 8.507059e+37  ;;  %v1085_v33 = vsub.f32 1.0, %v4208_v0  ;;  %v4224_v20 = vld [vmem:[#allocation41_spill] sm:$0xff] }
 0x199   :  { %vm1088_vm7 = vweird.f32 %v4209_v24  ;;  %1625 = vmatpush.xpose.msra.mxu2 %v1553_v13  ;;  %v1111_v31 = vsel %vm1108_vm0, %v1110_v61, %v1106_v3  ;;  %v1312_v27 = vadd.f32 %v4206_v42, %v1311_v8  ;;  %vm1089_vm8 = vweird.f32 %v4210_v6  ;;  %v4225_v57 = vld [vmem:[#allocation53_spill] sm:$0xff]  ;;  %v4227_v8 = vld [vmem:[#allocation47_spill] sm:$0xff] }
 0x19a   :  { %v1320_v19 = vor.u32 1.1754944e-38, %v1319_v1  ;;  %v1538_v45 = vmul.f32 %v4211_v46, %v1111_v31  ;;  %v1086_v51 = vmul.f32 %v4210_v6, %v1085_v33  ;;  %v1092_v62 = vand.u32 2147483647, %v4209_v24  ;;  %vm1090_vm13 = vmor %vm1088_vm7, %vm1089_vm8  ;;  %v4226_v13 = vld [vmem:[#allocation49_spill] sm:$0xff]  ;;  %v4229_v31 = vld [vmem:[#allocation12_spill] sm:$0xff] }
 0x19b   :  { %v1094_v4 = vand.u32 2147483648, %v4209_v24  ;;  %v1316_v63 = vsel %vm1315_vm9, %v4206_v42, %v1312_v27  ;;  %vm1318_vm10 = vcmp.eq.f32.partialorder %v1317_v39, 8.507059e+37  ;;  %v1295_v55 = vsub.f32 1.0, %v4212_v35  ;;  %v4228_v3 = vld [vmem:[#allocation45_spill] sm:$0xff] }
 0x19c   :  { %vm1298_vm11 = vweird.f32 %v4213_v56  ;;  %1604 = vmatpush.xpose.msra.mxu3 %v1538_v45  ;;  %v1321_v11 = vsel %vm1318_vm10, %v1320_v19, %v1316_v63  ;;  %v1087_v28 = vadd.f32 %v4210_v6, %v1086_v51  ;;  %vm1299_vm12 = vweird.f32 %v4214_v37  ;;  %v4230_v45 = vld [vmem:[#allocation46_spill] sm:$0xff]  ;;  %v4231_v51 = vld [vmem:[#allocation16_spill] sm:$0xff]  ;;  %v4232_v63 = vld [vmem:[#allocation43_spill] sm:$0xff] }
 0x19d   :  { %v1095_v18 = vor.u32 1.1754944e-38, %v1094_v4  ;;  %v1552_v2 = vmul.f32 %v4215_v16, %v1321_v11  ;;  %v1296_v40 = vmul.f32 %v4214_v37, %v1295_v55  ;;  %v1302_v21 = vand.u32 2147483647, %v4213_v56  ;;  %vm1300_vm2 = vmor %vm1298_vm11, %vm1299_vm12 }
 0x19e   :  { %v1304_v12 = vand.u32 2147483648, %v4213_v56  ;;  %v1091_v25 = vsel %vm1090_vm13, %v4210_v6, %v1087_v28  ;;  %vm1093_vm14 = vcmp.eq.f32.partialorder %v1092_v62, 8.507059e+37  ;;  %v1070_v5 = vsub.f32 1.0, %v4216_v59  ;;  %v1567_v56 = vld [vmem:[%s3960_s4] sm:$0xff]  ;;  %s2138_s4 = smov [#allocation2]  }
 0x19f   :  { %vm1073_vm15 = vweird.f32 %v4217_v48  ;;  %1626 = vmatpush.xpose.msra.mxu2 %v1552_v2  ;;  %v1096_v7 = vsel %vm1093_vm14, %v1095_v18, %v1091_v25  ;;  %v1297_v38 = vadd.f32 %v4214_v37, %v1296_v40  ;;  %vm1074_vm1 = vweird.f32 %v4218_v9  ;;  %v4233_v25 = vld [vmem:[#allocation44_spill] sm:$0xff]  ;;  %s1641_s20 = sshll.u32 %s2138_s4, 4  ;;  %s1642_s20 = int_to_ptr.vmem [resolvable:$true] %s1641_s20 }
 0x1a0   :  { %v1305_v26 = vor.u32 1.1754944e-38, %v1304_v12  ;;  %v1537_v60 = vmul.f32 %v4219_v15, %v1096_v7  ;;  %v1071_v10 = vmul.f32 %v4218_v9, %v1070_v5  ;;  %v1077_v41 = vand.u32 2147483647, %v4217_v48  ;;  %vm1075_vm4 = vmor %vm1073_vm15, %vm1074_vm1 }
 0x1a1   :  { %v1079_v47 = vand.u32 2147483648, %v4217_v48  ;;  %v1301_v53 = vsel %vm1300_vm2, %v4214_v37, %v1297_v38  ;;  %vm1303_vm3 = vcmp.eq.f32.partialorder %v1302_v21, 8.507059e+37  ;;  %v1280_v23 = vsub.f32 1.0, %v4220_v34 }
 0x1a2   :  { %vm1283_vm5 = vweird.f32 %v4221_v49  ;;  %1605 = vmatpush.xpose.msra.mxu3 %v1537_v60  ;;  %v1306_v17 = vsel %vm1303_vm3, %v1305_v26, %v1301_v53  ;;  %v1072_v30 = vadd.f32 %v4218_v9, %v1071_v10  ;;  %vm1284_vm6 = vweird.f32 %v4222_v29 }
 0x1a3   :  { %v1080_v58 = vor.u32 1.1754944e-38, %v1079_v47  ;;  %v1551_v52 = vmul.f32 %v4223_v54, %v1306_v17  ;;  %v1281_v14 = vmul.f32 %v4222_v29, %v1280_v23  ;;  %v1287_v43 = vand.u32 2147483647, %v4221_v49  ;;  %vm1285_vm8 = vmor %vm1283_vm5, %vm1284_vm6 }
 0x1a4   :  { %v1289_v22 = vand.u32 2147483648, %v4221_v49  ;;  %2109 = vtanh.f32 %v4224_v20  ;;  %v1076_v44 = vsel %vm1075_vm4, %v4218_v9, %v1072_v30  ;;  %vm1078_vm0 = vcmp.eq.f32.partialorder %v1077_v41, 8.507059e+37 }
 0x1a5   :  { %v1055_v50 = vsub.f32 1.0, %v4225_v57  ;;  %1627 = vmatpush.xpose.msra.mxu2 %v1551_v52  ;;  %v1081_v61 = vsel %vm1078_vm0, %v1080_v58, %v1076_v44  ;;  %v1282_v42 = vadd.f32 %v4222_v29, %v1281_v14  ;;  %vm1059_vm7 = vweird.f32 %v4226_v13 }
 0x1a6   :  { %v1290_v36 = vor.u32 1.1754944e-38, %v1289_v22  ;;  %v1536_v39 = vmul.f32 %v4227_v8, %v1081_v61  ;;  %v1062_v0 = vand.u32 2147483647, %v4228_v3  ;;  %v1064_v33 = vand.u32 2147483648, %v4228_v3 }
 0x1a7   :  { %v1056_v1 = vmul.f32 %v4226_v13, %v1055_v50  ;;  %v1286_v24 = vsel %vm1285_vm8, %v4222_v29, %v1282_v42  ;;  %vm1288_vm9 = vcmp.eq.f32.partialorder %v1287_v43, 8.507059e+37  ;;  %vm1058_vm10 = vweird.f32 %v4228_v3 }
 0x1a8   :  { %v1040_v27 = vsub.f32 1.0, %v4229_v31  ;;  %1606 = vmatpush.xpose.msra.mxu3 %v1536_v39  ;;  %v1291_v19 = vsel %vm1288_vm9, %v1290_v36, %v1286_v24  ;;  %v1065_v46 = vor.u32 1.1754944e-38, %v1064_v33  ;;  %vm1044_vm11 = vweird.f32 %v4230_v45  ;;  %vm1060_vm12 = vmor %vm1058_vm10, %vm1059_vm7 }
 0x1a9   :  { %v1057_v6 = vadd.f32 %v4226_v13, %v1056_v1  ;;  %v1550_v62 = vmul.f32 %v4231_v51, %v1291_v19  ;;  %v1047_v35 = vand.u32 2147483647, %v4232_v63  ;;  %v1049_v55 = vand.u32 2147483648, %v4232_v63 }
 0x1aa   :  { %v1041_v4 = vmul.f32 %v4230_v45, %v1040_v27  ;;  %v2110_v11 = vpop.eup %2109  ;;  %vm1063_vm13 = vcmp.eq.f32.partialorder %v1062_v0, 8.507059e+37  ;;  %vm1043_vm14 = vweird.f32 %v4232_v63  ;;  %v2137_v16 = vmov 0  }
 0x1ab   :  { %v1061_v28 = vsel %vm1060_vm12, %v4226_v13, %v1057_v6  ;;  %1628 = vmatpush.xpose.msra.mxu2 %v1550_v62  ;;  %1822 = vset.pattern.permute.xlu0 %v2137_v16  ;;  %vm1045_vm15 = vmor %vm1043_vm14, %vm1044_vm11  ;;  %v1050_v40 = vor.u32 1.1754944e-38, %v1049_v55  ;;  %vm1048_vm1 = vcmp.eq.f32.partialorder %v1047_v35, 8.507059e+37 }
 0x1ac   :  { %v1066_v18 = vsel %vm1063_vm13, %v1065_v46, %v1061_v28  ;;  %v1042_v37 = vadd.f32 %v4230_v45, %v1041_v4  ;;  %1570 = vperm.xlu0 %1822, %v1567_v56  }
 0x1ad   :  { %v1535_v2 = vmul.f32 %v2110_v11, %v1066_v18 }
 0x1ae   :  { %v1046_v21 = vsel %vm1045_vm15, %v4230_v45, %v1042_v37  ;;  %1629 = vmatmul.f32.vlgmr.msra.gmra.mxu2 %v3839_v32 }
 0x1af   :  { %1607 = vmatpush.xpose.msra.mxu3 %v1535_v2  ;;  %v1051_v12 = vsel %vm1048_vm1, %v1050_v40, %v1046_v21 }
 0x1b0   :  { %v1534_v59 = vmul.f32 %v4233_v25, %v1051_v12 }
 0x1b3   :  { %1608 = vmatpush.xpose.msra.mxu3 %v1534_v59 }
 0x1b6   :  { %1609 = vmatmul.f32.vlgmr.msra.gmra.mxu3 %v3839_v32 }
 0x20a   :  { %v1590_v5 = vpop.f32.mrf.mxu3 }
 0x21e   :  { %v1571_v48 = vpop.permute.xlu0 %1570 }
 0x21f   :  { %v1591_v7 = vadd.f32 %v1590_v5, %v1571_v48 }
 0x221   :  { %1633 = vst [vmem:[#allocation2] sm:$0xff] %v1591_v7 }
 0x231   :  { %v1630_v38 = vpop.f32.mrf.mxu2 }
 0x232   :  { %v1631_v26 = vadd.f32 %v1630_v38, %v1571_v48 }
 0x234   :  { %1635 = vst [vmem:[#allocation2 + $0x10] sm:$0xff] %v1631_v26 }
 0x239   :  { %v1610_v9 = vpop.f32.mrf.mxu3 }
 0x23a   :  { %v1611_v15 = vadd.f32 %v1610_v9, %v1571_v48 }
 0x23c   :  { %1634 = vst [vmem:[#allocation2 + $0x8] sm:$0xff] %v1611_v15 }
 0x23d   :  { %1646 = dma.vmem_to_hbm [thread:$0]  %s1642_s20, 384, %s1644_s23, [#allocation3]  }
 0x23e   :  { %2135 = dma.done.wait [#allocation3], 384  }
 0x23f   :  { %2136 = vsyncadd [#allocation3], 4294966912 }
 0x240   :  { %1651 = vsyncpa [#allocation3], 1 }

</bundles_post_ra>
